<compile_context>
chip_gen: v6e
topology: v6e:2x2x1
jax: 0.10.0
libtpu: 0.0.40
codegen_flags: <defaults>
</compile_context>

<pallas_src>
import functools
import math

import jax
import jax.numpy as jnp
from jax import lax
from jax.experimental import pallas as pl
from jax.experimental.pallas import tpu as pltpu

# ---------------- config (small shapes consistent with SimMTM.__init__) -----
N_BATCH       = 2          # batch
C_IN          = 4          # c_in
INPUT_LEN     = 16         # input_len
D_MODEL       = 32         # d_model
N_HEAD        = 4          # n_head
TIME_BLOCK    = 4          # time_block (patch_len)
MASK_RATE     = 0.5
MASK_NUM      = 2
TAU           = 0.2
WINDOW_SIZE   = 5          # series_decomp kernel size
ENCODER_DEPTH = 1
D_FF          = 4 * D_MODEL
D_HEAD        = D_MODEL // N_HEAD


def _fullspec(shape):
    """Full-array BlockSpec for a grid=(1,) kernel."""
    nd = len(shape)
    return pl.BlockSpec(tuple(shape), lambda i, _nd=nd: (0,) * _nd)


# ============================ Pallas kernels =================================

def _movavg_kernel(xp_ref, o_ref, *, ksize):
    # series_decomp moving average; whole batch in one grid step.
    B = xp_ref.shape[0]
    Lout = o_ref.shape[1]
    for b in range(B):                      # static unroll (B is tiny)
        xp = xp_ref[b]                      # (Lp, C)
        acc = xp[0:Lout].astype(jnp.float32)
        for k in range(1, ksize):
            acc = acc + xp[k:k + Lout]
        o_ref[b] = acc * (1.0 / float(ksize))


def _encoder_kernel(xc_ref, wemb_ref,
                    wqkv_ref, bqkv_ref, wo_ref, bo_ref,
                    w1_ref, b1_ref, w2_ref, b2_ref,
                    ln1g_ref, ln1b_ref, ln2g_ref, ln2b_ref,
                    ng_ref, nb_ref,
                    o_ref, *, depth, B, L, D, H, Dh):
    """Fused token-embedding conv + transformer encoder + final LayerNorm."""

    def ln(x, g, b):
        mu = jnp.mean(x, axis=-1, keepdims=True)
        var = jnp.mean(jnp.square(x - mu), axis=-1, keepdims=True)
        return (x - mu) * lax.rsqrt(var + 1e-5) * g + b

    # token embedding: circular k=3 conv as one (B*L, 3*Cin) @ (3*Cin, D) matmul
    x2 = jnp.dot(xc_ref[...].astype(jnp.bfloat16),
                 wemb_ref[...].astype(jnp.bfloat16),
                 preferred_element_type=jnp.float32)               # (B*L, D) f32

    scale = 1.0 / math.sqrt(Dh)
    for li in range(depth):
        # fused QKV projection: one lane-dense (D, 3D) matmul
        qkv = jnp.dot(x2.astype(jnp.bfloat16),
                      wqkv_ref[li].astype(jnp.bfloat16),
                      preferred_element_type=jnp.float32) + bqkv_ref[li]
        q = qkv[:, 0:D].reshape(B, L, D)
        k = qkv[:, D:2 * D].reshape(B, L, D)
        v = qkv[:, 2 * D:3 * D].reshape(B, L, D)

        head_outs = []
        for h in range(H):                                  # static unroll
            qh = q[:, :, h * Dh:(h + 1) * Dh].astype(jnp.bfloat16)
            kh = k[:, :, h * Dh:(h + 1) * Dh].astype(jnp.bfloat16)
            vh = v[:, :, h * Dh:(h + 1) * Dh].astype(jnp.bfloat16)
            s = jnp.einsum('bld,bmd->blm', qh, kh,
                           preferred_element_type=jnp.float32) * scale
            m = jnp.max(s, axis=-1, keepdims=True)
            p = jnp.exp(s - m)
            p = p / jnp.sum(p, axis=-1, keepdims=True)      # f32 softmax
            oh = jnp.einsum('blm,bmd->bld', p.astype(jnp.bfloat16), vh,
                            preferred_element_type=jnp.float32)
            head_outs.append(oh.reshape(B * L, Dh))
        attn = jnp.concatenate(head_outs, axis=-1)           # (B*L, D)
        attn = jnp.dot(attn.astype(jnp.bfloat16),
                       wo_ref[li].astype(jnp.bfloat16),
                       preferred_element_type=jnp.float32) + bo_ref[li]

        xres = x2 + attn
        xn = ln(xres, ln1g_ref[li], ln1b_ref[li])
        y = jnp.dot(xn.astype(jnp.bfloat16), w1_ref[li].astype(jnp.bfloat16),
                    preferred_element_type=jnp.float32) + b1_ref[li]
        y = jnp.maximum(y, 0.0)
        y = jnp.dot(y.astype(jnp.bfloat16), w2_ref[li].astype(jnp.bfloat16),
                    preferred_element_type=jnp.float32) + b2_ref[li]
        x2 = ln(xn + y, ln2g_ref[li], ln2b_ref[li])

    o_ref[...] = ln(x2, ng_ref[...], nb_ref[...])


def _contrastive_kernel(z_ref, o_ref, *, mask_num, tau, B):
    """Fused bmm + off-diagonal log-softmax + positive-pair loss (scalar out)."""
    zall = z_ref[...]                               # (mask_num*T, 2B, Dp) f32
    MT, twoB, _ = zall.shape
    T = MT // mask_num
    ii = lax.broadcasted_iota(jnp.int32, (T, twoB, twoB), 1)
    jj = lax.broadcasted_iota(jnp.int32, (T, twoB, twoB), 2)
    off_diag = ii != jj
    pos_mask = jj == jnp.where(ii < B, ii + B, ii - B)

    total = jnp.float32(0.0)
    for v in range(mask_num):                        # static unroll
        z = zall[v * T:(v + 1) * T]                  # (T, 2B, Dp)
        sim = jnp.einsum('tid,tjd->tij', z, z,
                         preferred_element_type=jnp.float32) / tau
        masked = jnp.where(off_diag, sim, -1e30)
        m = jnp.max(masked, axis=-1, keepdims=True)
        lse = m + jnp.log(jnp.sum(jnp.exp(masked - m), axis=-1, keepdims=True))
        pos = jnp.sum(jnp.where(pos_mask, sim, 0.0), axis=-1, keepdims=True)
        total = total + jnp.mean(lse - pos)          # == -log_softmax positives
    o_ref[...] = (total / float(mask_num)) * jnp.ones((1, 1), jnp.float32)


def _simrecon_kernel(xpn_ref, xflat_ref, o_ref, *, patch_num, tau):
    """Fused similarity matrix + exp + diag mask + row-normalize + recon matmul."""
    xpn = xpn_ref[...]                               # (total, Dp) normalized
    sim = lax.dot_general(xpn[:patch_num], xpn, (((1,), (1,)), ((), ())),
                          preferred_element_type=jnp.float32)   # (pn, total)
    sim = jnp.exp(sim / tau)
    ii = lax.broadcasted_iota(jnp.int32, sim.shape, 0)
    jj = lax.broadcasted_iota(jnp.int32, sim.shape, 1)
    sim = jnp.where(ii == jj, 0.0, sim)              # zero self-similarity
    denom = jnp.sum(sim, axis=1, keepdims=True)
    score = sim * pl.reciprocal(denom, approx=True)
    o_ref[...] = jnp.dot(score, xflat_ref[...],
                         preferred_element_type=jnp.float32)     # (pn, 128)


def _decoder_kernel(xc_ref, wconv_ref, bconv_ref, wproj_ref, bproj_ref, o_ref):
    """Fused decoder circular conv (im2col matmul) + output projection."""
    h = jnp.dot(xc_ref[...], wconv_ref[...],
                preferred_element_type=jnp.float32) + bconv_ref[...]
    o_ref[...] = jnp.dot(h, wproj_ref[...],
                         preferred_element_type=jnp.float32) + bproj_ref[...]


# ============================ wrappers =======================================

def pallas_series_decomp(x):
    # TODO(synk): series_decomp source not provided; standard Autoformer
    # moving-average decomposition (replicate-pad + avg-pool) used.
    pad = (WINDOW_SIZE - 1) // 2
    front = jnp.repeat(x[:, :1, :], pad, axis=1)
    end = jnp.repeat(x[:, -1:, :], pad, axis=1)
    xp = jnp.concatenate([front, x, end], axis=1).astype(jnp.float32)
    B, Lp, C = xp.shape
    L = x.shape[1]
    mean = pl.pallas_call(
        functools.partial(_movavg_kernel, ksize=WINDOW_SIZE),
        out_shape=jax.ShapeDtypeStruct((B, L, C), jnp.float32),
        grid=(1,),
        in_specs=[_fullspec((B, Lp, C))],
        out_specs=_fullspec((B, L, C)),
    )(xp)
    return x - mean, mean


def encoder_forward(x_s, params):
    """x_s: (Bm, L, Cin). Returns encoder output flattened to (Bm*L, D_MODEL)."""
    # TODO(synk): ResidualDecompEncoder source not provided; using the module's
    # own vanilla transformer_encoder (Informer-style EncoderLayer, dropout=id).
    Bm, L, Cin = x_s.shape
    # im2col for the k=3 circular TokenEmbedding conv (cheap XLA glue).
    xc = jnp.concatenate([jnp.roll(x_s, 1, axis=1), x_s,
                          jnp.roll(x_s, -1, axis=1)],
                         axis=-1).reshape(Bm * L, 3 * Cin).astype(jnp.float32)
    wemb = jnp.transpose(params['emb_w'], (2, 1, 0)).reshape(3 * Cin, D_MODEL)
    wemb = wemb.astype(jnp.float32)

    args = (xc, wemb,
            params['wqkv'], params['bqkv'], params['wo'], params['bo'],
            params['w1'], params['b1'], params['w2'], params['b2'],
            params['ln1_g'], params['ln1_b'], params['ln2_g'], params['ln2_b'],
            params['enc_norm_g'], params['enc_norm_b'])
    return pl.pallas_call(
        functools.partial(_encoder_kernel, depth=ENCODER_DEPTH, B=Bm, L=L,
                          D=D_MODEL, H=N_HEAD, Dh=D_HEAD),
        out_shape=jax.ShapeDtypeStruct((Bm * L, D_MODEL), jnp.float32),
        grid=(1,),
        in_specs=[_fullspec(a.shape) for a in args],
        out_specs=_fullspec((Bm * L, D_MODEL)),
        compiler_params=pltpu.CompilerParams(
            dimension_semantics=("arbitrary",)),
    )(*args)


def pallas_contrastive_loss(x_patch, mask_num, tau):
    # x_patch: (Bm, n_patch, Dp) L2-normalized patch features
    Bm, T, Dp = x_patch.shape
    num = Bm // (mask_num + 1)
    if num == 1:
        return jnp.float32(0.0)
    x0 = x_patch[:num]
    views = []
    for i in range(mask_num):
        xi = x_patch[num * (i + 1):num * (i + 2)]
        z = jnp.concatenate([x0, xi], axis=0)          # (2num, T, Dp)
        views.append(jnp.transpose(z, (1, 0, 2)))      # (T, 2num, Dp)
    zt = jnp.concatenate(views, axis=0).astype(jnp.float32)  # (mask_num*T, 2num, Dp)
    out = pl.pallas_call(
        functools.partial(_contrastive_kernel, mask_num=mask_num, tau=tau, B=num),
        out_shape=jax.ShapeDtypeStruct((1, 1), jnp.float32),
        grid=(1,),
        in_specs=[_fullspec(zt.shape)],
        out_specs=_fullspec((1, 1)),
    )(zt)
    return out[0, 0]


def pallas_sim_reconstruction(x_patch_norm_flat, x_flat, patch_num, tau):
    total, Dp = x_flat.shape
    return pl.pallas_call(
        functools.partial(_simrecon_kernel, patch_num=patch_num, tau=tau),
        out_shape=jax.ShapeDtypeStruct((patch_num, Dp), jnp.float32),
        grid=(1,),
        in_specs=[_fullspec((total, Dp)), _fullspec((total, Dp))],
        out_specs=_fullspec((patch_num, Dp)),
    )(x_patch_norm_flat.astype(jnp.float32), x_flat.astype(jnp.float32))


def pallas_decoder(x_recons, wconv_ock, bconv, wproj, bproj):
    """Fused circular Conv1d(d_model,d_model,k=3) + Linear(d_model,c_in)."""
    N, L, D = x_recons.shape
    xc = jnp.concatenate([jnp.roll(x_recons, 1, axis=1), x_recons,
                          jnp.roll(x_recons, -1, axis=1)],
                         axis=-1).reshape(N * L, 3 * D).astype(jnp.float32)
    wcat = jnp.transpose(wconv_ock, (2, 1, 0)).reshape(3 * D, D).astype(jnp.float32)
    Cout = wproj.shape[1]
    args = (xc, wcat, bconv.reshape(1, -1).astype(jnp.float32),
            wproj.astype(jnp.float32), bproj.reshape(1, -1).astype(jnp.float32))
    out = pl.pallas_call(
        _decoder_kernel,
        out_shape=jax.ShapeDtypeStruct((N * L, Cout), jnp.float32),
        grid=(1,),
        in_specs=[_fullspec(a.shape) for a in args],
        out_specs=_fullspec((N * L, Cout)),
    )(*args)
    return out.reshape(N, L, Cout)


# ============================ plain-JAX glue ==================================

def instance_norm(x):
    means = jnp.mean(x, axis=1, keepdims=True)
    xc = x - means
    stdev = jnp.sqrt(jnp.var(xc, axis=1, keepdims=True) + 1e-5)
    return xc / stdev, means, stdev


def mask_func(x_s, mask_ratio, key):
    # TODO(synk): torch.rand/argsort random masking reproduced with jax.random.
    Nn, Ln, D = x_s.shape
    len_keep = int(Ln * (1 - mask_ratio))
    mask_rand = jax.random.uniform(key, (Nn, Ln))
    ids_shuffle = jnp.argsort(mask_rand, axis=1)
    ids_keep_restore = jnp.sort(ids_shuffle[:, :len_keep], axis=1)
    ids_restore = jnp.argsort(
        jnp.concatenate([ids_keep_restore, ids_shuffle[:, len_keep:]], axis=1),
        axis=1)
    x_masked = jnp.take_along_axis(x_s, ids_keep_restore[:, :, None], axis=1)
    return x_masked, ids_restore


def generate_mask_series(x_s, mask_num, key):
    Nn, Ln, D = x_s.shape
    keys = jax.random.split(key, mask_num)
    xs, idsr = [], []
    for i in range(mask_num):
        xm, ir = mask_func(x_s, MASK_RATE, keys[i])
        xs.append(xm)
        idsr.append(ir)
    x_masked = jnp.concatenate(xs, axis=0)
    ids_restore = jnp.concatenate(idsr, axis=0)
    mask_tokens = jnp.zeros((ids_restore.shape[0], int(Ln * MASK_RATE), D),
                            jnp.float32)
    x_masked = jnp.concatenate([x_masked, mask_tokens], axis=1)
    x_masked = jnp.take_along_axis(x_masked, ids_restore[:, :, None], axis=1)
    return x_masked


# ============================ parameter init =================================

def init_params(key):
    keys = jax.random.split(key, 32)
    ki = iter(keys)

    def xavier(k, shape):
        fan_in, fan_out = shape
        lim = math.sqrt(6.0 / (fan_in + fan_out))
        return jax.random.uniform(k, shape, jnp.float32, -lim, lim)

    p = {}
    # TokenEmbedding: Conv1d(c_in, d_model, k=3, circular, bias=False)
    p['emb_w'] = 0.02 * jax.random.normal(next(ki), (D_MODEL, C_IN, 3), jnp.float32)

    wqkv, wo, w1, w2 = [], [], [], []
    for _ in range(ENCODER_DEPTH):
        wq = xavier(next(ki), (D_MODEL, D_MODEL))
        wk = xavier(next(ki), (D_MODEL, D_MODEL))
        wv = xavier(next(ki), (D_MODEL, D_MODEL))
        wqkv.append(jnp.concatenate([wq, wk, wv], axis=1))   # fused QKV weight
        wo.append(xavier(next(ki), (D_MODEL, D_MODEL)))
        w1.append(xavier(next(ki), (D_MODEL, D_FF)))
        w2.append(xavier(next(ki), (D_FF, D_MODEL)))
    p['wqkv'] = jnp.stack(wqkv)
    p['bqkv'] = jnp.zeros((ENCODER_DEPTH, 1, 3 * D_MODEL), jnp.float32)
    p['wo'] = jnp.stack(wo)
    p['bo'] = jnp.zeros((ENCODER_DEPTH, 1, D_MODEL), jnp.float32)
    p['w1'] = jnp.stack(w1)
    p['b1'] = jnp.zeros((ENCODER_DEPTH, 1, D_FF), jnp.float32)
    p['w2'] = jnp.stack(w2)
    p['b2'] = jnp.zeros((ENCODER_DEPTH, 1, D_MODEL), jnp.float32)
    p['ln1_g'] = jnp.ones((ENCODER_DEPTH, 1, D_MODEL), jnp.float32)
    p['ln1_b'] = jnp.zeros((ENCODER_DEPTH, 1, D_MODEL), jnp.float32)
    p['ln2_g'] = jnp.ones((ENCODER_DEPTH, 1, D_MODEL), jnp.float32)
    p['ln2_b'] = jnp.zeros((ENCODER_DEPTH, 1, D_MODEL), jnp.float32)
    p['enc_norm_g'] = jnp.ones((1, D_MODEL), jnp.float32)
    p['enc_norm_b'] = jnp.zeros((1, D_MODEL), jnp.float32)
    # dec_conv_s: Conv1d(d_model, d_model, k=3, circular) with bias
    p['dec_conv_w'] = 0.02 * jax.random.normal(next(ki), (D_MODEL, D_MODEL, 3),
                                               jnp.float32)
    p['dec_conv_b'] = jnp.zeros((D_MODEL,), jnp.float32)
    # proj_s: Linear(d_model -> c_in)
    p['proj_w'] = xavier(next(ki), (D_MODEL, C_IN))
    p['proj_b'] = jnp.zeros((C_IN,), jnp.float32)
    # AutomaticWeightedLoss params (ones)
    p['awl'] = jnp.ones((2,), jnp.float32)
    return p


# ============================ SimMTM forward =================================

def simmtm_forward(params, x, key):
    # x: (N, L, c_in)
    x_s_, x_t_ = pallas_series_decomp(x)
    # is_norm=True, is_decomp=True, part='s': trend branch normalized but unused.
    x_t, means, stdev = instance_norm(x_t_)
    x_s = x_s_

    # masked views (CI=False)
    x_s_masked = generate_mask_series(x_s, MASK_NUM, key)
    x_s = jnp.concatenate([x_s, x_s_masked], axis=0)     # ((mask_num+1)*N, L, C)

    # fused token embedding + transformer encoder + final norm
    enc = encoder_forward(x_s, params)                    # (3N*L, D)

    # Patching + normalize
    # TODO(synk): Patching source not provided; non-overlapping unfold of
    # patch_len*d_model features assumed.
    Bm = x_s.shape[0]
    n_patch = INPUT_LEN // TIME_BLOCK
    x_flat = enc.reshape(Bm * n_patch, TIME_BLOCK * D_MODEL)        # (24, 128)
    nrm = jnp.maximum(jnp.linalg.norm(x_flat, axis=-1, keepdims=True), 1e-12)
    x_patch_norm_flat = x_flat / nrm
    x_patch_norm = x_patch_norm_flat.reshape(Bm, n_patch, TIME_BLOCK * D_MODEL)

    contrastive_loss = pallas_contrastive_loss(x_patch_norm, MASK_NUM, TAU)

    # similarity-weighted reconstruction (fused kernel)
    patch_num = Bm * n_patch // (MASK_NUM + 1)
    x_recons = pallas_sim_reconstruction(x_patch_norm_flat, x_flat,
                                         patch_num, TAU)             # (8, 128)
    x_recons = x_recons.reshape(patch_num, TIME_BLOCK, D_MODEL)
    x_recons = x_recons.reshape(patch_num // n_patch,
                                n_patch * TIME_BLOCK, D_MODEL)        # (N, L, D)

    # fused decoder conv + projection
    x_out = pallas_decoder(x_recons, params['dec_conv_w'], params['dec_conv_b'],
                           params['proj_w'], params['proj_b'])        # (N, L, C)

    # losses (is_decomp=True, part='s' -> compare against seasonal component)
    loss_s = jnp.mean((x_out - x_s_) ** 2)
    aw = params['awl']
    loss = (0.5 / aw[0] ** 2 * loss_s + jnp.log(1.0 + aw[0] ** 2)
            + 0.5 / aw[1] ** 2 * contrastive_loss + jnp.log(1.0 + aw[1] ** 2))
    return x_out, loss


# ============================ main ===========================================

if __name__ == "__main__":
    key = jax.random.PRNGKey(0)
    pkey, xkey, mkey = jax.random.split(key, 3)
    params = init_params(pkey)
    x = jax.random.normal(xkey, (N_BATCH, INPUT_LEN, C_IN), jnp.float32)

    fwd = jax.jit(simmtm_forward)
    x_rec, loss = fwd(params, x, mkey)
    jax.block_until_ready((x_rec, loss))

    assert x_rec.shape == (N_BATCH, INPUT_LEN, C_IN)
    assert bool(jnp.isfinite(loss))
    print("KERNEL_OK")
</pallas_src>

<mosaic_0001>
module attributes {stable_mosaic.version = 11 : i64} {
  func.func @_movavg_kernel(%arg0: i32, %arg1: memref<2x20x4xf32, #tpu.memory_space<vmem>>, %arg2: memref<2x16x4xf32, #tpu.memory_space<vmem>>) attributes {dimension_semantics = [#tpu.dimension_semantics<arbitrary>], iteration_bounds = array<i64: 1>, scalar_prefetch = 0 : i64, scratch_operands = 0 : i64, tpu.core_type = #tpu.core_type<tc>, window_params = [{pipeline_mode = #tpu.pipeline_mode<synchronous>, transform_indices = @transform_0, window_bounds = array<i64: 2, 20, 4>}, {pipeline_mode = #tpu.pipeline_mode<synchronous>, transform_indices = @transform_1, window_bounds = array<i64: 2, 16, 4>}]} {
    %c0 = arith.constant 0 : index
    %c0_0 = arith.constant 0 : index
    %c0_1 = arith.constant 0 : index
    %0 = vector.load %arg1[%c0, %c0_0, %c0_1] : memref<2x20x4xf32, #tpu.memory_space<vmem>>, vector<1x20x4xf32>
    %1 = vector.shape_cast %0 : vector<1x20x4xf32> to vector<20x4xf32>
    %2 = vector.extract_strided_slice %1 {offsets = [0, 0], sizes = [16, 4], strides = [1, 1]} : vector<20x4xf32> to vector<16x4xf32>
    %3 = vector.extract_strided_slice %1 {offsets = [1, 0], sizes = [16, 4], strides = [1, 1]} : vector<20x4xf32> to vector<16x4xf32>
    %4 = arith.addf %2, %3 : vector<16x4xf32>
    %5 = vector.extract_strided_slice %1 {offsets = [2, 0], sizes = [16, 4], strides = [1, 1]} : vector<20x4xf32> to vector<16x4xf32>
    %6 = arith.addf %4, %5 : vector<16x4xf32>
    %7 = vector.extract_strided_slice %1 {offsets = [3, 0], sizes = [16, 4], strides = [1, 1]} : vector<20x4xf32> to vector<16x4xf32>
    %8 = arith.addf %6, %7 : vector<16x4xf32>
    %9 = vector.extract_strided_slice %1 {offsets = [4, 0], sizes = [16, 4], strides = [1, 1]} : vector<20x4xf32> to vector<16x4xf32>
    %10 = arith.addf %8, %9 : vector<16x4xf32>
    %cst = arith.constant 2.000000e-01 : f32
    %11 = vector.broadcast %cst : f32 to vector<16x4xf32>
    %12 = arith.mulf %10, %11 : vector<16x4xf32>
    %c0_2 = arith.constant 0 : index
    %c0_3 = arith.constant 0 : index
    %c0_4 = arith.constant 0 : index
    %13 = vector.load %arg2[%c0_2, %c0_3, %c0_4] : memref<2x16x4xf32, #tpu.memory_space<vmem>>, vector<1x16x4xf32>
    %14 = vector.shape_cast %13 : vector<1x16x4xf32> to vector<16x4xf32>
    %15 = vector.shape_cast %12 : vector<16x4xf32> to vector<1x16x4xf32>
    tpu.vector_store %arg2[%c0_2, %c0_3, %c0_4], %15 {strides = array<i32>} : memref<2x16x4xf32, #tpu.memory_space<vmem>>, vector<1x16x4xf32>,
    %c1 = arith.constant 1 : index
    %c0_5 = arith.constant 0 : index
    %c0_6 = arith.constant 0 : index
    %16 = vector.load %arg1[%c1, %c0_5, %c0_6] : memref<2x20x4xf32, #tpu.memory_space<vmem>>, vector<1x20x4xf32>
    %17 = vector.shape_cast %16 : vector<1x20x4xf32> to vector<20x4xf32>
    %18 = vector.extract_strided_slice %17 {offsets = [0, 0], sizes = [16, 4], strides = [1, 1]} : vector<20x4xf32> to vector<16x4xf32>
    %19 = vector.extract_strided_slice %17 {offsets = [1, 0], sizes = [16, 4], strides = [1, 1]} : vector<20x4xf32> to vector<16x4xf32>
    %20 = arith.addf %18, %19 : vector<16x4xf32>
    %21 = vector.extract_strided_slice %17 {offsets = [2, 0], sizes = [16, 4], strides = [1, 1]} : vector<20x4xf32> to vector<16x4xf32>
    %22 = arith.addf %20, %21 : vector<16x4xf32>
    %23 = vector.extract_strided_slice %17 {offsets = [3, 0], sizes = [16, 4], strides = [1, 1]} : vector<20x4xf32> to vector<16x4xf32>
    %24 = arith.addf %22, %23 : vector<16x4xf32>
    %25 = vector.extract_strided_slice %17 {offsets = [4, 0], sizes = [16, 4], strides = [1, 1]} : vector<20x4xf32> to vector<16x4xf32>
    %26 = arith.addf %24, %25 : vector<16x4xf32>
    %cst_7 = arith.constant 2.000000e-01 : f32
    %27 = vector.broadcast %cst_7 : f32 to vector<16x4xf32>
    %28 = arith.mulf %26, %27 : vector<16x4xf32>
    %c1_8 = arith.constant 1 : index
    %c0_9 = arith.constant 0 : index
    %c0_10 = arith.constant 0 : index
    %29 = vector.load %arg2[%c1_8, %c0_9, %c0_10] : memref<2x16x4xf32, #tpu.memory_space<vmem>>, vector<1x16x4xf32>
    %30 = vector.shape_cast %29 : vector<1x16x4xf32> to vector<16x4xf32>
    %31 = vector.shape_cast %28 : vector<16x4xf32> to vector<1x16x4xf32>
    tpu.vector_store %arg2[%c1_8, %c0_9, %c0_10], %31 {strides = array<i32>} : memref<2x16x4xf32, #tpu.memory_space<vmem>>, vector<1x16x4xf32>,
    return
  }
  func.func @transform_0(%arg0: i32) -> (i32, i32, i32) {
    %c0_i32 = arith.constant 0 : i32
    %c0_i32_0 = arith.constant 0 : i32
    %c0_i32_1 = arith.constant 0 : i32
    %c0_i32_2 = arith.constant 0 : i32
    return %c0_i32, %c0_i32_0, %c0_i32_1 : i32, i32, i32
  }
  func.func @transform_1(%arg0: i32) -> (i32, i32, i32) {
    %c0_i32 = arith.constant 0 : i32
    %c0_i32_0 = arith.constant 0 : i32
    %c0_i32_1 = arith.constant 0 : i32
    %c0_i32_2 = arith.constant 0 : i32
    return %c0_i32, %c0_i32_0, %c0_i32_1 : i32, i32, i32
  }
}

module attributes {stable_mosaic.version = 11 : i64} {
  func.func @_encoder_kernel(%arg0: i32, %arg1: memref<96x12xf32, #tpu.memory_space<vmem>>, %arg2: memref<12x32xf32, #tpu.memory_space<vmem>>, %arg3: memref<1x32x96xf32, #tpu.memory_space<vmem>>, %arg4: memref<1x1x96xf32, #tpu.memory_space<vmem>>, %arg5: memref<1x32x32xf32, #tpu.memory_space<vmem>>, %arg6: memref<1x1x32xf32, #tpu.memory_space<vmem>>, %arg7: memref<1x32x128xf32, #tpu.memory_space<vmem>>, %arg8: memref<1x1x128xf32, #tpu.memory_space<vmem>>, %arg9: memref<1x128x32xf32, #tpu.memory_space<vmem>>, %arg10: memref<1x1x32xf32, #tpu.memory_space<vmem>>, %arg11: memref<1x1x32xf32, #tpu.memory_space<vmem>>, %arg12: memref<1x1x32xf32, #tpu.memory_space<vmem>>, %arg13: memref<1x1x32xf32, #tpu.memory_space<vmem>>, %arg14: memref<1x1x32xf32, #tpu.memory_space<vmem>>, %arg15: memref<1x32xf32, #tpu.memory_space<vmem>>, %arg16: memref<1x32xf32, #tpu.memory_space<vmem>>, %arg17: memref<96x32xf32, #tpu.memory_space<vmem>>) attributes {dimension_semantics = [#tpu.dimension_semantics<arbitrary>], iteration_bounds = array<i64: 1>, scalar_prefetch = 0 : i64, scratch_operands = 0 : i64, tpu.core_type = #tpu.core_type<tc>, window_params = [{pipeline_mode = #tpu.pipeline_mode<synchronous>, transform_indices = @transform_0, window_bounds = array<i64: 96, 12>}, {pipeline_mode = #tpu.pipeline_mode<synchronous>, transform_indices = @transform_1, window_bounds = array<i64: 12, 32>}, {pipeline_mode = #tpu.pipeline_mode<synchronous>, transform_indices = @transform_2, window_bounds = array<i64: 1, 32, 96>}, {pipeline_mode = #tpu.pipeline_mode<synchronous>, transform_indices = @transform_3, window_bounds = array<i64: 1, 1, 96>}, {pipeline_mode = #tpu.pipeline_mode<synchronous>, transform_indices = @transform_4, window_bounds = array<i64: 1, 32, 32>}, {pipeline_mode = #tpu.pipeline_mode<synchronous>, transform_indices = @transform_5, window_bounds = array<i64: 1, 1, 32>}, {pipeline_mode = #tpu.pipeline_mode<synchronous>, transform_indices = @transform_6, window_bounds = array<i64: 1, 32, 128>}, {pipeline_mode = #tpu.pipeline_mode<synchronous>, transform_indices = @transform_7, window_bounds = array<i64: 1, 1, 128>}, {pipeline_mode = #tpu.pipeline_mode<synchronous>, transform_indices = @transform_8, window_bounds = array<i64: 1, 128, 32>}, {pipeline_mode = #tpu.pipeline_mode<synchronous>, transform_indices = @transform_9, window_bounds = array<i64: 1, 1, 32>}, {pipeline_mode = #tpu.pipeline_mode<synchronous>, transform_indices = @transform_10, window_bounds = array<i64: 1, 1, 32>}, {pipeline_mode = #tpu.pipeline_mode<synchronous>, transform_indices = @transform_11, window_bounds = array<i64: 1, 1, 32>}, {pipeline_mode = #tpu.pipeline_mode<synchronous>, transform_indices = @transform_12, window_bounds = array<i64: 1, 1, 32>}, {pipeline_mode = #tpu.pipeline_mode<synchronous>, transform_indices = @transform_13, window_bounds = array<i64: 1, 1, 32>}, {pipeline_mode = #tpu.pipeline_mode<synchronous>, transform_indices = @transform_14, window_bounds = array<i64: 1, 32>}, {pipeline_mode = #tpu.pipeline_mode<synchronous>, transform_indices = @transform_15, window_bounds = array<i64: 1, 32>}, {pipeline_mode = #tpu.pipeline_mode<synchronous>, transform_indices = @transform_16, window_bounds = array<i64: 96, 32>}]} {
    %c0 = arith.constant 0 : index
    %c0_0 = arith.constant 0 : index
    %0 = vector.load %arg1[%c0, %c0_0] : memref<96x12xf32, #tpu.memory_space<vmem>>, vector<96x12xf32>
    %1 = arith.truncf %0 : vector<96x12xf32> to vector<96x12xbf16>
    %c0_1 = arith.constant 0 : index
    %c0_2 = arith.constant 0 : index
    %2 = vector.load %arg2[%c0_1, %c0_2] : memref<12x32xf32, #tpu.memory_space<vmem>>, vector<12x32xf32>
    %3 = arith.truncf %2 : vector<12x32xf32> to vector<12x32xbf16>
    %cst = arith.constant dense<0.000000e+00> : vector<96x32xf32>
    %4 = tpu.matmul %1, %3, %cst {dimension_numbers = #tpu.dot_dimension_numbers<[1], [0], [0], [1], [0, 0, 1, 1], [], []>} : vector<96x12xbf16>, vector<12x32xbf16>, vector<96x32xf32> -> vector<96x32xf32>
    %5 = arith.truncf %4 : vector<96x32xf32> to vector<96x32xbf16>
    %c0_3 = arith.constant 0 : index
    %c0_4 = arith.constant 0 : index
    %c0_5 = arith.constant 0 : index
    %6 = vector.load %arg3[%c0_3, %c0_4, %c0_5] : memref<1x32x96xf32, #tpu.memory_space<vmem>>, vector<1x32x96xf32>
    %7 = vector.shape_cast %6 : vector<1x32x96xf32> to vector<32x96xf32>
    %8 = arith.truncf %7 : vector<32x96xf32> to vector<32x96xbf16>
    %cst_6 = arith.constant dense<0.000000e+00> : vector<96x96xf32>
    %9 = tpu.matmul %5, %8, %cst_6 {dimension_numbers = #tpu.dot_dimension_numbers<[1], [0], [0], [1], [0, 0, 1, 1], [], []>} : vector<96x32xbf16>, vector<32x96xbf16>, vector<96x96xf32> -> vector<96x96xf32>
    %c0_7 = arith.constant 0 : index
    %c0_8 = arith.constant 0 : index
    %c0_9 = arith.constant 0 : index
    %10 = vector.load %arg4[%c0_7, %c0_8, %c0_9] : memref<1x1x96xf32, #tpu.memory_space<vmem>>, vector<1x1x96xf32>
    %11 = vector.shape_cast %10 : vector<1x1x96xf32> to vector<1x96xf32>
    %12 = vector.broadcast %11 : vector<1x96xf32> to vector<96x96xf32>
    %13 = arith.addf %9, %12 : vector<96x96xf32>
    %14 = vector.extract_strided_slice %13 {offsets = [0, 0], sizes = [96, 32], strides = [1, 1]} : vector<96x96xf32> to vector<96x32xf32>
    %15 = vector.shape_cast %14 : vector<96x32xf32> to vector<6x16x32xf32>
    %16 = vector.extract_strided_slice %13 {offsets = [0, 32], sizes = [96, 32], strides = [1, 1]} : vector<96x96xf32> to vector<96x32xf32>
    %17 = vector.shape_cast %16 : vector<96x32xf32> to vector<6x16x32xf32>
    %18 = vector.extract_strided_slice %13 {offsets = [0, 64], sizes = [96, 32], strides = [1, 1]} : vector<96x96xf32> to vector<96x32xf32>
    %19 = vector.shape_cast %18 : vector<96x32xf32> to vector<6x16x32xf32>
    %20 = vector.extract_strided_slice %15 {offsets = [0, 0, 0], sizes = [6, 16, 8], strides = [1, 1, 1]} : vector<6x16x32xf32> to vector<6x16x8xf32>
    %21 = arith.truncf %20 : vector<6x16x8xf32> to vector<6x16x8xbf16>
    %22 = vector.extract_strided_slice %17 {offsets = [0, 0, 0], sizes = [6, 16, 8], strides = [1, 1, 1]} : vector<6x16x32xf32> to vector<6x16x8xf32>
    %23 = arith.truncf %22 : vector<6x16x8xf32> to vector<6x16x8xbf16>
    %24 = vector.extract_strided_slice %19 {offsets = [0, 0, 0], sizes = [6, 16, 8], strides = [1, 1, 1]} : vector<6x16x32xf32> to vector<6x16x8xf32>
    %25 = arith.truncf %24 : vector<6x16x8xf32> to vector<6x16x8xbf16>
    "tpu.trace_start"() <{level = 10 : i32, message = "bld,bmd->blm"}> : () -> ()
    %cst_10 = arith.constant dense<0.000000e+00> : vector<6x16x16xf32>
    %26 = tpu.matmul %21, %23, %cst_10 {dimension_numbers = #tpu.dot_dimension_numbers<[2], [2], [1], [1], [0, 0, 0, 1, 1, 1], [0], [0]>} : vector<6x16x8xbf16>, vector<6x16x8xbf16>, vector<6x16x16xf32> -> vector<6x16x16xf32>
    "tpu.trace_stop"() : () -> ()
    %cst_11 = arith.constant 0.353553385 : f32
    %27 = vector.broadcast %cst_11 : f32 to vector<6x16x16xf32>
    %28 = arith.mulf %26, %27 : vector<6x16x16xf32>
    %cst_12 = arith.constant dense<0xFF800000> : vector<6x16xf32>
    %29 = vector.multi_reduction <maximumf>, %28, %cst_12 [2] : vector<6x16x16xf32> to vector<6x16xf32>
    %30 = vector.shape_cast %29 : vector<6x16xf32> to vector<6x16x1xf32>
    %31 = vector.broadcast %30 : vector<6x16x1xf32> to vector<6x16x16xf32>
    %32 = arith.subf %28, %31 : vector<6x16x16xf32>
    %33 = math.exp %32 : vector<6x16x16xf32>
    %cst_13 = arith.constant dense<0.000000e+00> : vector<6x16xf32>
    %34 = vector.multi_reduction <add>, %33, %cst_13 [2] : vector<6x16x16xf32> to vector<6x16xf32>
    %35 = vector.shape_cast %34 : vector<6x16xf32> to vector<6x16x1xf32>
    %36 = vector.broadcast %35 : vector<6x16x1xf32> to vector<6x16x16xf32>
    %37 = arith.divf %33, %36 : vector<6x16x16xf32>
    %38 = arith.truncf %37 : vector<6x16x16xf32> to vector<6x16x16xbf16>
    "tpu.trace_start"() <{level = 10 : i32, message = "blm,bmd->bld"}> : () -> ()
    %cst_14 = arith.constant dense<0.000000e+00> : vector<6x16x8xf32>
    %39 = tpu.matmul %38, %25, %cst_14 {dimension_numbers = #tpu.dot_dimension_numbers<[2], [1], [1], [2], [0, 0, 0, 1, 1, 2], [0], [0]>} : vector<6x16x16xbf16>, vector<6x16x8xbf16>, vector<6x16x8xf32> -> vector<6x16x8xf32>
    "tpu.trace_stop"() : () -> ()
    %40 = vector.shape_cast %39 : vector<6x16x8xf32> to vector<96x8xf32>
    %41 = vector.extract_strided_slice %15 {offsets = [0, 0, 8], sizes = [6, 16, 8], strides = [1, 1, 1]} : vector<6x16x32xf32> to vector<6x16x8xf32>
    %42 = arith.truncf %41 : vector<6x16x8xf32> to vector<6x16x8xbf16>
    %43 = vector.extract_strided_slice %17 {offsets = [0, 0, 8], sizes = [6, 16, 8], strides = [1, 1, 1]} : vector<6x16x32xf32> to vector<6x16x8xf32>
    %44 = arith.truncf %43 : vector<6x16x8xf32> to vector<6x16x8xbf16>
    %45 = vector.extract_strided_slice %19 {offsets = [0, 0, 8], sizes = [6, 16, 8], strides = [1, 1, 1]} : vector<6x16x32xf32> to vector<6x16x8xf32>
    %46 = arith.truncf %45 : vector<6x16x8xf32> to vector<6x16x8xbf16>
    "tpu.trace_start"() <{level = 10 : i32, message = "bld,bmd->blm"}> : () -> ()
    %cst_15 = arith.constant dense<0.000000e+00> : vector<6x16x16xf32>
    %47 = tpu.matmul %42, %44, %cst_15 {dimension_numbers = #tpu.dot_dimension_numbers<[2], [2], [1], [1], [0, 0, 0, 1, 1, 1], [0], [0]>} : vector<6x16x8xbf16>, vector<6x16x8xbf16>, vector<6x16x16xf32> -> vector<6x16x16xf32>
    "tpu.trace_stop"() : () -> ()
    %cst_16 = arith.constant 0.353553385 : f32
    %48 = vector.broadcast %cst_16 : f32 to vector<6x16x16xf32>
    %49 = arith.mulf %47, %48 : vector<6x16x16xf32>
    %cst_17 = arith.constant dense<0xFF800000> : vector<6x16xf32>
    %50 = vector.multi_reduction <maximumf>, %49, %cst_17 [2] : vector<6x16x16xf32> to vector<6x16xf32>
    %51 = vector.shape_cast %50 : vector<6x16xf32> to vector<6x16x1xf32>
    %52 = vector.broadcast %51 : vector<6x16x1xf32> to vector<6x16x16xf32>
    %53 = arith.subf %49, %52 : vector<6x16x16xf32>
    %54 = math.exp %53 : vector<6x16x16xf32>
    %cst_18 = arith.constant dense<0.000000e+00> : vector<6x16xf32>
    %55 = vector.multi_reduction <add>, %54, %cst_18 [2] : vector<6x16x16xf32> to vector<6x16xf32>
    %56 = vector.shape_cast %55 : vector<6x16xf32> to vector<6x16x1xf32>
    %57 = vector.broadcast %56 : vector<6x16x1xf32> to vector<6x16x16xf32>
    %58 = arith.divf %54, %57 : vector<6x16x16xf32>
    %59 = arith.truncf %58 : vector<6x16x16xf32> to vector<6x16x16xbf16>
    "tpu.trace_start"() <{level = 10 : i32, message = "blm,bmd->bld"}> : () -> ()
    %cst_19 = arith.constant dense<0.000000e+00> : vector<6x16x8xf32>
    %60 = tpu.matmul %59, %46, %cst_19 {dimension_numbers = #tpu.dot_dimension_numbers<[2], [1], [1], [2], [0, 0, 0, 1, 1, 2], [0], [0]>} : vector<6x16x16xbf16>, vector<6x16x8xbf16>, vector<6x16x8xf32> -> vector<6x16x8xf32>
    "tpu.trace_stop"() : () -> ()
    %61 = vector.shape_cast %60 : vector<6x16x8xf32> to vector<96x8xf32>
    %62 = vector.extract_strided_slice %15 {offsets = [0, 0, 16], sizes = [6, 16, 8], strides = [1, 1, 1]} : vector<6x16x32xf32> to vector<6x16x8xf32>
    %63 = arith.truncf %62 : vector<6x16x8xf32> to vector<6x16x8xbf16>
    %64 = vector.extract_strided_slice %17 {offsets = [0, 0, 16], sizes = [6, 16, 8], strides = [1, 1, 1]} : vector<6x16x32xf32> to vector<6x16x8xf32>
    %65 = arith.truncf %64 : vector<6x16x8xf32> to vector<6x16x8xbf16>
    %66 = vector.extract_strided_slice %19 {offsets = [0, 0, 16], sizes = [6, 16, 8], strides = [1, 1, 1]} : vector<6x16x32xf32> to vector<6x16x8xf32>
    %67 = arith.truncf %66 : vector<6x16x8xf32> to vector<6x16x8xbf16>
    "tpu.trace_start"() <{level = 10 : i32, message = "bld,bmd->blm"}> : () -> ()
    %cst_20 = arith.constant dense<0.000000e+00> : vector<6x16x16xf32>
    %68 = tpu.matmul %63, %65, %cst_20 {dimension_numbers = #tpu.dot_dimension_numbers<[2], [2], [1], [1], [0, 0, 0, 1, 1, 1], [0], [0]>} : vector<6x16x8xbf16>, vector<6x16x8xbf16>, vector<6x16x16xf32> -> vector<6x16x16xf32>
    "tpu.trace_stop"() : () -> ()
    %cst_21 = arith.constant 0.353553385 : f32
    %69 = vector.broadcast %cst_21 : f32 to vector<6x16x16xf32>
    %70 = arith.mulf %68, %69 : vector<6x16x16xf32>
    %cst_22 = arith.constant dense<0xFF800000> : vector<6x16xf32>
    %71 = vector.multi_reduction <maximumf>, %70, %cst_22 [2] : vector<6x16x16xf32> to vector<6x16xf32>
    %72 = vector.shape_cast %71 : vector<6x16xf32> to vector<6x16x1xf32>
    %73 = vector.broadcast %72 : vector<6x16x1xf32> to vector<6x16x16xf32>
    %74 = arith.subf %70, %73 : vector<6x16x16xf32>
    %75 = math.exp %74 : vector<6x16x16xf32>
    %cst_23 = arith.constant dense<0.000000e+00> : vector<6x16xf32>
    %76 = vector.multi_reduction <add>, %75, %cst_23 [2] : vector<6x16x16xf32> to vector<6x16xf32>
    %77 = vector.shape_cast %76 : vector<6x16xf32> to vector<6x16x1xf32>
    %78 = vector.broadcast %77 : vector<6x16x1xf32> to vector<6x16x16xf32>
    %79 = arith.divf %75, %78 : vector<6x16x16xf32>
    %80 = arith.truncf %79 : vector<6x16x16xf32> to vector<6x16x16xbf16>
    "tpu.trace_start"() <{level = 10 : i32, message = "blm,bmd->bld"}> : () -> ()
    %cst_24 = arith.constant dense<0.000000e+00> : vector<6x16x8xf32>
    %81 = tpu.matmul %80, %67, %cst_24 {dimension_numbers = #tpu.dot_dimension_numbers<[2], [1], [1], [2], [0, 0, 0, 1, 1, 2], [0], [0]>} : vector<6x16x16xbf16>, vector<6x16x8xbf16>, vector<6x16x8xf32> -> vector<6x16x8xf32>
    "tpu.trace_stop"() : () -> ()
    %82 = vector.shape_cast %81 : vector<6x16x8xf32> to vector<96x8xf32>
    %83 = vector.extract_strided_slice %15 {offsets = [0, 0, 24], sizes = [6, 16, 8], strides = [1, 1, 1]} : vector<6x16x32xf32> to vector<6x16x8xf32>
    %84 = arith.truncf %83 : vector<6x16x8xf32> to vector<6x16x8xbf16>
    %85 = vector.extract_strided_slice %17 {offsets = [0, 0, 24], sizes = [6, 16, 8], strides = [1, 1, 1]} : vector<6x16x32xf32> to vector<6x16x8xf32>
    %86 = arith.truncf %85 : vector<6x16x8xf32> to vector<6x16x8xbf16>
    %87 = vector.extract_strided_slice %19 {offsets = [0, 0, 24], sizes = [6, 16, 8], strides = [1, 1, 1]} : vector<6x16x32xf32> to vector<6x16x8xf32>
    %88 = arith.truncf %87 : vector<6x16x8xf32> to vector<6x16x8xbf16>
    "tpu.trace_start"() <{level = 10 : i32, message = "bld,bmd->blm"}> : () -> ()
    %cst_25 = arith.constant dense<0.000000e+00> : vector<6x16x16xf32>
    %89 = tpu.matmul %84, %86, %cst_25 {dimension_numbers = #tpu.dot_dimension_numbers<[2], [2], [1], [1], [0, 0, 0, 1, 1, 1], [0], [0]>} : vector<6x16x8xbf16>, vector<6x16x8xbf16>, vector<6x16x16xf32> -> vector<6x16x16xf32>
    "tpu.trace_stop"() : () -> ()
    %cst_26 = arith.constant 0.353553385 : f32
    %90 = vector.broadcast %cst_26 : f32 to vector<6x16x16xf32>
    %91 = arith.mulf %89, %90 : vector<6x16x16xf32>
    %cst_27 = arith.constant dense<0xFF800000> : vector<6x16xf32>
    %92 = vector.multi_reduction <maximumf>, %91, %cst_27 [2] : vector<6x16x16xf32> to vector<6x16xf32>
    %93 = vector.shape_cast %92 : vector<6x16xf32> to vector<6x16x1xf32>
    %94 = vector.broadcast %93 : vector<6x16x1xf32> to vector<6x16x16xf32>
    %95 = arith.subf %91, %94 : vector<6x16x16xf32>
    %96 = math.exp %95 : vector<6x16x16xf32>
    %cst_28 = arith.constant dense<0.000000e+00> : vector<6x16xf32>
    %97 = vector.multi_reduction <add>, %96, %cst_28 [2] : vector<6x16x16xf32> to vector<6x16xf32>
    %98 = vector.shape_cast %97 : vector<6x16xf32> to vector<6x16x1xf32>
    %99 = vector.broadcast %98 : vector<6x16x1xf32> to vector<6x16x16xf32>
    %100 = arith.divf %96, %99 : vector<6x16x16xf32>
    %101 = arith.truncf %100 : vector<6x16x16xf32> to vector<6x16x16xbf16>
    "tpu.trace_start"() <{level = 10 : i32, message = "blm,bmd->bld"}> : () -> ()
    %cst_29 = arith.constant dense<0.000000e+00> : vector<6x16x8xf32>
    %102 = tpu.matmul %101, %88, %cst_29 {dimension_numbers = #tpu.dot_dimension_numbers<[2], [1], [1], [2], [0, 0, 0, 1, 1, 2], [0], [0]>} : vector<6x16x16xbf16>, vector<6x16x8xbf16>, vector<6x16x8xf32> -> vector<6x16x8xf32>
    "tpu.trace_stop"() : () -> ()
    %103 = vector.shape_cast %102 : vector<6x16x8xf32> to vector<96x8xf32>
    %104 = tpu.concatenate %40, %61, %82, %103 in 1 : vector<96x8xf32>, vector<96x8xf32>, vector<96x8xf32>, vector<96x8xf32> -> vector<96x32xf32>
    %105 = arith.truncf %104 : vector<96x32xf32> to vector<96x32xbf16>
    %c0_30 = arith.constant 0 : index
    %c0_31 = arith.constant 0 : index
    %c0_32 = arith.constant 0 : index
    %106 = vector.load %arg5[%c0_30, %c0_31, %c0_32] : memref<1x32x32xf32, #tpu.memory_space<vmem>>, vector<1x32x32xf32>
    %107 = vector.shape_cast %106 : vector<1x32x32xf32> to vector<32x32xf32>
    %108 = arith.truncf %107 : vector<32x32xf32> to vector<32x32xbf16>
    %cst_33 = arith.constant dense<0.000000e+00> : vector<96x32xf32>
    %109 = tpu.matmul %105, %108, %cst_33 {dimension_numbers = #tpu.dot_dimension_numbers<[1], [0], [0], [1], [0, 0, 1, 1], [], []>} : vector<96x32xbf16>, vector<32x32xbf16>, vector<96x32xf32> -> vector<96x32xf32>
    %c0_34 = arith.constant 0 : index
    %c0_35 = arith.constant 0 : index
    %c0_36 = arith.constant 0 : index
    %110 = vector.load %arg6[%c0_34, %c0_35, %c0_36] : memref<1x1x32xf32, #tpu.memory_space<vmem>>, vector<1x1x32xf32>
    %111 = vector.shape_cast %110 : vector<1x1x32xf32> to vector<1x32xf32>
    %112 = vector.broadcast %111 : vector<1x32xf32> to vector<96x32xf32>
    %113 = arith.addf %109, %112 : vector<96x32xf32>
    %114 = arith.addf %4, %113 : vector<96x32xf32>
    %c0_37 = arith.constant 0 : index
    %c0_38 = arith.constant 0 : index
    %c0_39 = arith.constant 0 : index
    %115 = vector.load %arg11[%c0_37, %c0_38, %c0_39] : memref<1x1x32xf32, #tpu.memory_space<vmem>>, vector<1x1x32xf32>
    %116 = vector.shape_cast %115 : vector<1x1x32xf32> to vector<1x32xf32>
    %c0_40 = arith.constant 0 : index
    %c0_41 = arith.constant 0 : index
    %c0_42 = arith.constant 0 : index
    %117 = vector.load %arg12[%c0_40, %c0_41, %c0_42] : memref<1x1x32xf32, #tpu.memory_space<vmem>>, vector<1x1x32xf32>
    %118 = vector.shape_cast %117 : vector<1x1x32xf32> to vector<1x32xf32>
    %cst_43 = arith.constant dense<0.000000e+00> : vector<96xf32>
    %119 = vector.multi_reduction <add>, %114, %cst_43 [1] : vector<96x32xf32> to vector<96xf32>
    %120 = vector.shape_cast %119 : vector<96xf32> to vector<96x1xf32>
    %cst_44 = arith.constant 3.200000e+01 : f32
    %121 = vector.broadcast %cst_44 : f32 to vector<96x1xf32>
    %122 = arith.divf %120, %121 : vector<96x1xf32>
    %123 = vector.broadcast %122 : vector<96x1xf32> to vector<96x32xf32>
    %124 = arith.subf %114, %123 : vector<96x32xf32>
    %125 = arith.mulf %124, %124 : vector<96x32xf32>
    %cst_45 = arith.constant dense<0.000000e+00> : vector<96xf32>
    %126 = vector.multi_reduction <add>, %125, %cst_45 [1] : vector<96x32xf32> to vector<96xf32>
    %127 = vector.shape_cast %126 : vector<96xf32> to vector<96x1xf32>
    %cst_46 = arith.constant 3.200000e+01 : f32
    %128 = vector.broadcast %cst_46 : f32 to vector<96x1xf32>
    %129 = arith.divf %127, %128 : vector<96x1xf32>
    %130 = vector.broadcast %122 : vector<96x1xf32> to vector<96x32xf32>
    %131 = arith.subf %114, %130 : vector<96x32xf32>
    %cst_47 = arith.constant 9.99999974E-6 : f32
    %132 = vector.broadcast %cst_47 : f32 to vector<96x1xf32>
    %133 = arith.addf %129, %132 : vector<96x1xf32>
    %134 = math.rsqrt %133 : vector<96x1xf32>
    %135 = vector.broadcast %134 : vector<96x1xf32> to vector<96x32xf32>
    %136 = arith.mulf %131, %135 : vector<96x32xf32>
    %137 = vector.broadcast %116 : vector<1x32xf32> to vector<96x32xf32>
    %138 = arith.mulf %136, %137 : vector<96x32xf32>
    %139 = vector.broadcast %118 : vector<1x32xf32> to vector<96x32xf32>
    %140 = arith.addf %138, %139 : vector<96x32xf32>
    %141 = arith.truncf %140 : vector<96x32xf32> to vector<96x32xbf16>
    %c0_48 = arith.constant 0 : index
    %c0_49 = arith.constant 0 : index
    %c0_50 = arith.constant 0 : index
    %142 = vector.load %arg7[%c0_48, %c0_49, %c0_50] : memref<1x32x128xf32, #tpu.memory_space<vmem>>, vector<1x32x128xf32>
    %143 = vector.shape_cast %142 : vector<1x32x128xf32> to vector<32x128xf32>
    %144 = arith.truncf %143 : vector<32x128xf32> to vector<32x128xbf16>
    %cst_51 = arith.constant dense<0.000000e+00> : vector<96x128xf32>
    %145 = tpu.matmul %141, %144, %cst_51 {dimension_numbers = #tpu.dot_dimension_numbers<[1], [0], [0], [1], [0, 0, 1, 1], [], []>} : vector<96x32xbf16>, vector<32x128xbf16>, vector<96x128xf32> -> vector<96x128xf32>
    %c0_52 = arith.constant 0 : index
    %c0_53 = arith.constant 0 : index
    %c0_54 = arith.constant 0 : index
    %146 = vector.load %arg8[%c0_52, %c0_53, %c0_54] : memref<1x1x128xf32, #tpu.memory_space<vmem>>, vector<1x1x128xf32>
    %147 = vector.shape_cast %146 : vector<1x1x128xf32> to vector<1x128xf32>
    %148 = vector.broadcast %147 : vector<1x128xf32> to vector<96x128xf32>
    %149 = arith.addf %145, %148 : vector<96x128xf32>
    %cst_55 = arith.constant 0.000000e+00 : f32
    %150 = vector.broadcast %cst_55 : f32 to vector<96x128xf32>
    %151 = arith.maximumf %149, %150 : vector<96x128xf32>
    %152 = arith.truncf %151 : vector<96x128xf32> to vector<96x128xbf16>
    %c0_56 = arith.constant 0 : index
    %c0_57 = arith.constant 0 : index
    %c0_58 = arith.constant 0 : index
    %153 = vector.load %arg9[%c0_56, %c0_57, %c0_58] : memref<1x128x32xf32, #tpu.memory_space<vmem>>, vector<1x128x32xf32>
    %154 = vector.shape_cast %153 : vector<1x128x32xf32> to vector<128x32xf32>
    %155 = arith.truncf %154 : vector<128x32xf32> to vector<128x32xbf16>
    %cst_59 = arith.constant dense<0.000000e+00> : vector<96x32xf32>
    %156 = tpu.matmul %152, %155, %cst_59 {dimension_numbers = #tpu.dot_dimension_numbers<[1], [0], [0], [1], [0, 0, 1, 1], [], []>} : vector<96x128xbf16>, vector<128x32xbf16>, vector<96x32xf32> -> vector<96x32xf32>
    %c0_60 = arith.constant 0 : index
    %c0_61 = arith.constant 0 : index
    %c0_62 = arith.constant 0 : index
    %157 = vector.load %arg10[%c0_60, %c0_61, %c0_62] : memref<1x1x32xf32, #tpu.memory_space<vmem>>, vector<1x1x32xf32>
    %158 = vector.shape_cast %157 : vector<1x1x32xf32> to vector<1x32xf32>
    %159 = vector.broadcast %158 : vector<1x32xf32> to vector<96x32xf32>
    %160 = arith.addf %156, %159 : vector<96x32xf32>
    %161 = arith.addf %140, %160 : vector<96x32xf32>
    %c0_63 = arith.constant 0 : index
    %c0_64 = arith.constant 0 : index
    %c0_65 = arith.constant 0 : index
    %162 = vector.load %arg13[%c0_63, %c0_64, %c0_65] : memref<1x1x32xf32, #tpu.memory_space<vmem>>, vector<1x1x32xf32>
    %163 = vector.shape_cast %162 : vector<1x1x32xf32> to vector<1x32xf32>
    %c0_66 = arith.constant 0 : index
    %c0_67 = arith.constant 0 : index
    %c0_68 = arith.constant 0 : index
    %164 = vector.load %arg14[%c0_66, %c0_67, %c0_68] : memref<1x1x32xf32, #tpu.memory_space<vmem>>, vector<1x1x32xf32>
    %165 = vector.shape_cast %164 : vector<1x1x32xf32> to vector<1x32xf32>
    %cst_69 = arith.constant dense<0.000000e+00> : vector<96xf32>
    %166 = vector.multi_reduction <add>, %161, %cst_69 [1] : vector<96x32xf32> to vector<96xf32>
    %167 = vector.shape_cast %166 : vector<96xf32> to vector<96x1xf32>
    %cst_70 = arith.constant 3.200000e+01 : f32
    %168 = vector.broadcast %cst_70 : f32 to vector<96x1xf32>
    %169 = arith.divf %167, %168 : vector<96x1xf32>
    %170 = vector.broadcast %169 : vector<96x1xf32> to vector<96x32xf32>
    %171 = arith.subf %161, %170 : vector<96x32xf32>
    %172 = arith.mulf %171, %171 : vector<96x32xf32>
    %cst_71 = arith.constant dense<0.000000e+00> : vector<96xf32>
    %173 = vector.multi_reduction <add>, %172, %cst_71 [1] : vector<96x32xf32> to vector<96xf32>
    %174 = vector.shape_cast %173 : vector<96xf32> to vector<96x1xf32>
    %cst_72 = arith.constant 3.200000e+01 : f32
    %175 = vector.broadcast %cst_72 : f32 to vector<96x1xf32>
    %176 = arith.divf %174, %175 : vector<96x1xf32>
    %177 = vector.broadcast %169 : vector<96x1xf32> to vector<96x32xf32>
    %178 = arith.subf %161, %177 : vector<96x32xf32>
    %cst_73 = arith.constant 9.99999974E-6 : f32
    %179 = vector.broadcast %cst_73 : f32 to vector<96x1xf32>
    %180 = arith.addf %176, %179 : vector<96x1xf32>
    %181 = math.rsqrt %180 : vector<96x1xf32>
    %182 = vector.broadcast %181 : vector<96x1xf32> to vector<96x32xf32>
    %183 = arith.mulf %178, %182 : vector<96x32xf32>
    %184 = vector.broadcast %163 : vector<1x32xf32> to vector<96x32xf32>
    %185 = arith.mulf %183, %184 : vector<96x32xf32>
    %186 = vector.broadcast %165 : vector<1x32xf32> to vector<96x32xf32>
    %187 = arith.addf %185, %186 : vector<96x32xf32>
    %c0_74 = arith.constant 0 : index
    %c0_75 = arith.constant 0 : index
    %188 = vector.load %arg15[%c0_74, %c0_75] : memref<1x32xf32, #tpu.memory_space<vmem>>, vector<1x32xf32>
    %c0_76 = arith.constant 0 : index
    %c0_77 = arith.constant 0 : index
    %189 = vector.load %arg16[%c0_76, %c0_77] : memref<1x32xf32, #tpu.memory_space<vmem>>, vector<1x32xf32>
    %cst_78 = arith.constant dense<0.000000e+00> : vector<96xf32>
    %190 = vector.multi_reduction <add>, %187, %cst_78 [1] : vector<96x32xf32> to vector<96xf32>
    %191 = vector.shape_cast %190 : vector<96xf32> to vector<96x1xf32>
    %cst_79 = arith.constant 3.200000e+01 : f32
    %192 = vector.broadcast %cst_79 : f32 to vector<96x1xf32>
    %193 = arith.divf %191, %192 : vector<96x1xf32>
    %194 = vector.broadcast %193 : vector<96x1xf32> to vector<96x32xf32>
    %195 = arith.subf %187, %194 : vector<96x32xf32>
    %196 = arith.mulf %195, %195 : vector<96x32xf32>
    %cst_80 = arith.constant dense<0.000000e+00> : vector<96xf32>
    %197 = vector.multi_reduction <add>, %196, %cst_80 [1] : vector<96x32xf32> to vector<96xf32>
    %198 = vector.shape_cast %197 : vector<96xf32> to vector<96x1xf32>
    %cst_81 = arith.constant 3.200000e+01 : f32
    %199 = vector.broadcast %cst_81 : f32 to vector<96x1xf32>
    %200 = arith.divf %198, %199 : vector<96x1xf32>
    %201 = vector.broadcast %193 : vector<96x1xf32> to vector<96x32xf32>
    %202 = arith.subf %187, %201 : vector<96x32xf32>
    %cst_82 = arith.constant 9.99999974E-6 : f32
    %203 = vector.broadcast %cst_82 : f32 to vector<96x1xf32>
    %204 = arith.addf %200, %203 : vector<96x1xf32>
    %205 = math.rsqrt %204 : vector<96x1xf32>
    %206 = vector.broadcast %205 : vector<96x1xf32> to vector<96x32xf32>
    %207 = arith.mulf %202, %206 : vector<96x32xf32>
    %208 = vector.broadcast %188 : vector<1x32xf32> to vector<96x32xf32>
    %209 = arith.mulf %207, %208 : vector<96x32xf32>
    %210 = vector.broadcast %189 : vector<1x32xf32> to vector<96x32xf32>
    %211 = arith.addf %209, %210 : vector<96x32xf32>
    %c0_83 = arith.constant 0 : index
    %c0_84 = arith.constant 0 : index
    %212 = vector.load %arg17[%c0_83, %c0_84] : memref<96x32xf32, #tpu.memory_space<vmem>>, vector<96x32xf32>
    tpu.vector_store %arg17[%c0_83, %c0_84], %211 {strides = array<i32>} : memref<96x32xf32, #tpu.memory_space<vmem>>, vector<96x32xf32>,
    return
  }
  func.func @transform_0(%arg0: i32) -> (i32, i32) {
    %c0_i32 = arith.constant 0 : i32
    %c0_i32_0 = arith.constant 0 : i32
    %c0_i32_1 = arith.constant 0 : i32
    return %c0_i32, %c0_i32_0 : i32, i32
  }
  func.func @transform_1(%arg0: i32) -> (i32, i32) {
    %c0_i32 = arith.constant 0 : i32
    %c0_i32_0 = arith.constant 0 : i32
    %c0_i32_1 = arith.constant 0 : i32
    return %c0_i32, %c0_i32_0 : i32, i32
  }
  func.func @transform_2(%arg0: i32) -> (i32, i32, i32) {
    %c0_i32 = arith.constant 0 : i32
    %c0_i32_0 = arith.constant 0 : i32
    %c0_i32_1 = arith.constant 0 : i32
    %c0_i32_2 = arith.constant 0 : i32
    return %c0_i32, %c0_i32_0, %c0_i32_1 : i32, i32, i32
  }
  func.func @transform_3(%arg0: i32) -> (i32, i32, i32) {
    %c0_i32 = arith.constant 0 : i32
    %c0_i32_0 = arith.constant 0 : i32
    %c0_i32_1 = arith.constant 0 : i32
    %c0_i32_2 = arith.constant 0 : i32
    return %c0_i32, %c0_i32_0, %c0_i32_1 : i32, i32, i32
  }
  func.func @transform_4(%arg0: i32) -> (i32, i32, i32) {
    %c0_i32 = arith.constant 0 : i32
    %c0_i32_0 = arith.constant 0 : i32
    %c0_i32_1 = arith.constant 0 : i32
    %c0_i32_2 = arith.constant 0 : i32
    return %c0_i32, %c0_i32_0, %c0_i32_1 : i32, i32, i32
  }
  func.func @transform_5(%arg0: i32) -> (i32, i32, i32) {
    %c0_i32 = arith.constant 0 : i32
    %c0_i32_0 = arith.constant 0 : i32
    %c0_i32_1 = arith.constant 0 : i32
    %c0_i32_2 = arith.constant 0 : i32
    return %c0_i32, %c0_i32_0, %c0_i32_1 : i32, i32, i32
  }
  func.func @transform_6(%arg0: i32) -> (i32, i32, i32) {
    %c0_i32 = arith.constant 0 : i32
    %c0_i32_0 = arith.constant 0 : i32
    %c0_i32_1 = arith.constant 0 : i32
    %c0_i32_2 = arith.constant 0 : i32
    return %c0_i32, %c0_i32_0, %c0_i32_1 : i32, i32, i32
  }
  func.func @transform_7(%arg0: i32) -> (i32, i32, i32) {
    %c0_i32 = arith.constant 0 : i32
    %c0_i32_0 = arith.constant 0 : i32
    %c0_i32_1 = arith.constant 0 : i32
    %c0_i32_2 = arith.constant 0 : i32
    return %c0_i32, %c0_i32_0, %c0_i32_1 : i32, i32, i32
  }
  func.func @transform_8(%arg0: i32) -> (i32, i32, i32) {
    %c0_i32 = arith.constant 0 : i32
    %c0_i32_0 = arith.constant 0 : i32
    %c0_i32_1 = arith.constant 0 : i32
    %c0_i32_2 = arith.constant 0 : i32
    return %c0_i32, %c0_i32_0, %c0_i32_1 : i32, i32, i32
  }
  func.func @transform_9(%arg0: i32) -> (i32, i32, i32) {
    %c0_i32 = arith.constant 0 : i32
    %c0_i32_0 = arith.constant 0 : i32
    %c0_i32_1 = arith.constant 0 : i32
    %c0_i32_2 = arith.constant 0 : i32
    return %c0_i32, %c0_i32_0, %c0_i32_1 : i32, i32, i32
  }
  func.func @transform_10(%arg0: i32) -> (i32, i32, i32) {
    %c0_i32 = arith.constant 0 : i32
    %c0_i32_0 = arith.constant 0 : i32
    %c0_i32_1 = arith.constant 0 : i32
    %c0_i32_2 = arith.constant 0 : i32
    return %c0_i32, %c0_i32_0, %c0_i32_1 : i32, i32, i32
  }
  func.func @transform_11(%arg0: i32) -> (i32, i32, i32) {
    %c0_i32 = arith.constant 0 : i32
    %c0_i32_0 = arith.constant 0 : i32
    %c0_i32_1 = arith.constant 0 : i32
    %c0_i32_2 = arith.constant 0 : i32
    return %c0_i32, %c0_i32_0, %c0_i32_1 : i32, i32, i32
  }
  func.func @transform_12(%arg0: i32) -> (i32, i32, i32) {
    %c0_i32 = arith.constant 0 : i32
    %c0_i32_0 = arith.constant 0 : i32
    %c0_i32_1 = arith.constant 0 : i32
    %c0_i32_2 = arith.constant 0 : i32
    return %c0_i32, %c0_i32_0, %c0_i32_1 : i32, i32, i32
  }
  func.func @transform_13(%arg0: i32) -> (i32, i32, i32) {
    %c0_i32 = arith.constant 0 : i32
    %c0_i32_0 = arith.constant 0 : i32
    %c0_i32_1 = arith.constant 0 : i32
    %c0_i32_2 = arith.constant 0 : i32
    return %c0_i32, %c0_i32_0, %c0_i32_1 : i32, i32, i32
  }
  func.func @transform_14(%arg0: i32) -> (i32, i32) {
    %c0_i32 = arith.constant 0 : i32
    %c0_i32_0 = arith.constant 0 : i32
    %c0_i32_1 = arith.constant 0 : i32
    return %c0_i32, %c0_i32_0 : i32, i32
  }
  func.func @transform_15(%arg0: i32) -> (i32, i32) {
    %c0_i32 = arith.constant 0 : i32
    %c0_i32_0 = arith.constant 0 : i32
    %c0_i32_1 = arith.constant 0 : i32
    return %c0_i32, %c0_i32_0 : i32, i32
  }
  func.func @transform_16(%arg0: i32) -> (i32, i32) {
    %c0_i32 = arith.constant 0 : i32
    %c0_i32_0 = arith.constant 0 : i32
    %c0_i32_1 = arith.constant 0 : i32
    return %c0_i32, %c0_i32_0 : i32, i32
  }
}

module attributes {stable_mosaic.version = 11 : i64} {
  func.func @_contrastive_kernel(%arg0: i32, %arg1: memref<8x4x128xf32, #tpu.memory_space<vmem>>, %arg2: memref<1x1xf32, #tpu.memory_space<vmem>>) attributes {dimension_semantics = [#tpu.dimension_semantics<arbitrary>], iteration_bounds = array<i64: 1>, scalar_prefetch = 0 : i64, scratch_operands = 0 : i64, tpu.core_type = #tpu.core_type<tc>, window_params = [{pipeline_mode = #tpu.pipeline_mode<synchronous>, transform_indices = @transform_0, window_bounds = array<i64: 8, 4, 128>}, {pipeline_mode = #tpu.pipeline_mode<synchronous>, transform_indices = @transform_1, window_bounds = array<i64: 1, 1>}]} {
    %c0 = arith.constant 0 : index
    %c0_0 = arith.constant 0 : index
    %c0_1 = arith.constant 0 : index
    %0 = vector.load %arg1[%c0, %c0_0, %c0_1] : memref<8x4x128xf32, #tpu.memory_space<vmem>>, vector<8x4x128xf32>
    %1 = tpu.iota {dimensions = array<i32: 1>} : vector<4x4x4xi32>
    %2 = tpu.iota {dimensions = array<i32: 2>} : vector<4x4x4xi32>
    %3 = arith.cmpi ne, %1, %2 : vector<4x4x4xi32>
    %c2_i32 = arith.constant 2 : i32
    %4 = vector.broadcast %c2_i32 : i32 to vector<4x4x4xi32>
    %5 = arith.cmpi slt, %1, %4 : vector<4x4x4xi32>
    %c2_i32_2 = arith.constant 2 : i32
    %6 = vector.broadcast %c2_i32_2 : i32 to vector<4x4x4xi32>
    %7 = arith.addi %1, %6 : vector<4x4x4xi32>
    %c2_i32_3 = arith.constant 2 : i32
    %8 = vector.broadcast %c2_i32_3 : i32 to vector<4x4x4xi32>
    %9 = arith.subi %1, %8 : vector<4x4x4xi32>
    %10 = arith.select %5, %7, %9 : vector<4x4x4xi1>, vector<4x4x4xi32>
    %11 = arith.cmpi eq, %2, %10 : vector<4x4x4xi32>
    %12 = vector.extract_strided_slice %0 {offsets = [0, 0, 0], sizes = [4, 4, 128], strides = [1, 1, 1]} : vector<8x4x128xf32> to vector<4x4x128xf32>
    "tpu.trace_start"() <{level = 10 : i32, message = "tid,tjd->tij"}> : () -> ()
    %cst = arith.constant dense<0.000000e+00> : vector<4x4x4xf32>
    %13 = tpu.matmul %12, %12, %cst {dimension_numbers = #tpu.dot_dimension_numbers<[2], [2], [1], [1], [0, 0, 0, 1, 1, 1], [0], [0]>} : vector<4x4x128xf32>, vector<4x4x128xf32>, vector<4x4x4xf32> -> vector<4x4x4xf32>
    "tpu.trace_stop"() : () -> ()
    %cst_4 = arith.constant 2.000000e-01 : f32
    %14 = vector.broadcast %cst_4 : f32 to vector<4x4x4xf32>
    %15 = arith.divf %13, %14 : vector<4x4x4xf32>
    %cst_5 = arith.constant -1.000000e+30 : f32
    %16 = vector.broadcast %cst_5 : f32 to vector<4x4x4xf32>
    %17 = arith.select %3, %15, %16 : vector<4x4x4xi1>, vector<4x4x4xf32>
    %cst_6 = arith.constant dense<0xFF800000> : vector<4x4xf32>
    %18 = vector.multi_reduction <maximumf>, %17, %cst_6 [2] : vector<4x4x4xf32> to vector<4x4xf32>
    %19 = vector.shape_cast %18 : vector<4x4xf32> to vector<4x4x1xf32>
    %20 = vector.broadcast %19 : vector<4x4x1xf32> to vector<4x4x4xf32>
    %21 = arith.subf %17, %20 : vector<4x4x4xf32>
    %22 = math.exp %21 : vector<4x4x4xf32>
    %cst_7 = arith.constant dense<0.000000e+00> : vector<4x4xf32>
    %23 = vector.multi_reduction <add>, %22, %cst_7 [2] : vector<4x4x4xf32> to vector<4x4xf32>
    %24 = vector.shape_cast %23 : vector<4x4xf32> to vector<4x4x1xf32>
    %25 = math.log %24 : vector<4x4x1xf32>
    %26 = arith.addf %19, %25 : vector<4x4x1xf32>
    %cst_8 = arith.constant 0.000000e+00 : f32
    %27 = vector.broadcast %cst_8 : f32 to vector<4x4x4xf32>
    %28 = arith.select %11, %15, %27 : vector<4x4x4xi1>, vector<4x4x4xf32>
    %cst_9 = arith.constant dense<0.000000e+00> : vector<4x4xf32>
    %29 = vector.multi_reduction <add>, %28, %cst_9 [2] : vector<4x4x4xf32> to vector<4x4xf32>
    %30 = vector.shape_cast %29 : vector<4x4xf32> to vector<4x4x1xf32>
    %31 = arith.subf %26, %30 : vector<4x4x1xf32>
    %32 = vector.shape_cast %31 : vector<4x4x1xf32> to vector<1x4x4x1xf32>
    %cst_10 = arith.constant dense<0.000000e+00> : vector<1xf32>
    %33 = vector.multi_reduction <add>, %32, %cst_10 [1, 2, 3] : vector<1x4x4x1xf32> to vector<1xf32>
    %34 = vector.shape_cast %33 : vector<1xf32> to vector<1x1x1x1xf32>
    %35 = vector.extract %34[0, 0, 0, 0] : f32 from vector<1x1x1x1xf32>
    %cst_11 = arith.constant 1.600000e+01 : f32
    %36 = arith.divf %35, %cst_11 : f32
    %cst_12 = arith.constant 0.000000e+00 : f32
    %37 = arith.addf %cst_12, %36 : f32
    %38 = vector.extract_strided_slice %0 {offsets = [4, 0, 0], sizes = [4, 4, 128], strides = [1, 1, 1]} : vector<8x4x128xf32> to vector<4x4x128xf32>
    "tpu.trace_start"() <{level = 10 : i32, message = "tid,tjd->tij"}> : () -> ()
    %cst_13 = arith.constant dense<0.000000e+00> : vector<4x4x4xf32>
    %39 = tpu.matmul %38, %38, %cst_13 {dimension_numbers = #tpu.dot_dimension_numbers<[2], [2], [1], [1], [0, 0, 0, 1, 1, 1], [0], [0]>} : vector<4x4x128xf32>, vector<4x4x128xf32>, vector<4x4x4xf32> -> vector<4x4x4xf32>
    "tpu.trace_stop"() : () -> ()
    %cst_14 = arith.constant 2.000000e-01 : f32
    %40 = vector.broadcast %cst_14 : f32 to vector<4x4x4xf32>
    %41 = arith.divf %39, %40 : vector<4x4x4xf32>
    %cst_15 = arith.constant -1.000000e+30 : f32
    %42 = vector.broadcast %cst_15 : f32 to vector<4x4x4xf32>
    %43 = arith.select %3, %41, %42 : vector<4x4x4xi1>, vector<4x4x4xf32>
    %cst_16 = arith.constant dense<0xFF800000> : vector<4x4xf32>
    %44 = vector.multi_reduction <maximumf>, %43, %cst_16 [2] : vector<4x4x4xf32> to vector<4x4xf32>
    %45 = vector.shape_cast %44 : vector<4x4xf32> to vector<4x4x1xf32>
    %46 = vector.broadcast %45 : vector<4x4x1xf32> to vector<4x4x4xf32>
    %47 = arith.subf %43, %46 : vector<4x4x4xf32>
    %48 = math.exp %47 : vector<4x4x4xf32>
    %cst_17 = arith.constant dense<0.000000e+00> : vector<4x4xf32>
    %49 = vector.multi_reduction <add>, %48, %cst_17 [2] : vector<4x4x4xf32> to vector<4x4xf32>
    %50 = vector.shape_cast %49 : vector<4x4xf32> to vector<4x4x1xf32>
    %51 = math.log %50 : vector<4x4x1xf32>
    %52 = arith.addf %45, %51 : vector<4x4x1xf32>
    %cst_18 = arith.constant 0.000000e+00 : f32
    %53 = vector.broadcast %cst_18 : f32 to vector<4x4x4xf32>
    %54 = arith.select %11, %41, %53 : vector<4x4x4xi1>, vector<4x4x4xf32>
    %cst_19 = arith.constant dense<0.000000e+00> : vector<4x4xf32>
    %55 = vector.multi_reduction <add>, %54, %cst_19 [2] : vector<4x4x4xf32> to vector<4x4xf32>
    %56 = vector.shape_cast %55 : vector<4x4xf32> to vector<4x4x1xf32>
    %57 = arith.subf %52, %56 : vector<4x4x1xf32>
    %58 = vector.shape_cast %57 : vector<4x4x1xf32> to vector<1x4x4x1xf32>
    %cst_20 = arith.constant dense<0.000000e+00> : vector<1xf32>
    %59 = vector.multi_reduction <add>, %58, %cst_20 [1, 2, 3] : vector<1x4x4x1xf32> to vector<1xf32>
    %60 = vector.shape_cast %59 : vector<1xf32> to vector<1x1x1x1xf32>
    %61 = vector.extract %60[0, 0, 0, 0] : f32 from vector<1x1x1x1xf32>
    %cst_21 = arith.constant 1.600000e+01 : f32
    %62 = arith.divf %61, %cst_21 : f32
    %63 = arith.addf %37, %62 : f32
    %cst_22 = arith.constant 2.000000e+00 : f32
    %64 = arith.divf %63, %cst_22 : f32
    %cst_23 = arith.constant 1.000000e+00 : f32
    %65 = vector.broadcast %cst_23 : f32 to vector<1x1xf32>
    %66 = vector.broadcast %64 : f32 to vector<1x1xf32>
    %67 = arith.mulf %66, %65 : vector<1x1xf32>
    %c0_24 = arith.constant 0 : index
    %c0_25 = arith.constant 0 : index
    %68 = vector.load %arg2[%c0_24, %c0_25] : memref<1x1xf32, #tpu.memory_space<vmem>>, vector<1x1xf32>
    tpu.vector_store %arg2[%c0_24, %c0_25], %67 {strides = array<i32>} : memref<1x1xf32, #tpu.memory_space<vmem>>, vector<1x1xf32>,
    return
  }
  func.func @transform_0(%arg0: i32) -> (i32, i32, i32) {
    %c0_i32 = arith.constant 0 : i32
    %c0_i32_0 = arith.constant 0 : i32
    %c0_i32_1 = arith.constant 0 : i32
    %c0_i32_2 = arith.constant 0 : i32
    return %c0_i32, %c0_i32_0, %c0_i32_1 : i32, i32, i32
  }
  func.func @transform_1(%arg0: i32) -> (i32, i32) {
    %c0_i32 = arith.constant 0 : i32
    %c0_i32_0 = arith.constant 0 : i32
    %c0_i32_1 = arith.constant 0 : i32
    return %c0_i32, %c0_i32_0 : i32, i32
  }
}

module attributes {stable_mosaic.version = 11 : i64} {
  func.func @_simrecon_kernel(%arg0: i32, %arg1: memref<24x128xf32, #tpu.memory_space<vmem>>, %arg2: memref<24x128xf32, #tpu.memory_space<vmem>>, %arg3: memref<8x128xf32, #tpu.memory_space<vmem>>) attributes {dimension_semantics = [#tpu.dimension_semantics<arbitrary>], iteration_bounds = array<i64: 1>, scalar_prefetch = 0 : i64, scratch_operands = 0 : i64, tpu.core_type = #tpu.core_type<tc>, window_params = [{pipeline_mode = #tpu.pipeline_mode<synchronous>, transform_indices = @transform_0, window_bounds = array<i64: 24, 128>}, {pipeline_mode = #tpu.pipeline_mode<synchronous>, transform_indices = @transform_1, window_bounds = array<i64: 24, 128>}, {pipeline_mode = #tpu.pipeline_mode<synchronous>, transform_indices = @transform_2, window_bounds = array<i64: 8, 128>}]} {
    %c0 = arith.constant 0 : index
    %c0_0 = arith.constant 0 : index
    %0 = vector.load %arg1[%c0, %c0_0] : memref<24x128xf32, #tpu.memory_space<vmem>>, vector<24x128xf32>
    %1 = vector.extract_strided_slice %0 {offsets = [0, 0], sizes = [8, 128], strides = [1, 1]} : vector<24x128xf32> to vector<8x128xf32>
    %cst = arith.constant dense<0.000000e+00> : vector<8x24xf32>
    %2 = tpu.matmul %1, %0, %cst {dimension_numbers = #tpu.dot_dimension_numbers<[1], [1], [0], [0], [0, 0, 1, 0], [], []>} : vector<8x128xf32>, vector<24x128xf32>, vector<8x24xf32> -> vector<8x24xf32>
    %cst_1 = arith.constant 2.000000e-01 : f32
    %3 = vector.broadcast %cst_1 : f32 to vector<8x24xf32>
    %4 = arith.divf %2, %3 : vector<8x24xf32>
    %5 = math.exp %4 : vector<8x24xf32>
    %6 = tpu.iota {dimensions = array<i32: 0>} : vector<8x24xi32>
    %7 = tpu.iota {dimensions = array<i32: 1>} : vector<8x24xi32>
    %8 = arith.cmpi eq, %6, %7 : vector<8x24xi32>
    %cst_2 = arith.constant 0.000000e+00 : f32
    %9 = vector.broadcast %cst_2 : f32 to vector<8x24xf32>
    %10 = arith.select %8, %9, %5 : vector<8x24xi1>, vector<8x24xf32>
    %cst_3 = arith.constant dense<0.000000e+00> : vector<8xf32>
    %11 = vector.multi_reduction <add>, %10, %cst_3 [1] : vector<8x24xf32> to vector<8xf32>
    %12 = vector.shape_cast %11 : vector<8xf32> to vector<8x1xf32>
    %13 = tpu.reciprocal %12 {approx = true} : vector<8x1xf32> -> vector<8x1xf32>
    %14 = vector.broadcast %13 : vector<8x1xf32> to vector<8x24xf32>
    %15 = arith.mulf %10, %14 : vector<8x24xf32>
    %c0_4 = arith.constant 0 : index
    %c0_5 = arith.constant 0 : index
    %16 = vector.load %arg2[%c0_4, %c0_5] : memref<24x128xf32, #tpu.memory_space<vmem>>, vector<24x128xf32>
    %cst_6 = arith.constant dense<0.000000e+00> : vector<8x128xf32>
    %17 = tpu.matmul %15, %16, %cst_6 {dimension_numbers = #tpu.dot_dimension_numbers<[1], [0], [0], [1], [0, 0, 1, 1], [], []>} : vector<8x24xf32>, vector<24x128xf32>, vector<8x128xf32> -> vector<8x128xf32>
    %c0_7 = arith.constant 0 : index
    %c0_8 = arith.constant 0 : index
    %18 = vector.load %arg3[%c0_7, %c0_8] : memref<8x128xf32, #tpu.memory_space<vmem>>, vector<8x128xf32>
    tpu.vector_store %arg3[%c0_7, %c0_8], %17 {strides = array<i32>} : memref<8x128xf32, #tpu.memory_space<vmem>>, vector<8x128xf32>,
    return
  }
  func.func @transform_0(%arg0: i32) -> (i32, i32) {
    %c0_i32 = arith.constant 0 : i32
    %c0_i32_0 = arith.constant 0 : i32
    %c0_i32_1 = arith.constant 0 : i32
    return %c0_i32, %c0_i32_0 : i32, i32
  }
  func.func @transform_1(%arg0: i32) -> (i32, i32) {
    %c0_i32 = arith.constant 0 : i32
    %c0_i32_0 = arith.constant 0 : i32
    %c0_i32_1 = arith.constant 0 : i32
    return %c0_i32, %c0_i32_0 : i32, i32
  }
  func.func @transform_2(%arg0: i32) -> (i32, i32) {
    %c0_i32 = arith.constant 0 : i32
    %c0_i32_0 = arith.constant 0 : i32
    %c0_i32_1 = arith.constant 0 : i32
    return %c0_i32, %c0_i32_0 : i32, i32
  }
}

module attributes {stable_mosaic.version = 11 : i64} {
  func.func @_decoder_kernel(%arg0: i32, %arg1: memref<32x96xf32, #tpu.memory_space<vmem>>, %arg2: memref<96x32xf32, #tpu.memory_space<vmem>>, %arg3: memref<1x32xf32, #tpu.memory_space<vmem>>, %arg4: memref<32x4xf32, #tpu.memory_space<vmem>>, %arg5: memref<1x4xf32, #tpu.memory_space<vmem>>, %arg6: memref<32x4xf32, #tpu.memory_space<vmem>>) attributes {dimension_semantics = [#tpu.dimension_semantics<arbitrary>], iteration_bounds = array<i64: 1>, scalar_prefetch = 0 : i64, scratch_operands = 0 : i64, tpu.core_type = #tpu.core_type<tc>, window_params = [{pipeline_mode = #tpu.pipeline_mode<synchronous>, transform_indices = @transform_0, window_bounds = array<i64: 32, 96>}, {pipeline_mode = #tpu.pipeline_mode<synchronous>, transform_indices = @transform_1, window_bounds = array<i64: 96, 32>}, {pipeline_mode = #tpu.pipeline_mode<synchronous>, transform_indices = @transform_2, window_bounds = array<i64: 1, 32>}, {pipeline_mode = #tpu.pipeline_mode<synchronous>, transform_indices = @transform_3, window_bounds = array<i64: 32, 4>}, {pipeline_mode = #tpu.pipeline_mode<synchronous>, transform_indices = @transform_4, window_bounds = array<i64: 1, 4>}, {pipeline_mode = #tpu.pipeline_mode<synchronous>, transform_indices = @transform_5, window_bounds = array<i64: 32, 4>}]} {
    %c0 = arith.constant 0 : index
    %c0_0 = arith.constant 0 : index
    %0 = vector.load %arg1[%c0, %c0_0] : memref<32x96xf32, #tpu.memory_space<vmem>>, vector<32x96xf32>
    %c0_1 = arith.constant 0 : index
    %c0_2 = arith.constant 0 : index
    %1 = vector.load %arg2[%c0_1, %c0_2] : memref<96x32xf32, #tpu.memory_space<vmem>>, vector<96x32xf32>
    %cst = arith.constant dense<0.000000e+00> : vector<32x32xf32>
    %2 = tpu.matmul %0, %1, %cst {dimension_numbers = #tpu.dot_dimension_numbers<[1], [0], [0], [1], [0, 0, 1, 1], [], []>} : vector<32x96xf32>, vector<96x32xf32>, vector<32x32xf32> -> vector<32x32xf32>
    %c0_3 = arith.constant 0 : index
    %c0_4 = arith.constant 0 : index
    %3 = vector.load %arg3[%c0_3, %c0_4] : memref<1x32xf32, #tpu.memory_space<vmem>>, vector<1x32xf32>
    %4 = vector.broadcast %3 : vector<1x32xf32> to vector<32x32xf32>
    %5 = arith.addf %2, %4 : vector<32x32xf32>
    %c0_5 = arith.constant 0 : index
    %c0_6 = arith.constant 0 : index
    %6 = vector.load %arg4[%c0_5, %c0_6] : memref<32x4xf32, #tpu.memory_space<vmem>>, vector<32x4xf32>
    %cst_7 = arith.constant dense<0.000000e+00> : vector<32x4xf32>
    %7 = tpu.matmul %5, %6, %cst_7 {dimension_numbers = #tpu.dot_dimension_numbers<[1], [0], [0], [1], [0, 0, 1, 1], [], []>} : vector<32x32xf32>, vector<32x4xf32>, vector<32x4xf32> -> vector<32x4xf32>
    %c0_8 = arith.constant 0 : index
    %c0_9 = arith.constant 0 : index
    %8 = vector.load %arg5[%c0_8, %c0_9] : memref<1x4xf32, #tpu.memory_space<vmem>>, vector<1x4xf32>
    %9 = vector.broadcast %8 : vector<1x4xf32> to vector<32x4xf32>
    %10 = arith.addf %7, %9 : vector<32x4xf32>
    %c0_10 = arith.constant 0 : index
    %c0_11 = arith.constant 0 : index
    %11 = vector.load %arg6[%c0_10, %c0_11] : memref<32x4xf32, #tpu.memory_space<vmem>>, vector<32x4xf32>
    tpu.vector_store %arg6[%c0_10, %c0_11], %10 {strides = array<i32>} : memref<32x4xf32, #tpu.memory_space<vmem>>, vector<32x4xf32>,
    return
  }
  func.func @transform_0(%arg0: i32) -> (i32, i32) {
    %c0_i32 = arith.constant 0 : i32
    %c0_i32_0 = arith.constant 0 : i32
    %c0_i32_1 = arith.constant 0 : i32
    return %c0_i32, %c0_i32_0 : i32, i32
  }
  func.func @transform_1(%arg0: i32) -> (i32, i32) {
    %c0_i32 = arith.constant 0 : i32
    %c0_i32_0 = arith.constant 0 : i32
    %c0_i32_1 = arith.constant 0 : i32
    return %c0_i32, %c0_i32_0 : i32, i32
  }
  func.func @transform_2(%arg0: i32) -> (i32, i32) {
    %c0_i32 = arith.constant 0 : i32
    %c0_i32_0 = arith.constant 0 : i32
    %c0_i32_1 = arith.constant 0 : i32
    return %c0_i32, %c0_i32_0 : i32, i32
  }
  func.func @transform_3(%arg0: i32) -> (i32, i32) {
    %c0_i32 = arith.constant 0 : i32
    %c0_i32_0 = arith.constant 0 : i32
    %c0_i32_1 = arith.constant 0 : i32
    return %c0_i32, %c0_i32_0 : i32, i32
  }
  func.func @transform_4(%arg0: i32) -> (i32, i32) {
    %c0_i32 = arith.constant 0 : i32
    %c0_i32_0 = arith.constant 0 : i32
    %c0_i32_1 = arith.constant 0 : i32
    return %c0_i32, %c0_i32_0 : i32, i32
  }
  func.func @transform_5(%arg0: i32) -> (i32, i32) {
    %c0_i32 = arith.constant 0 : i32
    %c0_i32_0 = arith.constant 0 : i32
    %c0_i32_1 = arith.constant 0 : i32
    return %c0_i32, %c0_i32_0 : i32, i32
  }
}

</mosaic_0001>

<bundles_post_ra>
// kernel: sub.8
= control target key start
LH: loop header
LB: loop body
LE: loop exit
PB: predicated region body
PF: predicated region fallthrough
CT: control target
= control target key end

     0   :  { %s100_s0 = inlined_call_operand.vmem [shape: f32[2,16,4], index: 0, kind: input, shape index: {}]   ;;  %s101_s1 = inlined_call_operand.vmem [shape: f32[2,16,4], index: 1, kind: input, shape index: {}]   ;;  %s102_s2 = inlined_call_operand.vmem [shape: f32[2,16,4], index: 2, kind: output, shape index: {}]  }
   0x1   :  { %v3_v0 = vld [vmem:[%s100_s0] sm:$0xff]  ;;  %v40_v2 = vld [vmem:[%s100_s0 + $0x10] sm:$0xff]  ;;  %v43_v5 = vld [vmem:[%s100_s0 + $0x8] sm:$0xff] }
   0x2   :  { %v4_v1 = vld [vmem:[%s101_s1] sm:$0xff]  ;;  %v41_v4 = vld [vmem:[%s101_s1 + $0x10] sm:$0xff]  ;;  %v44_v6 = vld [vmem:[%s101_s1 + $0x8] sm:$0xff] }
   0x3   :  { %v7_v3 = vsub.f32 %v3_v0, %v4_v1  ;;  %v16_v7 = vsub.f32 %v40_v2, %v41_v4  ;;  %v26_v8 = vsub.f32 %v43_v5, %v44_v6  ;;  %v46_v9 = vld [vmem:[%s100_s0 + $0x18] sm:$0xff] }
   0x4   :  { %v47_v10 = vld [vmem:[%s101_s1 + $0x18] sm:$0xff] }
   0x5   :  { %9 = vst [vmem:[%s102_s2] sm:$0xff] %v7_v3  ;;  %v36_v11 = vsub.f32 %v46_v9, %v47_v10  ;;  %42 = vst [vmem:[%s102_s2 + $0x10] sm:$0xff] %v16_v7 }
   0x6   :  { %45 = vst [vmem:[%s102_s2 + $0x8] sm:$0xff] %v26_v8 }
   0x7   :  { %48 = vst [vmem:[%s102_s2 + $0x18] sm:$0xff] %v36_v11 }

// kernel: simmtm_forward.5
= control target key start
LH: loop header
LB: loop body
LE: loop exit
PB: predicated region body
PF: predicated region fallthrough
CT: control target
= control target key end

     0   :  { %vm14_vm0 = vcmask 1046528   ;;  %vm24_vm1 = vcmask 1045504   ;;  %vm34_vm2 = vcmask 1044480   ;;  %vm44_vm3 = vcmask 1043456   ;;  %s176_s0 = inlined_call_operand.vmem [shape: f32[2,20,4], index: 0, kind: input, shape index: {}]   ;;  %s177_s1 = inlined_call_operand.vmem [shape: f32[2,16,4], index: 1, kind: output, shape index: {}]  }
   0x1   :  { %v8_v0 = vld [vmem:[%s176_s0] sm:$0xff]  ;;  %v9_v1 = vld [vmem:[%s176_s0 + $0x8] sm:$0xff]  ;;  %v10_v2 = vld [vmem:[%s176_s0 + $0x10] sm:$0xf]  ;;  %vm56_vm4 = vcmask 31744  }
   0x2   :  { %v15_v3 = vrot.slane %v8_v0, 1  ;;  %v16_v4 = vrot.slane %v9_v1, 1  ;;  %v25_v5 = vrot.slane %v8_v0, 2  ;;  %v26_v6 = vrot.slane %v9_v1, 2  ;;  %v111_v11 = vld [vmem:[%s176_s0 + $0x18] sm:$0xff]  ;;  %v112_v16 = vld [vmem:[%s176_s0 + $0x20] sm:$0xff] }
   0x3   :  { %v35_v7 = vrot.slane %v8_v0, 3  ;;  %v36_v8 = vrot.slane %v9_v1, 3  ;;  %v45_v9 = vrot.slane %v8_v0, 4  ;;  %v46_v10 = vrot.slane %v9_v1, 4  ;;  %v113_v33 = vld [vmem:[%s176_s0 + $0x28] sm:$0xf] }
   0x4   :  { %v17_v12 = vsel %vm14_vm0, %v15_v3, %v16_v4  ;;  %v27_v13 = vsel %vm24_vm1, %v25_v5, %v26_v6  ;;  %v18_v14 = vrot.slane %v10_v2, 1  ;;  %v28_v15 = vrot.slane %v10_v2, 2 }
   0x5   :  { %v22_v17 = vadd.f32 %v17_v12, %v8_v0  ;;  %v37_v18 = vsel %vm34_vm2, %v35_v7, %v36_v8  ;;  %v47_v19 = vsel %vm44_vm3, %v45_v9, %v46_v10  ;;  %v38_v20 = vrot.slane %v10_v2, 3 }
   0x6   :  { %v19_v21 = vsel %vm14_vm0, %v16_v4, %v18_v14  ;;  %v29_v22 = vsel %vm24_vm1, %v26_v6, %v28_v15  ;;  %v48_v23 = vrot.slane %v10_v2, 4  ;;  %v66_v24 = vrot.slane %v111_v11, 1 }
   0x7   :  { %v32_v25 = vadd.f32 %v27_v13, %v22_v17  ;;  %v23_v26 = vadd.f32 %v19_v21, %v9_v1  ;;  %v39_v27 = vsel %vm34_vm2, %v36_v8, %v38_v20  ;;  %v67_v28 = vrot.slane %v112_v16, 1 }
   0x8   :  { %v49_v29 = vsel %vm44_vm3, %v46_v10, %v48_v23  ;;  %v75_v30 = vrot.slane %v111_v11, 2  ;;  %v76_v31 = vrot.slane %v112_v16, 2  ;;  %v84_v32 = vrot.slane %v111_v11, 3 }
   0x9   :  { %v42_v34 = vadd.f32 %v37_v18, %v32_v25  ;;  %v33_v35 = vadd.f32 %v29_v22, %v23_v26  ;;  %v68_v36 = vsel %vm14_vm0, %v66_v24, %v67_v28  ;;  %v85_v37 = vrot.slane %v112_v16, 3 }
   0xa   :  { %v73_v38 = vadd.f32 %v111_v11, %v68_v36  ;;  %v77_v39 = vsel %vm24_vm1, %v75_v30, %v76_v31  ;;  %v93_v40 = vrot.slane %v111_v11, 4  ;;  %v94_v41 = vrot.slane %v112_v16, 4 }
   0xb   :  { %v52_v42 = vadd.f32 %v47_v19, %v42_v34  ;;  %v43_v43 = vadd.f32 %v39_v27, %v33_v35  ;;  %v86_v44 = vsel %vm34_vm2, %v84_v32, %v85_v37  ;;  %v69_v45 = vrot.slane %v113_v33, 1 }
   0xc   :  { %v82_v46 = vadd.f32 %v77_v39, %v73_v38  ;;  %v95_v47 = vsel %vm44_vm3, %v93_v40, %v94_v41  ;;  %v78_v48 = vrot.slane %v113_v33, 2  ;;  %v87_v49 = vrot.slane %v113_v33, 3 }
   0xd   :  { %v54_v50 = vmul.f32 0.2, %v52_v42  ;;  %v53_v51 = vadd.f32 %v49_v29, %v43_v43  ;;  %v70_v52 = vsel %vm14_vm0, %v67_v28, %v69_v45  ;;  %v96_v53 = vrot.slane %v113_v33, 4 }
   0xe   :  { %v91_v54 = vadd.f32 %v86_v44, %v82_v46  ;;  %v74_v55 = vadd.f32 %v112_v16, %v70_v52  ;;  %v79_v56 = vsel %vm24_vm1, %v76_v31, %v78_v48  ;;  %v88_v58 = vsel %vm34_vm2, %v85_v37, %v87_v49 }
   0xf   :  { %57 = vst.msk [vmem:[%s177_s1] sm:$0xff] %vm56_vm4, %v54_v50  ;;  %v55_v57 = vmul.f32 0.2, %v53_v51  ;;  %v97_v61 = vsel %vm44_vm3, %v94_v41, %v96_v53 }
  0x10   :  { %v100_v59 = vadd.f32 %v95_v47, %v91_v54  ;;  %v83_v60 = vadd.f32 %v79_v56, %v74_v55 }
  0x11   :  { %58 = vst.msk [vmem:[%s177_s1 + $0x8] sm:$0xff] %vm56_vm4, %v55_v57 }
  0x12   :  { %v102_v62 = vmul.f32 0.2, %v100_v59  ;;  %v92_v63 = vadd.f32 %v88_v58, %v83_v60 }
  0x14   :  { %114 = vst.msk [vmem:[%s177_s1 + $0x10] sm:$0xff] %vm56_vm4, %v102_v62  ;;  %v101_v0 = vadd.f32 %v97_v61, %v92_v63 }
  0x16   :  { %v103_v1 = vmul.f32 0.2, %v101_v0 }
  0x18   :  { %115 = vst.msk [vmem:[%s177_s1 + $0x18] sm:$0xff] %vm56_vm4, %v103_v1 }

// kernel: simmtm_forward.7
= control target key start
LH: loop header
LB: loop body
LE: loop exit
PB: predicated region body
PF: predicated region fallthrough
CT: control target
= control target key end

     0   :  { %v214_v0 = vmov 0.0   ;;  %vm215_vm0 = vmmov 0   ;;  %v88_v8 = vlaneseq  ;;  %vm94_vm2 = vcmask 195584   ;;  %s254_s0 = inlined_call_operand.vmem [shape: f32[24,128], index: 0, kind: input, shape index: {}]   ;;  %s255_s1 = inlined_call_operand.vmem [shape: f32[24,128], index: 1, kind: input, shape index: {}]   ;;  %s256_s2 = inlined_call_operand.vmem [shape: f32[8,128], index: 2, kind: output, shape index: {}]  }
   0x1   :  { %190 = vmatprep.subr.mxu0 %v214_v0  ;;  %v13_v1 = vld [vmem:[%s254_s0 + $0x10] sm:$0xff]  ;;  %196 = vmatprep.mubr.msk.f32.mxu0 %vm215_vm0, %v214_v0  ;;  %v12_v2 = vld [vmem:[%s254_s0 + $0x8] sm:$0xff]  ;;  %v11_v3 = vld [vmem:[%s254_s0] sm:$0xff] }
   0x2   :  { %191 = vmatpush3.xpose.msra.mxu0 %v13_v1  ;;  %199 = vmatprep.subr.mxu1 %v214_v0  ;;  %v89_v9 = vshrl.u32 %v88_v8, 7  ;;  %v91_v10 = vand.u32 127, %v88_v8  ;;  %v102_v14 = vld [vmem:[%s255_s1 + $0x10] sm:$0xff]  ;;  %v101_v15 = vld [vmem:[%s255_s1 + $0x8] sm:$0xff]  ;;  %v100_v16 = vld [vmem:[%s255_s1] sm:$0xff] }
   0x3   :  { %192 = vmatprep.subr.mxu0 %v214_v0  ;;  %205 = vmatprep.mubr.msk.f32.mxu1 %vm215_vm0, %v214_v0 }
   0x4   :  { %vm92_vm1 = vcmp.eq.s32.totalorder %v89_v9, %v91_v10  ;;  %200 = vmatpush3.msra.mxu1 %v102_v14 }
   0x5   :  { %201 = vmatprep.subr.mxu1 %v214_v0 }
   0x6   :  { %193 = vmatpush3.xpose.msra.mxu0 %v12_v2  ;;  %202 = vmatpush3.msra.mxu1 %v101_v15 }
   0x7   :  { %194 = vmatprep.subr.mxu0 %v214_v0  ;;  %203 = vmatprep.subr.mxu1 %v214_v0 }
   0x8   :  { %204 = vmatpush3.msra.mxu1 %v100_v16 }
   0xa   :  { %195 = vmatpush3.xpose.msra.mxu0 %v11_v3 }
   0xd   :  { %197 = vmatmul.mubr.f32.vlgmr.msra.gmra.mxu0 %v11_v3 }
  0xcd   :  { %v80_v4 = vpop.f32.mrf.mxu0 }
  0xce   :  { %v85_v5 = vmul.f32 5.0, %v80_v4 }
  0xcf   :  { %v198_v6 = vpop.f32.mrf.mxu0 }
  0xd0   :  { %v86_v7 = vmul.f32 1.442695, %v85_v5 }
  0xd2   :  { %210 = vpow2.f32 %v86_v7 }
  0xdf   :  { %v211_v11 = vpop.eup %210 }
  0xe0   :  { %v93_v12 = vsel %vm92_vm1, 0.0, %v211_v11 }
  0xe1   :  { %v95_v13 = vsel %vm94_vm2, %v93_v12, 0.0 }
  0xe2   :  { %96 = vadd.xlane.f32.xlu0 %v95_v13 }
 0x16b   :  { %v97_v17 = vpop.xlane.xlu0 %96 }
 0x16c   :  { %212 = vrcp.f32 %v97_v17 }
 0x179   :  { %v213_v18 = vpop.eup %212 }
 0x17a   :  { %v99_v19 = vmul.f32 %v213_v18, %v93_v12 }
 0x17c   :  { %206 = vmatmul.mubr.msk.f32.vlgmr.msra.gmra.mxu1 %vm94_vm2, %v99_v19 }
 0x23c   :  { %v172_v20 = vpop.f32.mrf.mxu1 }
 0x23d   :  { %176 = vst [vmem:[%s256_s2] sm:$0xff] %v172_v20 }
 0x23e   :  { %v207_v21 = vpop.f32.mrf.mxu1 }

// kernel: simmtm_forward.9
= control target key start
LH: loop header
LB: loop body
LE: loop exit
PB: predicated region body
PF: predicated region fallthrough
CT: control target
= control target key end

     0   :  { %v920_v2 = vmov 0.0   ;;  %vm921_vm0 = vmmov 0   ;;  %s1136_s0 = inlined_call_operand.vmem [shape: f32[8,4,128], index: 0, kind: input, shape index: {}]   ;;  %s1137_s1 = inlined_call_operand.hbm [shape: f32[1,1], index: 1, kind: output, shape index: {}]  }
   0x1   :  { %v9_v0 = vld [vmem:[%s1136_s0] sm:$0xf]  ;;  %v10_v1 = vld [vmem:[%s1136_s0 + $0x4] sm:$0xf]  ;;  %819 = vmatprep.subr.mxu0 %v920_v2  ;;  %821 = vmatprep.mubr.msk.f32.mxu0 %vm921_vm0, %v920_v2  ;;  %v11_v3 = vld [vmem:[%s1136_s0 + $0x8] sm:$0xf] }
   0x2   :  { %820 = vmatpush3.xpose.msra.mxu0 %v9_v0  ;;  %824 = vmatprep.subr.mxu1 %v920_v2 }
   0x3   :  { %825 = vmatpush3.xpose.msra.mxu1 %v10_v1  ;;  %829 = vmatprep.subr.mxu0 %v920_v2 }
   0x4   :  { %6 = vsyncpa [#allocation3], 0  ;;  %826 = vmatprep.mubr.msk.f32.mxu1 %vm921_vm0, %v920_v2  ;;  %834 = vmatprep.subr.mxu1 %v920_v2  ;;  %v12_v4 = vld [vmem:[%s1136_s0 + $0xc] sm:$0xf]  ;;  %v13_v5 = vld [vmem:[%s1136_s0 + $0x10] sm:$0xf]  ;;  %v17_v9 = vlaneseq }
   0x5   :  { %822 = vmatmul.mubr.f32.vlgmr.msra.gmra.mxu0 %v9_v0  ;;  %v14_v6 = vld [vmem:[%s1136_s0 + $0x14] sm:$0xf]  ;;  %v15_v7 = vld [vmem:[%s1136_s0 + $0x18] sm:$0xf]  ;;  %v16_v8 = vld [vmem:[%s1136_s0 + $0x1c] sm:$0xf] }
   0x6   :  { %830 = vmatpush3.xpose.msra.mxu0 %v11_v3  ;;  %827 = vmatmul.mubr.f32.vlgmr.msra.gmra.mxu1 %v10_v1  ;;  %v18_v10 = vshrl.u32 %v17_v9, 7  ;;  %v20_v11 = vand.u32 127, %v17_v9  ;;  %vm316_vm4 = vcmask 27648   ;;  %vm385_vm5 = vcmask 3072   ;;  %s922_s26 = smov [#allocation2]  }
   0x7   :  { %831 = vmatprep.mubr.msk.f32.mxu0 %vm921_vm0, %v920_v2  ;;  %835 = vmatpush3.xpose.msra.mxu1 %v12_v4  ;;  %s794_s27 = sshll.u32 %s922_s26, 4  ;;  %vm786_vm6 = vcmask 0   ;;  %s795_s27 = int_to_ptr.vmem [resolvable:$true] %s794_s27 }
   0x8   :  { %839 = vmatprep.subr.mxu0 %v920_v2  ;;  %836 = vmatprep.mubr.msk.f32.mxu1 %vm921_vm0, %v920_v2  ;;  %v23_v12 = vadd.s32 2, %v18_v10  ;;  %v802_v13 = vadd.s32 4294967294, %v18_v10  ;;  %vm22_vm1 = vcmp.lt.s32.totalorder %v18_v10, 2  ;;  %vm969_vm3 = vcmp.ne.s32.totalorder %v18_v10, %v20_v11  ;;  %s898_s29 = scalar_lea.vmem %s795_s27, 16  ;;  %s902_s30 = scalar_lea.vmem %s795_s27, 32 }
   0x9   :  { %832 = vmatmul.mubr.f32.vlgmr.msra.gmra.mxu0 %v11_v3  ;;  %844 = vmatprep.subr.mxu1 %v920_v2  ;;  %p899_p0 = scmp.ne.s32.totalorder %s795_s27, %s898_s29  ;;  %p903_p1 = scmp.lt.s32.totalorder %s795_s27, %s795_s27 }
   0xa   :  { %840 = vmatpush3.xpose.msra.mxu0 %v13_v5  ;;  %837 = vmatmul.mubr.f32.vlgmr.msra.gmra.mxu1 %v12_v4  ;;  %v25_v14 = vsel %vm22_vm1, %v23_v12, %v802_v13  ;;  %p904_p2 = scmp.lt.s32.totalorder %s902_s30, %s898_s29 }
   0xb   :  { %841 = vmatprep.mubr.msk.f32.mxu0 %vm921_vm0, %v920_v2  ;;  %845 = vmatpush3.xpose.msra.mxu1 %v14_v6  ;;  %vm965_vm2 = vcmp.eq.s32.totalorder %v20_v11, %v25_v14 }
   0xc   :  { %846 = vmatprep.mubr.msk.f32.mxu1 %vm921_vm0, %v920_v2  ;;  %849 = vmatprep.subr.mxu0 %v920_v2  ;;  %p905_p3 = por %p904_p2, %p903_p1 }
   0xd   :  { %842 = vmatmul.mubr.f32.vlgmr.msra.gmra.mxu0 %v13_v5  ;;  %854 = vmatprep.subr.mxu1 %v920_v2 }
   0xe   :  { %847 = vmatmul.mubr.f32.vlgmr.msra.gmra.mxu1 %v14_v6  ;;  %850 = vmatpush3.xpose.msra.mxu0 %v15_v7  ;;  %p906_p4 = pnand %p905_p3, %p899_p0 }
   0xf   :  { %851 = vmatprep.mubr.msk.f32.mxu0 %vm921_vm0, %v920_v2  ;;  %855 = vmatpush3.xpose.msra.mxu1 %v16_v8 }
  0x10   :  { %856 = vmatprep.mubr.msk.f32.mxu1 %vm921_vm0, %v920_v2 }
  0x11   :  { %852 = vmatmul.mubr.f32.vlgmr.msra.gmra.mxu0 %v15_v7 }
  0x12   :  { %857 = vmatmul.mubr.f32.vlgmr.msra.gmra.mxu1 %v16_v8 }
  0xc5   :  { %v93_v16 = vpop.f32.mrf.mxu0 }
  0xc6   :  { %v973_v18 = vmul.f32 5.0, %v93_v16  ;;  %v163_v19 = vpop.f32.mrf.mxu1 }
  0xc7   :  { %v823_v20 = vpop.f32.mrf.mxu0  ;;  %v975_v21 = vmul.f32 5.0, %v163_v19 }
  0xc8   :  { %v828_v22 = vpop.f32.mrf.mxu1  ;;  %v312_v23 = vsel %vm969_vm3, %v973_v18, -1e+30  ;;  %v365_v24 = vsel %vm965_vm2, %v973_v18, 0.0 }
  0xc9   :  { %v233_v25 = vpop.f32.mrf.mxu0  ;;  %v317_v26 = vsel %vm316_vm4, %v312_v23, -inf  ;;  %v313_v27 = vsel %vm969_vm3, %v975_v21, -1e+30  ;;  %v366_v28 = vsel %vm965_vm2, %v975_v21, 0.0 }
  0xca   :  { %v990_v29 = vmul.f32 5.0, %v233_v25  ;;  %318 = vmax.xlane.f32.xlu0 %v317_v26  ;;  %v303_v30 = vpop.f32.mrf.mxu1  ;;  %v320_v33 = vsel %vm316_vm4, %v313_v27, -inf }
  0xcb   :  { %v833_v31 = vpop.f32.mrf.mxu0  ;;  %v992_v32 = vmul.f32 5.0, %v303_v30 }
  0xcc   :  { %v838_v34 = vpop.f32.mrf.mxu1  ;;  %v367_v35 = vsel %vm965_vm2, %v990_v29, 0.0  ;;  %v314_v40 = vsel %vm969_vm3, %v990_v29, -1e+30 }
  0xcd   :  { %v472_v36 = vpop.f32.mrf.mxu0  ;;  %v368_v37 = vsel %vm965_vm2, %v992_v32, 0.0  ;;  %v323_v46 = vsel %vm316_vm4, %v314_v40, -inf  ;;  %v315_v52 = vsel %vm969_vm3, %v992_v32, -1e+30  ;;  %v375_v18 = vsel %vm316_vm4, %v367_v35, 0.0 }
  0xce   :  { %v1001_v38 = vmul.f32 5.0, %v472_v36  ;;  %321 = vmax.xlane.f32.xlu0 %v320_v33  ;;  %v542_v39 = vpop.f32.mrf.mxu1  ;;  %v326_v60 = vsel %vm316_vm4, %v315_v52, -inf  ;;  %v378_v21 = vsel %vm316_vm4, %v368_v37, 0.0 }
  0xcf   :  { %v843_v41 = vpop.f32.mrf.mxu0  ;;  %v1006_v42 = vmul.f32 5.0, %v542_v39 }
  0xd0   :  { %v848_v43 = vpop.f32.mrf.mxu1  ;;  %v690_v44 = vsel %vm969_vm3, %v1001_v38, -1e+30  ;;  %v742_v45 = vsel %vm965_vm2, %v1001_v38, 0.0 }
  0xd1   :  { %v694_v47 = vsel %vm316_vm4, %v690_v44, -inf  ;;  %v612_v48 = vpop.f32.mrf.mxu0  ;;  %v691_v49 = vsel %vm969_vm3, %v1006_v42, -1e+30  ;;  %v743_v50 = vsel %vm965_vm2, %v1006_v42, 0.0 }
  0xd2   :  { %324 = vmax.xlane.f32.xlu0 %v323_v46  ;;  %695 = vmax.xlane.f32.xlu1 %v694_v47  ;;  %v1022_v51 = vmul.f32 5.0, %v612_v48  ;;  %v682_v53 = vpop.f32.mrf.mxu1  ;;  %v697_v54 = vsel %vm316_vm4, %v691_v49, -inf }
  0xd3   :  { %v853_v55 = vpop.f32.mrf.mxu0  ;;  %v1028_v56 = vmul.f32 5.0, %v682_v53 }
  0xd4   :  { %v858_v57 = vpop.f32.mrf.mxu1  ;;  %v692_v58 = vsel %vm969_vm3, %v1022_v51, -1e+30  ;;  %v744_v59 = vsel %vm965_vm2, %v1022_v51, 0.0 }
  0xd5   :  { %v745_v61 = vsel %vm965_vm2, %v1028_v56, 0.0  ;;  %v700_v62 = vsel %vm316_vm4, %v692_v58, -inf  ;;  %v693_v63 = vsel %vm969_vm3, %v1028_v56, -1e+30  ;;  %v746_v57 = vsel %vm316_vm4, %v742_v45, 0.0 }
  0xd6   :  { %327 = vmax.xlane.f32.xlu0 %v326_v60  ;;  %698 = vmax.xlane.f32.xlu1 %v697_v54  ;;  %v703_v0 = vsel %vm316_vm4, %v693_v63, -inf  ;;  %v369_v54 = vsel %vm316_vm4, %v365_v24, 0.0  ;;  %v749_v24 = vsel %vm316_vm4, %v743_v50, 0.0  ;;  %v755_v29 = vsel %vm316_vm4, %v745_v61, 0.0 }
  0xda   :  { %701 = vmax.xlane.f32.xlu1 %v700_v62 }
  0xde   :  { %704 = vmax.xlane.f32.xlu1 %v703_v0 }
 0x153   :  { %v1045_v1 = vpop.xlane.xlu0 %318 }
 0x154   :  { %v329_v2 = vsub.f32 %v312_v23, %v1045_v1 }
 0x156   :  { %v333_v3 = vmul.f32 1.442695, %v329_v2 }
 0x157   :  { %v1048_v4 = vpop.xlane.xlu0 %321 }
 0x158   :  { %866 = vpow2.f32 %v333_v3  ;;  %v330_v5 = vsub.f32 %v313_v27, %v1048_v4 }
 0x15a   :  { %v335_v6 = vmul.f32 1.442695, %v330_v5 }
 0x15b   :  { %v1051_v7 = vpop.xlane.xlu0 %324  ;;  %v1053_v8 = vpop.xlane.xlu1 %695 }
 0x15c   :  { %868 = vpow2.f32 %v335_v6  ;;  %v331_v9 = vsub.f32 %v314_v40, %v1051_v7  ;;  %v706_v10 = vsub.f32 %v690_v44, %v1053_v8 }
 0x15e   :  { %v337_v11 = vmul.f32 1.442695, %v331_v9  ;;  %v710_v12 = vmul.f32 1.442695, %v706_v10 }
 0x15f   :  { %v1057_v13 = vpop.xlane.xlu0 %327  ;;  %v1059_v14 = vpop.xlane.xlu1 %698 }
 0x160   :  { %870 = vpow2.f32 %v337_v11  ;;  %v332_v16 = vsub.f32 %v315_v52, %v1057_v13  ;;  %v707_v17 = vsub.f32 %v691_v49, %v1059_v14 }
 0x161   :  { %872 = vpow2.f32 %v710_v12 }
 0x162   :  { %v339_v19 = vmul.f32 1.442695, %v332_v16  ;;  %v712_v20 = vmul.f32 1.442695, %v707_v17 }
 0x163   :  { %v1063_v22 = vpop.xlane.xlu1 %701 }
 0x164   :  { %v708_v23 = vsub.f32 %v692_v58, %v1063_v22  ;;  %874 = vpow2.f32 %v712_v20  ;;  %v372_v58 = vsel %vm316_vm4, %v366_v28, 0.0  ;;  %v752_v28 = vsel %vm316_vm4, %v744_v59, 0.0 }
 0x165   :  { %v867_v25 = vpop.eup %866  ;;  %876 = vpow2.f32 %v339_v19 }
 0x166   :  { %v714_v26 = vmul.f32 1.442695, %v708_v23  ;;  %v341_v27 = vsel %vm316_vm4, %v867_v25, 0.0 }
 0x167   :  { %342 = vadd.xlane.f32.xlu0 %v341_v27  ;;  %v1067_v30 = vpop.xlane.xlu1 %704 }
 0x168   :  { %878 = vpow2.f32 %v714_v26  ;;  %v709_v31 = vsub.f32 %v693_v63, %v1067_v30 }
 0x169   :  { %v869_v33 = vpop.eup %868 }
 0x16a   :  { %v716_v34 = vmul.f32 1.442695, %v709_v31  ;;  %v344_v36 = vsel %vm316_vm4, %v869_v33, 0.0 }
 0x16b   :  { %345 = vadd.xlane.f32.xlu1 %v344_v36 }
 0x16c   :  { %880 = vpow2.f32 %v716_v34 }
 0x16d   :  { %v871_v39 = vpop.eup %870 }
 0x16e   :  { %v347_v40 = vsel %vm316_vm4, %v871_v39, 0.0  ;;  %v873_v41 = vpop.eup %872 }
 0x16f   :  { %348 = vadd.xlane.f32.xlu0 %v347_v40  ;;  %v718_v44 = vsel %vm316_vm4, %v873_v41, 0.0 }
 0x171   :  { %v875_v43 = vpop.eup %874 }
 0x172   :  { %v877_v46 = vpop.eup %876  ;;  %v721_v47 = vsel %vm316_vm4, %v875_v43, 0.0 }
 0x173   :  { %719 = vadd.xlane.f32.xlu0 %v718_v44  ;;  %722 = vadd.xlane.f32.xlu1 %v721_v47  ;;  %v350_v49 = vsel %vm316_vm4, %v877_v46, 0.0 }
 0x175   :  { %v879_v48 = vpop.eup %878 }
 0x176   :  { %v724_v52 = vsel %vm316_vm4, %v879_v48, 0.0 }
 0x177   :  { %351 = vadd.xlane.f32.xlu0 %v350_v49  ;;  %725 = vadd.xlane.f32.xlu1 %v724_v52 }
 0x179   :  { %v881_v53 = vpop.eup %880 }
 0x17a   :  { %v727_v55 = vsel %vm316_vm4, %v881_v53, 0.0 }
 0x17b   :  { %370 = vadd.xlane.f32.xlu0 %v369_v54  ;;  %728 = vadd.xlane.f32.xlu1 %v727_v55 }
 0x17f   :  { %747 = vadd.xlane.f32.xlu0 %v746_v57  ;;  %373 = vadd.xlane.f32.xlu1 %v372_v58 }
 0x183   :  { %376 = vadd.xlane.f32.xlu0 %v375_v18  ;;  %750 = vadd.xlane.f32.xlu1 %v749_v24 }
 0x187   :  { %379 = vadd.xlane.f32.xlu0 %v378_v21  ;;  %753 = vadd.xlane.f32.xlu1 %v752_v28 }
 0x18b   :  { %756 = vadd.xlane.f32.xlu1 %v755_v29 }
 0x1f0   :  { %v343_v35 = vpop.xlane.xlu0 %342 }
 0x1f1   :  { %882 = vlog2.f32 %v343_v35 }
 0x1f4   :  { %v346_v32 = vpop.xlane.xlu1 %345 }
 0x1f5   :  { %884 = vlog2.f32 %v346_v32 }
 0x1f8   :  { %v349_v37 = vpop.xlane.xlu0 %348 }
 0x1f9   :  { %886 = vlog2.f32 %v349_v37 }
 0x1fc   :  { %v720_v38 = vpop.xlane.xlu0 %719  ;;  %v723_v42 = vpop.xlane.xlu1 %722 }
 0x1fd   :  { %888 = vlog2.f32 %v720_v38 }
 0x1fe   :  { %890 = vlog2.f32 %v723_v42  ;;  %v883_v50 = vpop.eup %882 }
 0x1ff   :  { %v354_v60 = vmul.f32 0.6931472, %v883_v50 }
 0x200   :  { %v352_v45 = vpop.xlane.xlu0 %351  ;;  %v726_v51 = vpop.xlane.xlu1 %725 }
 0x201   :  { %892 = vlog2.f32 %v352_v45  ;;  %v361_v3 = vadd.f32 %v354_v60, %v1045_v1 }
 0x202   :  { %v885_v15 = vpop.eup %884  ;;  %894 = vlog2.f32 %v726_v51 }
 0x203   :  { %v356_v56 = vmul.f32 0.6931472, %v885_v15 }
 0x204   :  { %v371_v59 = vpop.xlane.xlu0 %370  ;;  %v729_v61 = vpop.xlane.xlu1 %728 }
 0x205   :  { %896 = vlog2.f32 %v729_v61  ;;  %v362_v2 = vadd.f32 %v356_v56, %v1048_v4  ;;  %v381_v12 = vsub.f32 %v361_v3, %v371_v59 }
 0x206   :  { %v887_v62 = vpop.eup %886 }
 0x207   :  { %v358_v63 = vmul.f32 0.6931472, %v887_v62  ;;  %v386_v33 = vsel %vm385_vm5, %v381_v12, 0.0 }
 0x208   :  { %v748_v0 = vpop.xlane.xlu0 %747  ;;  %v374_v5 = vpop.xlane.xlu1 %373 }
 0x209   :  { %v382_v9 = vsub.f32 %v362_v2, %v374_v5  ;;  %v363_v16 = vadd.f32 %v358_v63, %v1051_v7 }
 0x20a   :  { %v889_v6 = vpop.eup %888 }
 0x20b   :  { %v891_v10 = vpop.eup %890  ;;  %v731_v11 = vmul.f32 0.6931472, %v889_v6  ;;  %v387_v4 = vsel %vm385_vm5, %v382_v9, 0.0 }
 0x20c   :  { %v733_v17 = vmul.f32 0.6931472, %v891_v10  ;;  %v377_v19 = vpop.xlane.xlu0 %376  ;;  %v751_v25 = vpop.xlane.xlu1 %750  ;;  %v388_v40 = vadd.f32 %v387_v4, %v386_v33 }
 0x20d   :  { %v738_v20 = vadd.f32 %v731_v11, %v1053_v8  ;;  %v383_v23 = vsub.f32 %v363_v16, %v377_v19 }
 0x20e   :  { %v893_v26 = vpop.eup %892  ;;  %v739_v1 = vadd.f32 %v733_v17, %v1059_v14 }
 0x20f   :  { %v895_v27 = vpop.eup %894  ;;  %v360_v31 = vmul.f32 0.6931472, %v893_v26  ;;  %v758_v36 = vsub.f32 %v738_v20, %v748_v0  ;;  %v389_v7 = vsel %vm385_vm5, %v383_v23, 0.0 }
 0x210   :  { %v735_v34 = vmul.f32 0.6931472, %v895_v27  ;;  %v759_v39 = vsub.f32 %v739_v1, %v751_v25  ;;  %v754_v8 = vpop.xlane.xlu1 %753  ;;  %v380_v43 = vpop.xlane.xlu0 %379  ;;  %v390_v48 = vadd.f32 %v389_v7, %v388_v40 }
 0x211   :  { %v364_v41 = vadd.f32 %v360_v31, %v1057_v13  ;;  %v762_v49 = vsel %vm385_vm5, %v758_v36, 0.0 }
 0x212   :  { %v740_v44 = vadd.f32 %v735_v34, %v1063_v22  ;;  %v897_v46 = vpop.eup %896  ;;  %v763_v52 = vsel %vm385_vm5, %v759_v39, 0.0 }
 0x213   :  { %v384_v47 = vsub.f32 %v364_v41, %v380_v43  ;;  %v737_v14 = vmul.f32 0.6931472, %v897_v46  ;;  %v764_v58 = vadd.f32 %v763_v52, %v762_v49 }
 0x214   :  { %v760_v53 = vsub.f32 %v740_v44, %v754_v8  ;;  %v757_v18 = vpop.xlane.xlu1 %756 }
 0x215   :  { %v391_v54 = vsel %vm385_vm5, %v384_v47, 0.0  ;;  %v741_v57 = vadd.f32 %v737_v14, %v1067_v30 }
 0x216   :  { %v765_v55 = vsel %vm385_vm5, %v760_v53, 0.0  ;;  %v392_v13 = vadd.f32 %v391_v54, %v390_v48 }
 0x217   :  { %v761_v24 = vsub.f32 %v741_v57, %v757_v18  ;;  %v766_v22 = vadd.f32 %v765_v55, %v764_v58 }
 0x218   :  { %393 = vadd.xlane.f32.xlu0 %v392_v13 }
 0x219   :  { %v767_v21 = vsel %vm385_vm5, %v761_v24, 0.0 }
 0x21a   :  { %v768_v28 = vadd.f32 %v767_v21, %v766_v22 }
 0x21c   :  { %769 = vadd.xlane.f32.xlu1 %v768_v28 }
 0x2a1   :  { %v394_v29 = vpop.xlane.xlu0 %393 }
 0x2a2   :  { %v395_v35 = vrot.slane %v394_v29, 4 }
 0x2a4   :  { %v396_v32 = vadd.f32 %v395_v35, %v394_v29 }
 0x2a5   :  { %v770_v38 = vpop.xlane.xlu1 %769 }
 0x2a6   :  { %v397_v37 = vrot.slane %v396_v32, 2  ;;  %v771_v42 = vrot.slane %v770_v38, 4 }
 0x2a8   :  { %v398_v45 = vadd.f32 %v397_v37, %v396_v32  ;;  %v772_v50 = vadd.f32 %v771_v42, %v770_v38 }
 0x2aa   :  { %v399_v51 = vrot.slane %v398_v45, 1  ;;  %v773_v30 = vrot.slane %v772_v50, 2 }
 0x2ac   :  { %v400_v15 = vadd.f32 %v399_v51, %v398_v45  ;;  %v774_v56 = vadd.f32 %v773_v30, %v772_v50 }
 0x2ae   :  { %859 = vpush %v400_v15  ;;  %v775_v59 = vrot.slane %v774_v56, 1 }
 0x2b0   :  { %v776_v60 = vadd.f32 %v775_v59, %v774_v56 }
 0x2b2   :  { %861 = vpush %v776_v60 }
 0x2df   :  { %s860_s0 = spop %859 }
 0x2e0   :  { %s404_s22 = smul.f32 0.0625, %s860_s0 }
 0x2e3   :  { %s862_s23 = spop %861 }
 0x2e4   :  { %s780_s24 = smul.f32 0.0625, %s862_s23 }
 0x2e6   :  { %s781_s25 = sadd.f32 %s780_s24, %s404_s22 }
 0x2e8   :  { %s784_s28 = smul.f32 0.5, %s781_s25 }
 0x2ea   :  { %v785_v61 = vstv %s784_s28 }
 0x2eb   :  { %787 = vst.msk [vmem:[#allocation2] sm:$0x1] %vm786_vm6, %v785_v61 }
 0x2ec   :  { %909 = shalt.err (!%p906_p4)
}
 0x2ed   :  { %797 = dma.vmem_to_hbm [thread:$0]  %s795_s27, 16, %s1137_s1, [#allocation3]  }
 0x2ee   :  { %918 = dma.done.wait [#allocation3], 16  }
 0x2ef   :  { %919 = vsyncadd [#allocation3], 4294967280 }
 0x2f0   :  { %801 = vsyncpa [#allocation3], 1 }

// kernel: simmtm_forward.8
= control target key start
LH: loop header
LB: loop body
LE: loop exit
PB: predicated region body
PF: predicated region fallthrough
CT: control target
= control target key end

     0   :  { %vm43_vm0 = vcmask 785408   ;;  %vm152_vm1 = vcmask 261120   ;;  %vm250_vm2 = vcmask 31744   ;;  %s449_s1 = inlined_call_operand.vmem [shape: f32[96,32], index: 1, kind: input, shape index: {}]   ;;  %s450_s0 = inlined_call_operand.vmem [shape: f32[32,96], index: 0, kind: input, shape index: {}]   ;;  %s451_s3 = inlined_call_operand.vmem [shape: f32[32,4], index: 3, kind: input, shape index: {}]   ;;  %s452_s2 = inlined_call_operand.vmem [shape: f32[1,32], index: 2, kind: input, shape index: {}]   ;;  %s453_s4 = inlined_call_operand.vmem [shape: f32[1,4], index: 4, kind: input, shape index: {}]   ;;  %s454_s5 = inlined_call_operand.vmem [shape: f32[32,4], index: 5, kind: output, shape index: {}]  }
   0x1   :  { %v35_v0 = vld [vmem:[%s449_s1 + $0x58] sm:$0xff]  ;;  %v34_v1 = vld [vmem:[%s449_s1 + $0x50] sm:$0xff]  ;;  %v33_v2 = vld [vmem:[%s449_s1 + $0x48] sm:$0xff] }
   0x2   :  { %293 = vmatprep.subr.mxu0 %v35_v0  ;;  %v32_v3 = vld [vmem:[%s449_s1 + $0x40] sm:$0xff]  ;;  %v144_v5 = vld [vmem:[%s451_s3 + $0x18] sm:$0xff]  ;;  %v30_v7 = vld [vmem:[%s449_s1 + $0x30] sm:$0xff] }
   0x3   :  { %294 = vmatpush3.msra.mxu0 %v35_v0  ;;  %v20_v4 = vld [vmem:[%s450_s0] sm:$0xff]  ;;  %v31_v6 = vld [vmem:[%s449_s1 + $0x38] sm:$0xff]  ;;  %323 = vmatprep.subr.mxu1 %v144_v5  ;;  %v29_v8 = vld [vmem:[%s449_s1 + $0x28] sm:$0xff] }
   0x4   :  { %295 = vmatprep.subr.mxu0 %v34_v1  ;;  %317 = vmatprep.mubr.msk.f32.mxu0 %vm43_vm0, %v20_v4  ;;  %v28_v9 = vld [vmem:[%s449_s1 + $0x20] sm:$0xff]  ;;  %v27_v10 = vld [vmem:[%s449_s1 + $0x18] sm:$0xff]  ;;  %v26_v11 = vld [vmem:[%s449_s1 + $0x10] sm:$0xff] }
   0x5   :  { %296 = vmatpush3.msra.mxu0 %v34_v1  ;;  %324 = vmatpush3.msra.mxu1 %v144_v5  ;;  %v25_v12 = vld [vmem:[%s449_s1 + $0x8] sm:$0xff]  ;;  %v24_v13 = vld [vmem:[%s449_s1] sm:$0xff]  ;;  %v22_v15 = vld [vmem:[%s450_s0 + $0x10] sm:$0xff] }
   0x6   :  { %297 = vmatprep.subr.mxu0 %v33_v2  ;;  %v21_v14 = vld [vmem:[%s450_s0 + $0x8] sm:$0xff]  ;;  %v23_v16 = vld [vmem:[%s450_s0 + $0x18] sm:$0xff]  ;;  %v143_v17 = vld [vmem:[%s451_s3 + $0x10] sm:$0xff] }
   0x7   :  { %298 = vmatpush3.msra.mxu0 %v33_v2  ;;  %325 = vmatprep.subr.mxu1 %v143_v17  ;;  %v142_v18 = vld [vmem:[%s451_s3 + $0x8] sm:$0xff]  ;;  %v141_v19 = vld [vmem:[%s451_s3] sm:$0xff] }
   0x8   :  { %299 = vmatprep.subr.mxu0 %v32_v3  ;;  %326 = vmatpush3.msra.mxu1 %v143_v17  ;;  %v259_v21 = vld [vmem:[%s452_s2] ss:$0 sm:$0xff] }
   0x9   :  { %300 = vmatpush3.msra.mxu0 %v32_v3  ;;  %327 = vmatprep.subr.mxu1 %v142_v18  ;;  %v264_v29 = vld [vmem:[%s453_s4] ss:$0 sm:$0xff] }
   0xa   :  { %301 = vmatprep.subr.mxu0 %v31_v6  ;;  %328 = vmatpush3.msra.mxu1 %v142_v18 }
   0xb   :  { %302 = vmatpush3.msra.mxu0 %v31_v6  ;;  %329 = vmatprep.subr.mxu1 %v141_v19 }
   0xc   :  { %303 = vmatprep.subr.mxu0 %v30_v7  ;;  %330 = vmatpush3.msra.mxu1 %v141_v19 }
   0xd   :  { %304 = vmatpush3.msra.mxu0 %v30_v7 }
   0xe   :  { %305 = vmatprep.subr.mxu0 %v29_v8 }
   0xf   :  { %306 = vmatpush3.msra.mxu0 %v29_v8 }
  0x10   :  { %307 = vmatprep.subr.mxu0 %v28_v9 }
  0x11   :  { %308 = vmatpush3.msra.mxu0 %v28_v9 }
  0x12   :  { %309 = vmatprep.subr.mxu0 %v27_v10 }
  0x13   :  { %310 = vmatpush3.msra.mxu0 %v27_v10 }
  0x14   :  { %311 = vmatprep.subr.mxu0 %v26_v11 }
  0x15   :  { %312 = vmatpush3.msra.mxu0 %v26_v11 }
  0x16   :  { %313 = vmatprep.subr.mxu0 %v25_v12 }
  0x17   :  { %314 = vmatpush3.msra.mxu0 %v25_v12 }
  0x18   :  { %315 = vmatprep.subr.mxu0 %v24_v13 }
  0x19   :  { %316 = vmatpush3.msra.mxu0 %v24_v13 }
  0x1a   :  { %318 = vmatmul.mubr.msk.f32.vlgmr.msra.gmra.mxu0 %vm43_vm0, %v21_v14 }
  0x1b   :  { %320 = vmatprep.mubr.msk.f32.mxu0 %vm43_vm0, %v22_v15 }
  0x1e   :  { %321 = vmatmul.mubr.msk.f32.gmra.mxu0 %vm43_vm0, %v23_v16 }
  0xda   :  { %v319_v20 = vpop.f32.mrf.mxu0 }
  0xdb   :  { %v128_v24 = vadd.f32 %v319_v20, %v259_v21 }
  0xdc   :  { %v122_v22 = vpop.f32.mrf.mxu0 }
  0xdd   :  { %v123_v23 = vadd.f32 %v259_v21, %v122_v22 }
  0xde   :  { %v322_v25 = vpop.f32.mrf.mxu0 }
  0xdf   :  { %331 = vmatprep.mubr.msk.f32.mxu1 %vm152_vm1, %v123_v23  ;;  %v138_v28 = vadd.f32 %v322_v25, %v259_v21 }
  0xe0   :  { %v132_v26 = vpop.f32.mrf.mxu0  ;;  %332 = vmatmul.mubr.msk.f32.vlgmr.msra.gmra.mxu1 %vm152_vm1, %v128_v24 }
  0xe1   :  { %v133_v27 = vadd.f32 %v259_v21, %v132_v26 }
  0xe3   :  { %334 = vmatprep.mubr.msk.f32.mxu1 %vm152_vm1, %v133_v27 }
  0xe4   :  { %335 = vmatmul.mubr.msk.f32.gmra.mxu1 %vm152_vm1, %v138_v28 }
 0x1a0   :  { %v333_v30 = vpop.f32.mrf.mxu1 }
 0x1a1   :  { %v237_v31 = vadd.f32 %v333_v30, %v264_v29 }
 0x1a2   :  { %v231_v32 = vpop.f32.mrf.mxu1 }
 0x1a3   :  { %252 = vst.msk [vmem:[%s454_s5 + $0x8] sm:$0xff] %vm250_vm2, %v237_v31  ;;  %v232_v33 = vadd.f32 %v264_v29, %v231_v32 }
 0x1a4   :  { %v336_v34 = vpop.f32.mrf.mxu1 }
 0x1a5   :  { %251 = vst.msk [vmem:[%s454_s5] sm:$0xff] %vm250_vm2, %v232_v33  ;;  %v247_v35 = vadd.f32 %v336_v34, %v264_v29 }
 0x1a6   :  { %v241_v36 = vpop.f32.mrf.mxu1 }
 0x1a7   :  { %254 = vst.msk [vmem:[%s454_s5 + $0x18] sm:$0xff] %vm250_vm2, %v247_v35  ;;  %v242_v37 = vadd.f32 %v264_v29, %v241_v36 }
 0x1a9   :  { %253 = vst.msk [vmem:[%s454_s5 + $0x10] sm:$0xff] %vm250_vm2, %v242_v37 }

// kernel: simmtm_forward.6
= control target key start
LH: loop header
LB: loop body
LE: loop exit
PB: predicated region body
PF: predicated region fallthrough
CT: control target
= control target key end

     0   :  { %vm94_vm0 = vcmask 1045504   ;;  %vm75_vm1 = vcmask 97280   ;;  %vm198_vm2 = vcmask 261120   ;;  %v7243_v46 = vmov 0.0   ;;  %s5399_s28 = smov 96   ;;  %s5401_s29 = smov 88   ;;  %s7225_s1 = inlined_call_operand.vmem [shape: f32[12,32], index: 1, kind: input, shape index: {}]   ;;  %s7226_s0 = inlined_call_operand.vmem [shape: f32[96,12], index: 0, kind: input, shape index: {}]   ;;  %s7227_s2 = inlined_call_operand.vmem [shape: f32[1,32,96], index: 2, kind: input, shape index: {}]   ;;  %s7228_s3 = inlined_call_operand.vmem [shape: f32[1,1,96], index: 3, kind: input, shape index: {}]   ;;  %s7229_s4 = inlined_call_operand.vmem [shape: f32[1,32,32], index: 4, kind: input, shape index: {}]   ;;  %s7230_s5 = inlined_call_operand.vmem [shape: f32[1,1,32], index: 5, kind: input, shape index: {}]   ;;  %s7231_s6 = inlined_call_operand.vmem [shape: f32[1,32,128], index: 6, kind: input, shape index: {}]   ;;  %s7232_s8 = inlined_call_operand.vmem [shape: f32[1,128,32], index: 8, kind: input, shape index: {}]   ;;  %s7233_s10 = inlined_call_operand.vmem [shape: f32[1,1,32], index: 10, kind: input, shape index: {}]   ;;  %s7234_s11 = inlined_call_operand.vmem [shape: f32[1,1,32], index: 11, kind: input, shape index: {}]   ;;  %s7235_s7 = inlined_call_operand.vmem [shape: f32[1,1,128], index: 7, kind: input, shape index: {}]   ;;  %s7236_s9 = inlined_call_operand.vmem [shape: f32[1,1,32], index: 9, kind: input, shape index: {}]   ;;  %s7237_s12 = inlined_call_operand.vmem [shape: f32[1,1,32], index: 12, kind: input, shape index: {}]   ;;  %s7238_s13 = inlined_call_operand.vmem [shape: f32[1,1,32], index: 13, kind: input, shape index: {}]   ;;  %s7239_s14 = inlined_call_operand.vmem [shape: f32[1,32], index: 14, kind: input, shape index: {}]   ;;  %s7240_s15 = inlined_call_operand.vmem [shape: f32[1,32], index: 15, kind: input, shape index: {}]   ;;  %s7241_s16 = inlined_call_operand.vmem [shape: f32[96,32], index: 16, kind: output, shape index: {}]  }
   0x1   :  { %7257 = sst [smem:[#allocation15_spill]] %s7225_s1  ;;  %v54_v2 = vld [vmem:[%s7226_s0] sm:$0xff]  ;;  %v55_v4 = vld [vmem:[%s7226_s0 + $0x8] sm:$0xff]  ;;  %v56_v5 = vld [vmem:[%s7226_s0 + $0x10] sm:$0xff]  ;;  %vm5398_vm3 = vmmov 0   ;;  %vm307_vm4 = vcmask 64512  }
   0x2   :  { %s7258_s23 = sld [smem:[#allocation15_spill]]  ;;  %v57_v6 = vld [vmem:[%s7226_s0 + $0x18] sm:$0xff]  ;;  %v66_v7 = vpack.c.bf16 %v55_v4, %v54_v2  ;;  %v58_v8 = vld [vmem:[%s7226_s0 + $0x20] sm:$0xff]  ;;  %v59_v9 = vld [vmem:[%s7226_s0 + $0x28] sm:$0xff]  ;;  %vm617_vm5 = vcmask 130048   ;;  %s5402_s30 = smov 120  }
   0x3   :  { %v60_v10 = vld [vmem:[%s7226_s0 + $0x30] sm:$0xff]  ;;  %v67_v12 = vpack.c.bf16 %v57_v6, %v56_v5  ;;  %v68_v13 = vpack.c.bf16 %v59_v9, %v58_v8  ;;  %v61_v14 = vld [vmem:[%s7226_s0 + $0x38] sm:$0xff]  ;;  %v62_v15 = vld [vmem:[%s7226_s0 + $0x40] sm:$0xff]  ;;  %s5403_s1 = smov 56   ;;  %s5404_s17 = smov 80   ;;  %vm3420_vm6 = vcmask 195584  }
   0x4   :  { %v63_v16 = vld [vmem:[%s7226_s0 + $0x48] sm:$0xff]  ;;  %4647 = vmatprep.mubr.msk.bf16.mxu0 %vm75_vm1, %v66_v7  ;;  %v69_v17 = vpack.c.bf16 %v61_v14, %v60_v10  ;;  %v64_v19 = vld [vmem:[%s7226_s0 + $0x50] sm:$0xff]  ;;  %v65_v20 = vld [vmem:[%s7226_s0 + $0x58] sm:$0xff]  ;;  %s5405_s18 = smov 112   ;;  %s5406_s19 = smov 48  }
   0x5   :  { %4651 = vmatprep.mubr.msk.bf16.mxu1 %vm75_vm1, %v68_v13  ;;  %v70_v18 = vpack.c.bf16 %v63_v16, %v62_v15  ;;  %v71_v21 = vpack.c.bf16 %v65_v20, %v64_v19  ;;  %v187_v22 = vld [vmem:[%s7227_s2 + $0x10] sm:$0xff]  ;;  %v188_v23 = vld [vmem:[%s7227_s2 + $0x18] sm:$0xff]  ;;  %v185_v25 = vld [vmem:[%s7227_s2] sm:$0xff]  ;;  %s5407_s20 = smov 72   ;;  %s5408_s21 = smov 104  }
   0x6   :  { %v190_v24 = vpack.c.bf16 %v188_v23, %v187_v22  ;;  %v186_v26 = vld [vmem:[%s7227_s2 + $0x8] sm:$0xff]  ;;  %v4428_v50 = vld [vmem:[%s7228_s3] ss:$0 sm:$0xff]  ;;  %s5400_s3 = smov 64   ;;  %s5409_s22 = smov 40  }
   0x7   :  { %v189_v27 = vpack.c.bf16 %v186_v26, %v185_v25  ;;  %s5411_s24 = smov 16  }
   0x8   :  { %v72_v0 = vld [vmem:[%s7258_s23] sm:$0xff]  ;;  %v73_v1 = vld [vmem:[%s7258_s23 + $0x8] sm:$0xf]  ;;  %s5410_s23 = smov 8  }
   0x9   :  { %v74_v3 = vpack.c.bf16 %v73_v1, %v72_v0 }
   0xb   :  { %5025 = vmatprep.subr.msk.bf16.mxu0 %vm94_vm0, %v74_v3  ;;  %v96_v11 = vsel %vm94_vm0, %v74_v3, 0  ;;  %5026 = vmatprep.subr.msk.bf16.mxu1 %vm94_vm0, %v74_v3 }
   0xc   :  { %4646 = vmatpush3.bf16.msra.mxu0 %v96_v11  ;;  %5024 = vmatpush3.bf16.msra.mxu1 %v96_v11 }
   0xd   :  { %4659 = vmatprep.subr.bf16.mxu1 %v190_v24  ;;  %4675 = vmatprep.subr.bf16.mxu0 %v7243_v46 }
   0xf   :  { %4648 = vmatmul.mubr.msk.bf16.vlgmr.msra.gmra.mxu0 %vm75_vm1, %v67_v12  ;;  %4652 = vmatmul.mubr.msk.bf16.vlgmr.msra.gmra.mxu1 %vm75_vm1, %v69_v17 }
  0x10   :  { %4655 = vmatprep.mubr.msk.bf16.mxu1 %vm75_vm1, %v70_v18  ;;  %4660 = vmatpush3.bf16.msra.mxu1 %v190_v24 }
  0x11   :  { %4661 = vmatprep.subr.bf16.mxu1 %v189_v27  ;;  %4677 = vmatprep.mubr.msk.bf16.mxu0 %vm5398_vm3, %v7243_v46 }
  0x14   :  { %4662 = vmatpush3.bf16.msra.mxu1 %v189_v27 }
  0x15   :  { %4681 = vmatprep.subr.bf16.mxu1 %v7243_v46 }
  0x17   :  { %4656 = vmatmul.mubr.msk.bf16.gmra.mxu1 %vm75_vm1, %v71_v21 }
  0xcf   :  { %v5558_v28 = vpop.f32.mrf.mxu0  ;;  %v5560_v29 = vpop.f32.mrf.mxu1 }
  0xd0   :  { %7259 = vst [vmem:[#allocation2_spill] sm:$0xff] %v5558_v28  ;;  %7260 = vst [vmem:[#allocation3_spill] sm:$0xff] %v5560_v29 }
  0xd1   :  { %v5562_v30 = vpop.f32.mrf.mxu0  ;;  %v5564_v31 = vpop.f32.mrf.mxu1 }
  0xd2   :  { %7261 = vst [vmem:[#allocation4_spill] sm:$0xff] %v5562_v30  ;;  %7262 = vst [vmem:[#allocation5_spill] sm:$0xff] %v5564_v31 }
  0xd3   :  { %v5566_v32 = vpop.f32.mrf.mxu0  ;;  %v5568_v33 = vpop.f32.mrf.mxu1 }
  0xd4   :  { %7263 = vst [vmem:[#allocation6_spill] sm:$0xff] %v5566_v32  ;;  %7264 = vst [vmem:[#allocation7_spill] sm:$0xff] %v5568_v33  ;;  %v180_v37 = vpack.c.bf16 %v5566_v32, %v5558_v28  ;;  %v182_v43 = vpack.c.bf16 %v5568_v33, %v5560_v29 }
  0xd5   :  { %v5570_v34 = vpop.f32.mrf.mxu0  ;;  %v5574_v36 = vpop.f32.mrf.mxu1 }
  0xd6   :  { %7265 = vst [vmem:[#allocation8_spill] sm:$0xff] %v5570_v34  ;;  %v179_v35 = vpack.c.bf16 %v5570_v34, %v5562_v30  ;;  %7266 = vst [vmem:[#allocation9_spill] sm:$0xff] %v5574_v36  ;;  %v181_v38 = vpack.c.bf16 %v5574_v36, %v5564_v31 }
  0xd7   :  { %v5581_v39 = vpop.f32.mrf.mxu1 }
  0xd8   :  { %4663 = vmatprep.mubr.msk.bf16.mxu1 %vm198_vm2, %v179_v35  ;;  %7267 = vst [vmem:[#allocation10_spill] sm:$0xff] %v5581_v39 }
  0xd9   :  { %4664 = vmatmul.mubr.msk.bf16.vlgmr.msra.gmra.mxu1 %vm198_vm2, %v180_v37  ;;  %v5585_v40 = vpop.f32.mrf.mxu1 }
  0xda   :  { %4667 = vmatprep.mubr.msk.bf16.mxu1 %vm198_vm2, %v181_v38  ;;  %7268 = vst [vmem:[#allocation11_spill] sm:$0xff] %v5585_v40 }
  0xdb   :  { %v5587_v41 = vpop.f32.mrf.mxu1 }
  0xdc   :  { %7269 = vst [vmem:[#allocation12_spill] sm:$0xff] %v5587_v41  ;;  %v184_v45 = vpack.c.bf16 %v5587_v41, %v5581_v39 }
  0xdd   :  { %v5589_v42 = vpop.f32.mrf.mxu1 }
  0xde   :  { %7270 = vst [vmem:[#allocation13_spill] sm:$0xff] %v5589_v42  ;;  %v183_v44 = vpack.c.bf16 %v5589_v42, %v5585_v40 }
  0xe1   :  { %4668 = vmatmul.mubr.msk.bf16.gmra.mxu1 %vm198_vm2, %v182_v43 }
  0xe2   :  { %4671 = vmatprep.mubr.msk.bf16.mxu1 %vm198_vm2, %v183_v44 }
  0xe9   :  { %4672 = vmatmul.mubr.msk.bf16.gmra.mxu1 %vm198_vm2, %v184_v45 }
  0xea   :  { %4683 = vmatprep.mubr.msk.bf16.mxu1 %vm5398_vm3, %v7243_v46 }
 0x199   :  { %v4665_v47 = vpop.f32.mrf.mxu1 }
 0x19a   :  { %v260_v58 = vadd.f32 %v4665_v47, %v4428_v50 }
 0x19b   :  { %v251_v48 = vpop.f32.mrf.mxu1 }
 0x19c   :  { %v252_v52 = vadd.f32 %v4428_v50, %v251_v48 }
 0x19d   :  { %v4666_v49 = vpop.f32.mrf.mxu1 }
 0x19e   :  { %v263_v55 = vadd.f32 %v4666_v49, %v4428_v50 }
 0x19f   :  { %v254_v51 = vpop.f32.mrf.mxu1 }
 0x1a0   :  { %v255_v53 = vadd.f32 %v4428_v50, %v254_v51  ;;  %v5612_v60 = vpack.c.bf16 %v263_v55, %v260_v58 }
 0x1a1   :  { %v4669_v54 = vpop.f32.mrf.mxu1 }
 0x1a2   :  { %v5609_v56 = vpack.c.bf16 %v255_v53, %v252_v52  ;;  %v276_v4 = vadd.f32 %v4669_v54, %v4428_v50 }
 0x1a3   :  { %v267_v57 = vpop.f32.mrf.mxu1 }
 0x1a4   :  { %305 = vrot.lane.b32.xlu0 %v5609_v56, %s5399_s28  ;;  %v268_v62 = vadd.f32 %v4428_v50, %v267_v57 }
 0x1a5   :  { %v4670_v59 = vpop.f32.mrf.mxu1 }
 0x1a6   :  { %v279_v1 = vadd.f32 %v4670_v59, %v4428_v50 }
 0x1a7   :  { %v270_v61 = vpop.f32.mrf.mxu1 }
 0x1a8   :  { %v271_v63 = vadd.f32 %v4428_v50, %v270_v61  ;;  %356 = vrot.lane.b32.xlu0 %v5612_v60, %s5399_s28  ;;  %v5618_v6 = vpack.c.bf16 %v279_v1, %v276_v4 }
 0x1a9   :  { %v4673_v0 = vpop.f32.mrf.mxu1 }
 0x1aa   :  { %v5615_v2 = vpack.c.bf16 %v271_v63, %v268_v62  ;;  %v292_v9 = vadd.f32 %v4673_v0, %v4428_v50 }
 0x1ab   :  { %v283_v3 = vpop.f32.mrf.mxu1 }
 0x1ac   :  { %406 = vrot.lane.b32.xlu1 %v5615_v2, %s5399_s28  ;;  %v284_v10 = vadd.f32 %v4428_v50, %v283_v3 }
 0x1ad   :  { %v4674_v5 = vpop.f32.mrf.mxu1 }
 0x1ae   :  { %v295_v7 = vadd.f32 %v4674_v5, %v4428_v50 }
 0x1af   :  { %v286_v8 = vpop.f32.mrf.mxu1 }
 0x1b0   :  { %v287_v11 = vadd.f32 %v4428_v50, %v286_v8  ;;  %456 = vrot.lane.b32.xlu1 %v5618_v6, %s5399_s28  ;;  %v5621_v12 = vpack.c.bf16 %v295_v7, %v292_v9 }
 0x1b2   :  { %v5623_v13 = vpack.c.bf16 %v287_v11, %v284_v10 }
 0x1b4   :  { %506 = vrot.lane.b32.xlu0 %v5623_v13, %s5399_s28  ;;  %556 = vrot.lane.b32.xlu1 %v5621_v12, %s5399_s28 }
 0x216   :  { %v306_v14 = vpop.permute.xlu0 %305 }
 0x217   :  { %v312_v15 = vsel %vm307_vm4, %v306_v14, 0 }
 0x218   :  { %4676 = vmatpush3.bf16.xpose.msra.mxu0 %v312_v15 }
 0x219   :  { %4687 = vmatprep.subr.bf16.mxu0 %v7243_v46 }
 0x21a   :  { %v357_v16 = vpop.permute.xlu0 %356 }
 0x21b   :  { %v362_v17 = vsel %vm307_vm4, %v357_v16, 0 }
 0x21c   :  { %4682 = vmatpush3.bf16.xpose.msra.mxu1 %v362_v17 }
 0x21d   :  { %4693 = vmatprep.subr.bf16.mxu1 %v7243_v46 }
 0x21e   :  { %v407_v18 = vpop.permute.xlu1 %406 }
 0x21f   :  { %v412_v19 = vsel %vm307_vm4, %v407_v18, 0  ;;  %4678 = vmatmul.mubr.msk.bf16.vlgmr.msra.gmra.mxu0 %vm307_vm4, %v5609_v56 }
 0x220   :  { %4688 = vmatpush3.bf16.xpose.msra.mxu0 %v412_v19  ;;  %4689 = vmatprep.mubr.msk.bf16.mxu0 %vm5398_vm3, %v7243_v46 }
 0x221   :  { %4699 = vmatprep.subr.bf16.mxu0 %v7243_v46 }
 0x222   :  { %v457_v20 = vpop.permute.xlu1 %456 }
 0x223   :  { %v462_v21 = vsel %vm307_vm4, %v457_v20, 0  ;;  %4684 = vmatmul.mubr.msk.bf16.vlgmr.msra.gmra.mxu1 %vm307_vm4, %v5612_v60 }
 0x224   :  { %4694 = vmatpush3.bf16.xpose.msra.mxu1 %v462_v21  ;;  %4695 = vmatprep.mubr.msk.bf16.mxu1 %vm5398_vm3, %v7243_v46 }
 0x225   :  { %4705 = vmatprep.subr.bf16.mxu1 %v7243_v46 }
 0x226   :  { %v507_v22 = vpop.permute.xlu0 %506  ;;  %v557_v24 = vpop.permute.xlu1 %556 }
 0x227   :  { %v512_v23 = vsel %vm307_vm4, %v507_v22, 0  ;;  %4690 = vmatmul.mubr.msk.bf16.vlgmr.msra.gmra.mxu0 %vm307_vm4, %v5615_v2  ;;  %v562_v25 = vsel %vm307_vm4, %v557_v24, 0 }
 0x228   :  { %4700 = vmatpush3.bf16.xpose.msra.mxu0 %v512_v23  ;;  %4701 = vmatprep.mubr.msk.bf16.mxu0 %vm5398_vm3, %v7243_v46 }
 0x229   :  { %4711 = vmatprep.subr.bf16.mxu0 %v7243_v46 }
 0x22b   :  { %4696 = vmatmul.mubr.msk.bf16.vlgmr.msra.gmra.mxu1 %vm307_vm4, %v5618_v6 }
 0x22c   :  { %4706 = vmatpush3.bf16.xpose.msra.mxu1 %v562_v25  ;;  %4707 = vmatprep.mubr.msk.bf16.mxu1 %vm5398_vm3, %v7243_v46 }
 0x22d   :  { %4717 = vmatprep.subr.bf16.mxu1 %v7243_v46 }
 0x22f   :  { %4702 = vmatmul.mubr.msk.bf16.vlgmr.msra.gmra.mxu0 %vm307_vm4, %v5623_v13 }
 0x230   :  { %4713 = vmatprep.mubr.msk.bf16.mxu0 %vm5398_vm3, %v7243_v46 }
 0x233   :  { %4708 = vmatmul.mubr.msk.bf16.vlgmr.msra.gmra.mxu1 %vm307_vm4, %v5621_v12 }
 0x234   :  { %4719 = vmatprep.mubr.msk.bf16.mxu1 %vm5398_vm3, %v7243_v46 }
 0x2df   :  { %v348_v26 = vpop.f32.mrf.mxu0 }
 0x2e0   :  { %v5667_v47 = vmul.f32 0.35355338, %v348_v26 }
 0x2e1   :  { %v4679_v27 = vpop.f32.mrf.mxu0 }
 0x2e2   :  { %v618_v55 = vsel %vm617_vm5, %v5667_v47, -inf }
 0x2e3   :  { %v351_v35 = vpop.f32.mrf.mxu0  ;;  %v398_v37 = vpop.f32.mrf.mxu1 }
 0x2e4   :  { %v5663_v38 = vmul.f32 0.35355338, %v351_v35  ;;  %v5665_v43 = vmul.f32 0.35355338, %v398_v37 }
 0x2e5   :  { %v4680_v44 = vpop.f32.mrf.mxu0  ;;  %v4685_v45 = vpop.f32.mrf.mxu1 }
 0x2e6   :  { %v621_v48 = vsel %vm617_vm5, %v5663_v38, -inf  ;;  %v624_v49 = vsel %vm617_vm5, %v5665_v43, -inf }
 0x2e7   :  { %622 = vmax.xlane.f32.xlu1 %v621_v48  ;;  %v448_v50 = vpop.f32.mrf.mxu0  ;;  %625 = vmax.xlane.f32.xlu0 %v624_v49  ;;  %v401_v51 = vpop.f32.mrf.mxu1 }
 0x2e8   :  { %v5673_v54 = vmul.f32 0.35355338, %v401_v51  ;;  %v5677_v63 = vmul.f32 0.35355338, %v448_v50 }
 0x2e9   :  { %v4686_v52 = vpop.f32.mrf.mxu1  ;;  %v4691_v53 = vpop.f32.mrf.mxu0 }
 0x2ea   :  { %v627_v1 = vsel %vm617_vm5, %v5673_v54, -inf  ;;  %v630_v11 = vsel %vm617_vm5, %v5677_v63, -inf }
 0x2eb   :  { %v451_v57 = vpop.f32.mrf.mxu0  ;;  %619 = vmax.xlane.f32.xlu0 %v618_v55  ;;  %v498_v58 = vpop.f32.mrf.mxu1 }
 0x2ec   :  { %v611_v59 = vmul.f32 0.35355338, %v498_v58  ;;  %v5679_v0 = vmul.f32 0.35355338, %v451_v57 }
 0x2ed   :  { %v4692_v61 = vpop.f32.mrf.mxu0  ;;  %v4697_v62 = vpop.f32.mrf.mxu1 }
 0x2ee   :  { %v636_v3 = vsel %vm617_vm5, %v611_v59, -inf  ;;  %v633_v10 = vsel %vm617_vm5, %v5679_v0, -inf }
 0x2ef   :  { %628 = vmax.xlane.f32.xlu0 %v627_v1  ;;  %637 = vmax.xlane.f32.xlu1 %v636_v3  ;;  %v501_v4 = vpop.f32.mrf.mxu1  ;;  %v548_v5 = vpop.f32.mrf.mxu0 }
 0x2f0   :  { %v5684_v9 = vmul.f32 0.35355338, %v501_v4  ;;  %v5690_v19 = vmul.f32 0.35355338, %v548_v5 }
 0x2f1   :  { %v4698_v7 = vpop.f32.mrf.mxu1  ;;  %v4703_v8 = vpop.f32.mrf.mxu0 }
 0x2f2   :  { %v639_v21 = vsel %vm617_vm5, %v5684_v9, -inf  ;;  %v642_v26 = vsel %vm617_vm5, %v5690_v19, -inf }
 0x2f3   :  { %634 = vmax.xlane.f32.xlu0 %v633_v10  ;;  %631 = vmax.xlane.f32.xlu1 %v630_v11  ;;  %v551_v14 = vpop.f32.mrf.mxu0  ;;  %v598_v15 = vpop.f32.mrf.mxu1 }
 0x2f4   :  { %v615_v16 = vmul.f32 0.35355338, %v598_v15  ;;  %v5692_v20 = vmul.f32 0.35355338, %v551_v14 }
 0x2f5   :  { %v4704_v17 = vpop.f32.mrf.mxu0  ;;  %v4709_v18 = vpop.f32.mrf.mxu1 }
 0x2f6   :  { %v648_v22 = vsel %vm617_vm5, %v615_v16, -inf  ;;  %v645_v27 = vsel %vm617_vm5, %v5692_v20, -inf }
 0x2f7   :  { %640 = vmax.xlane.f32.xlu0 %v639_v21  ;;  %649 = vmax.xlane.f32.xlu1 %v648_v22  ;;  %v601_v23 = vpop.f32.mrf.mxu1 }
 0x2f8   :  { %v5697_v25 = vmul.f32 0.35355338, %v601_v23 }
 0x2f9   :  { %v4710_v24 = vpop.f32.mrf.mxu1 }
 0x2fa   :  { %v651_v35 = vsel %vm617_vm5, %v5697_v25, -inf }
 0x2fb   :  { %643 = vmax.xlane.f32.xlu1 %v642_v26  ;;  %646 = vmax.xlane.f32.xlu0 %v645_v27 }
 0x2ff   :  { %652 = vmax.xlane.f32.xlu0 %v651_v35 }
 0x30c   :  { %756 = vrot.lane.b32.xlu1 %v5609_v56, %s5400_s3 }
 0x310   :  { %850 = vrot.lane.b32.xlu1 %v5615_v2, %s5400_s3 }
 0x314   :  { %897 = vrot.lane.b32.xlu1 %v5618_v6, %s5400_s3 }
 0x315   :  { %803 = vrot.lane.b32.xlu0 %v5612_v60, %s5400_s3 }
 0x318   :  { %991 = vrot.lane.b32.xlu1 %v5621_v12, %s5400_s3 }
 0x319   :  { %944 = vrot.lane.b32.xlu0 %v5623_v13, %s5400_s3 }
 0x370   :  { %v626_v37 = vpop.xlane.xlu0 %625  ;;  %v623_v48 = vpop.xlane.xlu1 %622 }
 0x371   :  { %v656_v44 = vsub.f32 %v5665_v43, %v626_v37  ;;  %v655_v52 = vsub.f32 %v5663_v38, %v623_v48 }
 0x373   :  { %v670_v45 = vmul.f32 1.442695, %v656_v44  ;;  %v668_v1 = vmul.f32 1.442695, %v655_v52 }
 0x374   :  { %v620_v49 = vpop.xlane.xlu0 %619 }
 0x375   :  { %v654_v50 = vsub.f32 %v5667_v47, %v620_v49  ;;  %5133 = vpow2.f32 %v670_v45 }
 0x377   :  { %v666_v51 = vmul.f32 1.442695, %v654_v50 }
 0x378   :  { %v638_v53 = vpop.xlane.xlu1 %637  ;;  %v629_v55 = vpop.xlane.xlu0 %628 }
 0x379   :  { %5135 = vpow2.f32 %v666_v51  ;;  %v660_v57 = vsub.f32 %v611_v59, %v638_v53  ;;  %v657_v58 = vsub.f32 %v5673_v54, %v629_v55 }
 0x37b   :  { %v678_v61 = vmul.f32 1.442695, %v660_v57  ;;  %v672_v62 = vmul.f32 1.442695, %v657_v58 }
 0x37c   :  { %v632_v3 = vpop.xlane.xlu1 %631  ;;  %v635_v43 = vpop.xlane.xlu0 %634 }
 0x37d   :  { %5137 = vpow2.f32 %v678_v61  ;;  %v658_v4 = vsub.f32 %v5677_v63, %v632_v3  ;;  %v659_v5 = vsub.f32 %v5679_v0, %v635_v43 }
 0x37e   :  { %5139 = vpow2.f32 %v672_v62 }
 0x37f   :  { %v674_v47 = vmul.f32 1.442695, %v658_v4  ;;  %5141 = vpow2.f32 %v668_v1  ;;  %v676_v14 = vmul.f32 1.442695, %v659_v5 }
 0x380   :  { %v650_v38 = vpop.xlane.xlu1 %649  ;;  %v641_v7 = vpop.xlane.xlu0 %640 }
 0x381   :  { %5143 = vpow2.f32 %v674_v47  ;;  %v664_v8 = vsub.f32 %v615_v16, %v650_v38  ;;  %v661_v59 = vsub.f32 %v5684_v9, %v641_v7 }
 0x382   :  { %v5718_v54 = vpop.eup %5133 }
 0x383   :  { %v686_v10 = vmul.f32 1.442695, %v664_v8  ;;  %v680_v11 = vmul.f32 1.442695, %v661_v59  ;;  %v696_v63 = vsel %vm617_vm5, %v5718_v54, 0.0 }
 0x384   :  { %v644_v15 = vpop.xlane.xlu1 %643  ;;  %v647_v17 = vpop.xlane.xlu0 %646  ;;  %697 = vadd.xlane.f32.xlu1 %v696_v63 }
 0x385   :  { %5145 = vpow2.f32 %v686_v10  ;;  %v662_v18 = vsub.f32 %v5690_v19, %v644_v15  ;;  %v663_v21 = vsub.f32 %v5692_v20, %v647_v17 }
 0x386   :  { %v5723_v0 = vpop.eup %5135  ;;  %5147 = vpow2.f32 %v680_v11 }
 0x387   :  { %v682_v16 = vmul.f32 1.442695, %v662_v18  ;;  %v690_v9 = vsel %vm617_vm5, %v5723_v0, 0.0  ;;  %5149 = vpow2.f32 %v676_v14  ;;  %v684_v37 = vmul.f32 1.442695, %v663_v21 }
 0x388   :  { %v757_v22 = vpop.permute.xlu1 %756  ;;  %v653_v23 = vpop.xlane.xlu0 %652  ;;  %691 = vadd.xlane.f32.xlu1 %v690_v9 }
 0x389   :  { %5151 = vpow2.f32 %v682_v16  ;;  %v665_v24 = vsub.f32 %v5697_v25, %v653_v23  ;;  %4712 = vmatpush3.bf16.msra.mxu0 %v757_v22 }
 0x38a   :  { %v5729_v26 = vpop.eup %5137  ;;  %4723 = vmatprep.subr.bf16.mxu0 %v7243_v46 }
 0x38b   :  { %v5732_v19 = vpop.eup %5139  ;;  %v688_v27 = vmul.f32 1.442695, %v665_v24  ;;  %v708_v35 = vsel %vm617_vm5, %v5729_v26, 0.0 }
 0x38c   :  { %v699_v20 = vsel %vm617_vm5, %v5732_v19, 0.0  ;;  %v804_v44 = vpop.permute.xlu0 %803  ;;  %v5738_v45 = vpop.eup %5141  ;;  %709 = vadd.xlane.f32.xlu1 %v708_v35 }
 0x38d   :  { %5153 = vpow2.f32 %v688_v27  ;;  %700 = vadd.xlane.f32.xlu0 %v699_v20  ;;  %4718 = vmatpush3.bf16.msra.mxu1 %v804_v44  ;;  %v693_v49 = vsel %vm617_vm5, %v5738_v45, 0.0  ;;  %v851_v4 = vpop.permute.xlu1 %850 }
 0x38e   :  { %v5740_v25 = vpop.eup %5143  ;;  %4729 = vmatprep.subr.bf16.mxu1 %v7243_v46  ;;  %5155 = vpow2.f32 %v684_v37 }
 0x38f   :  { %v702_v48 = vsel %vm617_vm5, %v5740_v25, 0.0 }
 0x390   :  { %703 = vadd.xlane.f32.xlu1 %v702_v48  ;;  %v5783_v7 = vpop.permute.xlu0 %944 }
 0x391   :  { %694 = vadd.xlane.f32.xlu0 %v693_v49  ;;  %v898_v47 = vpop.permute.xlu1 %897 }
 0x392   :  { %v5747_v50 = vpop.eup %5145 }
 0x393   :  { %v5749_v51 = vpop.eup %5147  ;;  %v720_v52 = vsel %vm617_vm5, %v5747_v50, 0.0 }
 0x394   :  { %v711_v53 = vsel %vm617_vm5, %v5749_v51, 0.0  ;;  %v5755_v55 = vpop.eup %5149  ;;  %721 = vadd.xlane.f32.xlu1 %v720_v52 }
 0x395   :  { %712 = vadd.xlane.f32.xlu0 %v711_v53  ;;  %v705_v61 = vsel %vm617_vm5, %v5755_v55, 0.0  ;;  %v992_v5 = vpop.permute.xlu1 %991 }
 0x396   :  { %v5757_v57 = vpop.eup %5151 }
 0x397   :  { %v714_v58 = vsel %vm617_vm5, %v5757_v57, 0.0 }
 0x398   :  { %715 = vadd.xlane.f32.xlu1 %v714_v58 }
 0x399   :  { %706 = vadd.xlane.f32.xlu0 %v705_v61 }
 0x39a   :  { %v5763_v62 = vpop.eup %5153 }
 0x39b   :  { %v723_v1 = vsel %vm617_vm5, %v5763_v62, 0.0  ;;  %v5767_v3 = vpop.eup %5155 }
 0x39c   :  { %v717_v43 = vsel %vm617_vm5, %v5767_v3, 0.0 }
 0x39d   :  { %724 = vadd.xlane.f32.xlu0 %v723_v1 }
 0x3a1   :  { %718 = vadd.xlane.f32.xlu0 %v717_v43 }
 0x3a9   :  { %1091 = vrot.lane.b32.xlu1 %v5612_v60, %s5401_s29 }
 0x3ad   :  { %1142 = vrot.lane.b32.xlu1 %v5615_v2, %s5401_s29 }
 0x3b1   :  { %1193 = vrot.lane.b32.xlu1 %v5618_v6, %s5401_s29 }
 0x3b5   :  { %1244 = vrot.lane.b32.xlu1 %v5623_v13, %s5401_s29 }
 0x3b7   :  { %1040 = vrot.lane.b32.xlu0 %v5609_v56, %s5401_s29 }
 0x3b9   :  { %1295 = vrot.lane.b32.xlu1 %v5621_v12, %s5401_s29 }
 0x3bb   :  { %1038 = vrot.lane.b32.xlu0 %v5609_v56, %s5402_s30 }
 0x3bd   :  { %1293 = vrot.lane.b32.xlu1 %v5621_v12, %s5402_s30 }
 0x3bf   :  { %1089 = vrot.lane.b32.xlu0 %v5612_v60, %s5402_s30 }
 0x3c3   :  { %1140 = vrot.lane.b32.xlu0 %v5615_v2, %s5402_s30 }
 0x3c7   :  { %1191 = vrot.lane.b32.xlu0 %v5618_v6, %s5402_s30 }
 0x3cb   :  { %1242 = vrot.lane.b32.xlu0 %v5623_v13, %s5402_s30  ;;  %s5412_s30 = smov 24  }
 0x40d   :  { %v698_v38 = vpop.xlane.xlu1 %697 }
 0x40e   :  { %5157 = vrcp.f32 %v698_v38 }
 0x411   :  { %v692_v8 = vpop.xlane.xlu1 %691 }
 0x415   :  { %v710_v59 = vpop.xlane.xlu1 %709 }
 0x416   :  { %v701_v10 = vpop.xlane.xlu0 %700 }
 0x417   :  { %5159 = vrcp.f32 %v701_v10 }
 0x418   :  { %5161 = vrcp.f32 %v692_v8 }
 0x419   :  { %v704_v11 = vpop.xlane.xlu1 %703 }
 0x41a   :  { %v695_v14 = vpop.xlane.xlu0 %694 }
 0x41b   :  { %5163 = vrcp.f32 %v695_v14  ;;  %v5158_v18 = vpop.eup %5157 }
 0x41c   :  { %5165 = vrcp.f32 %v710_v59  ;;  %v731_v22 = vmul.f32 %v5158_v18, %v5718_v54 }
 0x41d   :  { %v722_v63 = vpop.xlane.xlu1 %721 }
 0x41e   :  { %v713_v15 = vpop.xlane.xlu0 %712 }
 0x41f   :  { %5167 = vrcp.f32 %v713_v15 }
 0x420   :  { %5169 = vrcp.f32 %v704_v11 }
 0x421   :  { %v716_v9 = vpop.xlane.xlu1 %715 }
 0x422   :  { %v707_v17 = vpop.xlane.xlu0 %706 }
 0x423   :  { %5171 = vrcp.f32 %v707_v17 }
 0x424   :  { %v5160_v16 = vpop.eup %5159  ;;  %5173 = vrcp.f32 %v722_v63 }
 0x425   :  { %v733_v23 = vmul.f32 %v5160_v16, %v5732_v19  ;;  %v5162_v24 = vpop.eup %5161 }
 0x426   :  { %v725_v21 = vpop.xlane.xlu0 %724  ;;  %v727_v20 = vmul.f32 %v5162_v24, %v5723_v0  ;;  %v1092_v0 = vpop.permute.xlu1 %1091 }
 0x427   :  { %5175 = vrcp.f32 %v725_v21  ;;  %v751_v27 = vpack.c.bf16 %v733_v23, %v731_v22 }
 0x428   :  { %v5164_v35 = vpop.eup %5163  ;;  %5177 = vrcp.f32 %v716_v9 }
 0x429   :  { %4720 = vmatmul.mubr.msk.bf16.vlgmr.msra.gmra.mxu1 %vm617_vm5, %v751_v27  ;;  %v729_v44 = vmul.f32 %v5164_v35, %v5738_v45  ;;  %v5166_v48 = vpop.eup %5165 }
 0x42a   :  { %v719_v37 = vpop.xlane.xlu0 %718  ;;  %4730 = vmatpush3.bf16.msra.mxu1 %v898_v47  ;;  %4731 = vmatprep.mubr.msk.bf16.mxu1 %vm5398_vm3, %v7243_v46  ;;  %v739_v49 = vmul.f32 %v5166_v48, %v5729_v26  ;;  %v1143_v47 = vpop.permute.xlu1 %1142 }
 0x42b   :  { %5179 = vrcp.f32 %v719_v37  ;;  %v750_v54 = vpack.c.bf16 %v729_v44, %v727_v20  ;;  %4741 = vmatprep.subr.bf16.mxu1 %v7243_v46  ;;  %v1148_v17 = vsel %vm307_vm4, %v1143_v47, 0 }
 0x42c   :  { %v5168_v19 = vpop.eup %5167 }
 0x42d   :  { %4714 = vmatmul.mubr.msk.bf16.vlgmr.msra.gmra.mxu0 %vm617_vm5, %v750_v54  ;;  %v741_v52 = vmul.f32 %v5168_v19, %v5749_v51  ;;  %v5170_v53 = vpop.eup %5169 }
 0x42e   :  { %4724 = vmatpush3.bf16.msra.mxu0 %v851_v4  ;;  %4725 = vmatprep.mubr.msk.bf16.mxu0 %vm5398_vm3, %v7243_v46  ;;  %v1041_v61 = vpop.permute.xlu0 %1040  ;;  %v735_v43 = vmul.f32 %v5170_v53, %v5740_v25 }
 0x42f   :  { %v753_v45 = vpack.c.bf16 %v741_v52, %v739_v49  ;;  %4735 = vmatprep.subr.bf16.mxu0 %v7243_v46  ;;  %v1046_v15 = vsel %vm307_vm4, %v1041_v61, 0 }
 0x430   :  { %v5172_v58 = vpop.eup %5171 }
 0x431   :  { %v5174_v1 = vpop.eup %5173  ;;  %4732 = vmatmul.mubr.msk.bf16.vlgmr.msra.gmra.mxu1 %vm617_vm5, %v753_v45  ;;  %v737_v26 = vmul.f32 %v5172_v58, %v5755_v55 }
 0x432   :  { %4742 = vmatpush3.bf16.msra.mxu1 %v992_v5  ;;  %4743 = vmatprep.mubr.msk.bf16.mxu1 %vm5398_vm3, %v7243_v46  ;;  %v747_v38 = vmul.f32 %v5174_v1, %v5747_v50  ;;  %v1039_v10 = vpop.permute.xlu0 %1038  ;;  %v1097_v50 = vsel %vm307_vm4, %v1092_v0, 0 }
 0x433   :  { %v752_v4 = vpack.c.bf16 %v737_v26, %v735_v43  ;;  %4753 = vmatprep.subr.bf16.mxu1 %v7243_v46 }
 0x434   :  { %v5176_v51 = vpop.eup %5175 }
 0x435   :  { %v749_v8 = vmul.f32 %v5176_v51, %v5763_v62  ;;  %v5178_v59 = vpop.eup %5177  ;;  %4726 = vmatmul.mubr.msk.bf16.vlgmr.msra.gmra.mxu0 %vm617_vm5, %v752_v4  ;;  %v1194_v62 = vpop.permute.xlu1 %1193 }
 0x436   :  { %4736 = vmatpush3.bf16.msra.mxu0 %v5783_v7  ;;  %4737 = vmatprep.mubr.msk.bf16.mxu0 %vm5398_vm3, %v7243_v46  ;;  %v743_v5 = vmul.f32 %v5178_v59, %v5757_v57  ;;  %v1090_v7 = vpop.permute.xlu0 %1089 }
 0x437   :  { %v755_v25 = vpack.c.bf16 %v749_v8, %v747_v38  ;;  %4747 = vmatprep.subr.bf16.mxu0 %v7243_v46 }
 0x438   :  { %v5180_v55 = vpop.eup %5179 }
 0x439   :  { %v745_v11 = vmul.f32 %v5180_v55, %v5767_v3  ;;  %4744 = vmatmul.mubr.msk.bf16.vlgmr.msra.gmra.mxu1 %vm617_vm5, %v755_v25  ;;  %v1245_v57 = vpop.permute.xlu1 %1244  ;;  %v1199_v3 = vsel %vm307_vm4, %v1194_v62, 0 }
 0x43a   :  { %4754 = vmatpush3.bf16.xpose.msra.mxu1 %v1097_v50  ;;  %4755 = vmatprep.mubr.msk.bf16.mxu1 %vm5398_vm3, %v7243_v46  ;;  %v1141_v63 = vpop.permute.xlu0 %1140  ;;  %v1250_v21 = vsel %vm307_vm4, %v1245_v57, 0 }
 0x43b   :  { %v754_v14 = vpack.c.bf16 %v745_v11, %v743_v5  ;;  %4765 = vmatprep.subr.bf16.mxu1 %v7243_v46 }
 0x43d   :  { %4738 = vmatmul.mubr.msk.bf16.vlgmr.msra.gmra.mxu0 %vm617_vm5, %v754_v14  ;;  %v1296_v18 = vpop.permute.xlu1 %1295 }
 0x43e   :  { %4748 = vmatpush3.bf16.xpose.msra.mxu0 %v1046_v15  ;;  %4749 = vmatprep.mubr.msk.bf16.mxu0 %vm5398_vm3, %v7243_v46  ;;  %v1192_v16 = vpop.permute.xlu0 %1191  ;;  %v1301_v9 = vsel %vm307_vm4, %v1296_v18, 0 }
 0x43f   :  { %4759 = vmatprep.subr.bf16.mxu0 %v7243_v46 }
 0x441   :  { %4756 = vmatmul.mubr.msk.bf16.vlgmr.msra.gmra.mxu1 %vm307_vm4, %v1090_v7  ;;  %v1294_v22 = vpop.permute.xlu1 %1293 }
 0x442   :  { %4766 = vmatpush3.bf16.xpose.msra.mxu1 %v1199_v3  ;;  %4767 = vmatprep.mubr.msk.bf16.mxu1 %vm5398_vm3, %v7243_v46  ;;  %v1243_v23 = vpop.permute.xlu0 %1242 }
 0x443   :  { %4777 = vmatprep.subr.bf16.mxu1 %v7243_v46 }
 0x445   :  { %4750 = vmatmul.mubr.msk.bf16.vlgmr.msra.gmra.mxu0 %vm307_vm4, %v1039_v10 }
 0x446   :  { %4760 = vmatpush3.bf16.xpose.msra.mxu0 %v1148_v17  ;;  %4761 = vmatprep.mubr.msk.bf16.mxu0 %vm5398_vm3, %v7243_v46 }
 0x447   :  { %4771 = vmatprep.subr.bf16.mxu0 %v7243_v46 }
 0x449   :  { %4768 = vmatmul.mubr.msk.bf16.vlgmr.msra.gmra.mxu1 %vm307_vm4, %v1192_v16 }
 0x44a   :  { %4778 = vmatpush3.bf16.xpose.msra.mxu1 %v1301_v9  ;;  %4779 = vmatprep.mubr.msk.bf16.mxu1 %vm5398_vm3, %v7243_v46 }
 0x44b   :  { %4789 = vmatprep.subr.bf16.mxu1 %v7243_v46 }
 0x44d   :  { %4762 = vmatmul.mubr.msk.bf16.vlgmr.msra.gmra.mxu0 %vm307_vm4, %v1141_v63 }
 0x44e   :  { %4772 = vmatpush3.bf16.xpose.msra.mxu0 %v1250_v21  ;;  %4773 = vmatprep.mubr.msk.bf16.mxu0 %vm5398_vm3, %v7243_v46 }
 0x44f   :  { %4783 = vmatprep.subr.bf16.mxu0 %v7243_v46 }
 0x451   :  { %4780 = vmatmul.mubr.msk.bf16.vlgmr.msra.gmra.mxu1 %vm307_vm4, %v1294_v22 }
 0x452   :  { %4791 = vmatprep.mubr.msk.bf16.mxu1 %vm5398_vm3, %v7243_v46 }
 0x455   :  { %4774 = vmatmul.mubr.msk.bf16.vlgmr.msra.gmra.mxu0 %vm307_vm4, %v1243_v23 }
 0x456   :  { %4785 = vmatprep.mubr.msk.bf16.mxu0 %vm5398_vm3, %v7243_v46 }
 0x4e9   :  { %v5850_v24 = vpop.f32.mrf.mxu1 }
 0x4eb   :  { %v4721_v27 = vpop.f32.mrf.mxu1 }
 0x4ed   :  { %v5852_v35 = vpop.f32.mrf.mxu0  ;;  %v5854_v37 = vpop.f32.mrf.mxu1 }
 0x4ef   :  { %v4715_v20 = vpop.f32.mrf.mxu0  ;;  %v4722_v44 = vpop.f32.mrf.mxu1 }
 0x4f1   :  { %v5856_v48 = vpop.f32.mrf.mxu0  ;;  %v5858_v54 = vpop.f32.mrf.mxu1 }
 0x4f3   :  { %v4716_v19 = vpop.f32.mrf.mxu0  ;;  %v4733_v49 = vpop.f32.mrf.mxu1 }
 0x4f5   :  { %v5860_v52 = vpop.f32.mrf.mxu0  ;;  %v5862_v53 = vpop.f32.mrf.mxu1 }
 0x4f7   :  { %v4727_v0 = vpop.f32.mrf.mxu0  ;;  %v4734_v45 = vpop.f32.mrf.mxu1 }
 0x4f9   :  { %v5864_v58 = vpop.f32.mrf.mxu0  ;;  %v5866_v61 = vpop.f32.mrf.mxu1 }
 0x4fb   :  { %v4728_v1 = vpop.f32.mrf.mxu0  ;;  %v4745_v43 = vpop.f32.mrf.mxu1 }
 0x4fd   :  { %v5868_v26 = vpop.f32.mrf.mxu0  ;;  %v5870_v51 = vpop.f32.mrf.mxu1 }
 0x4fe   :  { %7271 = vst [vmem:[#allocation14_spill] sm:$0xff] %v5868_v26 }
 0x4ff   :  { %v4739_v4 = vpop.f32.mrf.mxu0  ;;  %v4746_v47 = vpop.f32.mrf.mxu1 }
 0x501   :  { %v5872_v38 = vpop.f32.mrf.mxu0  ;;  %v1133_v8 = vpop.f32.mrf.mxu1 }
 0x502   :  { %v5874_v59 = vmul.f32 0.35355338, %v1133_v8 }
 0x503   :  { %v4740_v10 = vpop.f32.mrf.mxu0  ;;  %v4757_v25 = vpop.f32.mrf.mxu1 }
 0x504   :  { %v1362_v55 = vsel %vm617_vm5, %v5874_v59, -inf }
 0x505   :  { %v1082_v5 = vpop.f32.mrf.mxu0  ;;  %1363 = vmax.xlane.f32.xlu0 %v1362_v55  ;;  %v1136_v11 = vpop.f32.mrf.mxu1 }
 0x506   :  { %v5878_v50 = vmul.f32 0.35355338, %v1082_v5  ;;  %v5880_v7 = vmul.f32 0.35355338, %v1136_v11 }
 0x507   :  { %v4751_v62 = vpop.f32.mrf.mxu0  ;;  %v4758_v14 = vpop.f32.mrf.mxu1 }
 0x508   :  { %v1356_v15 = vsel %vm617_vm5, %v5878_v50, -inf  ;;  %v1365_v21 = vsel %vm617_vm5, %v5880_v7, -inf }
 0x509   :  { %v1085_v57 = vpop.f32.mrf.mxu0  ;;  %1357 = vmax.xlane.f32.xlu0 %v1356_v15  ;;  %v1235_v3 = vpop.f32.mrf.mxu1 }
 0x50a   :  { %v5884_v63 = vmul.f32 0.35355338, %v1085_v57  ;;  %v5886_v16 = vmul.f32 0.35355338, %v1235_v3 }
 0x50b   :  { %v4752_v17 = vpop.f32.mrf.mxu0  ;;  %v4769_v18 = vpop.f32.mrf.mxu1 }
 0x50c   :  { %v1359_v9 = vsel %vm617_vm5, %v5884_v63, -inf  ;;  %v1374_v19 = vsel %vm617_vm5, %v5886_v16, -inf }
 0x50d   :  { %1360 = vmax.xlane.f32.xlu1 %v1359_v9  ;;  %1366 = vmax.xlane.f32.xlu0 %v1365_v21  ;;  %v1184_v22 = vpop.f32.mrf.mxu0  ;;  %v1238_v23 = vpop.f32.mrf.mxu1 }
 0x50e   :  { %v5892_v44 = vmul.f32 0.35355338, %v1184_v22  ;;  %v5898_v4 = vmul.f32 0.35355338, %v1238_v23 }
 0x50f   :  { %v4763_v27 = vpop.f32.mrf.mxu0  ;;  %v4770_v20 = vpop.f32.mrf.mxu1 }
 0x510   :  { %v1368_v10 = vsel %vm617_vm5, %v5892_v44, -inf  ;;  %v1377_v14 = vsel %vm617_vm5, %v5898_v4, -inf }
 0x511   :  { %v1187_v49 = vpop.f32.mrf.mxu0  ;;  %1375 = vmax.xlane.f32.xlu1 %v1374_v19  ;;  %v1337_v0 = vpop.f32.mrf.mxu1 }
 0x512   :  { %v5896_v45 = vmul.f32 0.35355338, %v1187_v49  ;;  %v5900_v47 = vmul.f32 0.35355338, %v1337_v0 }
 0x513   :  { %v4764_v1 = vpop.f32.mrf.mxu0  ;;  %v4781_v43 = vpop.f32.mrf.mxu1 }
 0x514   :  { %v1371_v8 = vsel %vm617_vm5, %v5896_v45, -inf  ;;  %v1386_v15 = vsel %vm617_vm5, %v5900_v47, -inf }
 0x515   :  { %1372 = vmax.xlane.f32.xlu0 %v1371_v8  ;;  %1369 = vmax.xlane.f32.xlu1 %v1368_v10  ;;  %v1286_v25 = vpop.f32.mrf.mxu0  ;;  %v1340_v55 = vpop.f32.mrf.mxu1 }
 0x516   :  { %v5906_v62 = vmul.f32 0.35355338, %v1286_v25  ;;  %v5914_v18 = vmul.f32 0.35355338, %v1340_v55 }
 0x517   :  { %v4775_v5 = vpop.f32.mrf.mxu0  ;;  %v4782_v11 = vpop.f32.mrf.mxu1 }
 0x518   :  { %v1380_v9 = vsel %vm617_vm5, %v5906_v62, -inf  ;;  %v1389_v22 = vsel %vm617_vm5, %v5914_v18, -inf }
 0x519   :  { %1378 = vmax.xlane.f32.xlu0 %v1377_v14  ;;  %1387 = vmax.xlane.f32.xlu1 %v1386_v15  ;;  %v1289_v57 = vpop.f32.mrf.mxu0 }
 0x51a   :  { %v5912_v3 = vmul.f32 0.35355338, %v1289_v57 }
 0x51b   :  { %v4776_v17 = vpop.f32.mrf.mxu0 }
 0x51c   :  { %v1383_v21 = vsel %vm617_vm5, %v5912_v3, -inf }
 0x51d   :  { %1381 = vmax.xlane.f32.xlu1 %v1380_v9  ;;  %1384 = vmax.xlane.f32.xlu0 %v1383_v21 }
 0x521   :  { %1390 = vmax.xlane.f32.xlu0 %v1389_v22 }
 0x52e   :  { %1494 = vrot.lane.b32.xlu1 %v5609_v56, %s5403_s1 }
 0x532   :  { %1588 = vrot.lane.b32.xlu1 %v5615_v2, %s5403_s1 }
 0x536   :  { %1635 = vrot.lane.b32.xlu1 %v5618_v6, %s5403_s1 }
 0x537   :  { %1541 = vrot.lane.b32.xlu0 %v5612_v60, %s5403_s1 }
 0x53a   :  { %1729 = vrot.lane.b32.xlu1 %v5621_v12, %s5403_s1 }
 0x53b   :  { %1682 = vrot.lane.b32.xlu0 %v5623_v13, %s5403_s1 }
 0x58e   :  { %v1364_v23 = vpop.xlane.xlu0 %1363 }
 0x58f   :  { %v1394_v27 = vsub.f32 %v5874_v59, %v1364_v23 }
 0x591   :  { %v1408_v20 = vmul.f32 1.442695, %v1394_v27 }
 0x592   :  { %v1358_v19 = vpop.xlane.xlu0 %1357 }
 0x593   :  { %5181 = vpow2.f32 %v1408_v20  ;;  %v1392_v49 = vsub.f32 %v5878_v50, %v1358_v19 }
 0x595   :  { %v1404_v0 = vmul.f32 1.442695, %v1392_v49 }
 0x596   :  { %v1361_v1 = vpop.xlane.xlu1 %1360  ;;  %v1367_v43 = vpop.xlane.xlu0 %1366 }
 0x597   :  { %5183 = vpow2.f32 %v1404_v0  ;;  %v1393_v8 = vsub.f32 %v5884_v63, %v1361_v1  ;;  %v1395_v10 = vsub.f32 %v5880_v7, %v1367_v43 }
 0x599   :  { %v1410_v25 = vmul.f32 1.442695, %v1395_v10  ;;  %v1406_v55 = vmul.f32 1.442695, %v1393_v8 }
 0x59a   :  { %v1376_v5 = vpop.xlane.xlu1 %1375 }
 0x59b   :  { %v1398_v11 = vsub.f32 %v5886_v16, %v1376_v5  ;;  %5185 = vpow2.f32 %v1410_v25 }
 0x59c   :  { %5187 = vpow2.f32 %v1406_v55 }
 0x59d   :  { %v1416_v59 = vmul.f32 1.442695, %v1398_v11 }
 0x59e   :  { %v1370_v14 = vpop.xlane.xlu1 %1369  ;;  %v1373_v15 = vpop.xlane.xlu0 %1372 }
 0x59f   :  { %5189 = vpow2.f32 %v1416_v59  ;;  %v1396_v50 = vsub.f32 %v5892_v44, %v1370_v14  ;;  %v1397_v7 = vsub.f32 %v5896_v45, %v1373_v15 }
 0x5a0   :  { %v5934_v57 = vpop.eup %5181 }
 0x5a1   :  { %v1412_v17 = vmul.f32 1.442695, %v1396_v50  ;;  %v1434_v63 = vsel %vm617_vm5, %v5934_v57, 0.0  ;;  %v1414_v19 = vmul.f32 1.442695, %v1397_v7 }
 0x5a2   :  { %v1388_v9 = vpop.xlane.xlu1 %1387  ;;  %1435 = vadd.xlane.f32.xlu1 %v1434_v63  ;;  %v1379_v21 = vpop.xlane.xlu0 %1378 }
 0x5a3   :  { %5191 = vpow2.f32 %v1412_v17  ;;  %v1402_v16 = vsub.f32 %v5900_v47, %v1388_v9  ;;  %v1399_v22 = vsub.f32 %v5898_v4, %v1379_v21 }
 0x5a4   :  { %v5941_v23 = vpop.eup %5183 }
 0x5a5   :  { %v1424_v27 = vmul.f32 1.442695, %v1402_v16  ;;  %v1418_v44 = vmul.f32 1.442695, %v1399_v22  ;;  %v1428_v20 = vsel %vm617_vm5, %v5941_v23, 0.0 }
 0x5a6   :  { %v1382_v49 = vpop.xlane.xlu1 %1381  ;;  %1429 = vadd.xlane.f32.xlu1 %v1428_v20  ;;  %v1385_v0 = vpop.xlane.xlu0 %1384 }
 0x5a7   :  { %5193 = vpow2.f32 %v1424_v27  ;;  %v1400_v45 = vsub.f32 %v5906_v62, %v1382_v49  ;;  %v1401_v4 = vsub.f32 %v5912_v3, %v1385_v0 }
 0x5a8   :  { %5195 = vpow2.f32 %v1418_v44  ;;  %v5946_v1 = vpop.eup %5185 }
 0x5a9   :  { %v1420_v47 = vmul.f32 1.442695, %v1400_v45  ;;  %5197 = vpow2.f32 %v1414_v19  ;;  %v1437_v8 = vsel %vm617_vm5, %v5946_v1, 0.0  ;;  %v5951_v25 = vpop.eup %5187  ;;  %v1422_v11 = vmul.f32 1.442695, %v1401_v4 }
 0x5aa   :  { %v1495_v43 = vpop.permute.xlu1 %1494  ;;  %v1391_v10 = vpop.xlane.xlu0 %1390  ;;  %1438 = vadd.xlane.f32.xlu0 %v1437_v8  ;;  %v1431_v59 = vsel %vm617_vm5, %v5951_v25, 0.0 }
 0x5ab   :  { %5199 = vpow2.f32 %v1420_v47  ;;  %v1403_v55 = vsub.f32 %v5914_v18, %v1391_v10  ;;  %4784 = vmatpush3.bf16.msra.mxu0 %v1495_v43 }
 0x5ac   :  { %v5954_v62 = vpop.eup %5189  ;;  %4795 = vmatprep.subr.bf16.mxu0 %v7243_v46 }
 0x5ad   :  { %v1426_v5 = vmul.f32 1.442695, %v1403_v55  ;;  %v1446_v3 = vsel %vm617_vm5, %v5954_v62, 0.0 }
 0x5ae   :  { %1447 = vadd.xlane.f32.xlu1 %v1446_v3  ;;  %v1542_v14 = vpop.permute.xlu0 %1541  ;;  %1432 = vadd.xlane.f32.xlu0 %v1431_v59  ;;  %v1589_v49 = vpop.permute.xlu1 %1588 }
 0x5af   :  { %5201 = vpow2.f32 %v1426_v5  ;;  %4790 = vmatpush3.bf16.msra.mxu1 %v1542_v14 }
 0x5b0   :  { %v5961_v15 = vpop.eup %5191  ;;  %4801 = vmatprep.subr.bf16.mxu1 %v7243_v46  ;;  %5203 = vpow2.f32 %v1422_v11 }
 0x5b1   :  { %v1440_v18 = vsel %vm617_vm5, %v5961_v15, 0.0 }
 0x5b2   :  { %1441 = vadd.xlane.f32.xlu1 %v1440_v18  ;;  %v1636_v0 = vpop.permute.xlu1 %1635  ;;  %v6002_v4 = vpop.permute.xlu0 %1682 }
 0x5b4   :  { %v5966_v50 = vpop.eup %5193 }
 0x5b5   :  { %v5968_v17 = vpop.eup %5195  ;;  %v1458_v63 = vsel %vm617_vm5, %v5966_v50, 0.0 }
 0x5b6   :  { %1459 = vadd.xlane.f32.xlu1 %v1458_v63  ;;  %v1449_v7 = vsel %vm617_vm5, %v5968_v17, 0.0  ;;  %v5974_v9 = vpop.eup %5197  ;;  %v1730_v45 = vpop.permute.xlu1 %1729 }
 0x5b7   :  { %1450 = vadd.xlane.f32.xlu0 %v1449_v7  ;;  %v1443_v22 = vsel %vm617_vm5, %v5974_v9, 0.0 }
 0x5b8   :  { %v5976_v21 = vpop.eup %5199 }
 0x5b9   :  { %v1452_v16 = vsel %vm617_vm5, %v5976_v21, 0.0 }
 0x5ba   :  { %1453 = vadd.xlane.f32.xlu1 %v1452_v16 }
 0x5bb   :  { %1444 = vadd.xlane.f32.xlu0 %v1443_v22 }
 0x5bc   :  { %v5982_v27 = vpop.eup %5201 }
 0x5bd   :  { %v1461_v44 = vsel %vm617_vm5, %v5982_v27, 0.0  ;;  %v5986_v20 = vpop.eup %5203 }
 0x5be   :  { %v1455_v19 = vsel %vm617_vm5, %v5986_v20, 0.0 }
 0x5bf   :  { %1462 = vadd.xlane.f32.xlu0 %v1461_v44 }
 0x5c3   :  { %1456 = vadd.xlane.f32.xlu0 %v1455_v19 }
 0x5cb   :  { %1829 = vrot.lane.b32.xlu1 %v5612_v60, %s5404_s17 }
 0x5cf   :  { %1880 = vrot.lane.b32.xlu1 %v5615_v2, %s5404_s17 }
 0x5d3   :  { %1931 = vrot.lane.b32.xlu1 %v5618_v6, %s5404_s17 }
 0x5d7   :  { %1982 = vrot.lane.b32.xlu1 %v5623_v13, %s5404_s17 }
 0x5d9   :  { %1778 = vrot.lane.b32.xlu0 %v5609_v56, %s5404_s17 }
 0x5db   :  { %2033 = vrot.lane.b32.xlu1 %v5621_v12, %s5404_s17 }
 0x5dd   :  { %1776 = vrot.lane.b32.xlu0 %v5609_v56, %s5405_s18 }
 0x5df   :  { %2031 = vrot.lane.b32.xlu1 %v5621_v12, %s5405_s18 }
 0x5e1   :  { %1827 = vrot.lane.b32.xlu0 %v5612_v60, %s5405_s18 }
 0x5e5   :  { %1878 = vrot.lane.b32.xlu0 %v5615_v2, %s5405_s18 }
 0x5e9   :  { %1929 = vrot.lane.b32.xlu0 %v5618_v6, %s5405_s18 }
 0x5ed   :  { %1980 = vrot.lane.b32.xlu0 %v5623_v13, %s5405_s18 }
 0x62b   :  { %v1436_v47 = vpop.xlane.xlu1 %1435 }
 0x62c   :  { %5205 = vrcp.f32 %v1436_v47 }
 0x62f   :  { %v1430_v43 = vpop.xlane.xlu1 %1429 }
 0x633   :  { %v1439_v8 = vpop.xlane.xlu0 %1438 }
 0x634   :  { %5207 = vrcp.f32 %v1439_v8 }
 0x635   :  { %5209 = vrcp.f32 %v1430_v43 }
 0x637   :  { %v1448_v10 = vpop.xlane.xlu1 %1447  ;;  %v1433_v55 = vpop.xlane.xlu0 %1432 }
 0x638   :  { %5211 = vrcp.f32 %v1433_v55 }
 0x639   :  { %5213 = vrcp.f32 %v1448_v10  ;;  %v5206_v3 = vpop.eup %5205 }
 0x63a   :  { %v1469_v18 = vmul.f32 %v5206_v3, %v5934_v57 }
 0x63b   :  { %v1442_v5 = vpop.xlane.xlu1 %1441 }
 0x63f   :  { %v1460_v14 = vpop.xlane.xlu1 %1459 }
 0x640   :  { %v1451_v11 = vpop.xlane.xlu0 %1450 }
 0x641   :  { %5215 = vrcp.f32 %v1451_v11  ;;  %v5208_v59 = vpop.eup %5207 }
 0x642   :  { %5217 = vrcp.f32 %v1442_v5  ;;  %v1471_v63 = vmul.f32 %v5208_v59, %v5946_v1  ;;  %v5210_v7 = vpop.eup %5209 }
 0x643   :  { %v1465_v19 = vmul.f32 %v5210_v7, %v5941_v23  ;;  %v1454_v43 = vpop.xlane.xlu1 %1453 }
 0x644   :  { %v1445_v16 = vpop.xlane.xlu0 %1444  ;;  %v1489_v22 = vpack.c.bf16 %v1471_v63, %v1469_v18 }
 0x645   :  { %5219 = vrcp.f32 %v1445_v16  ;;  %v5212_v44 = vpop.eup %5211 }
 0x646   :  { %5221 = vrcp.f32 %v1460_v14  ;;  %4792 = vmatmul.mubr.msk.bf16.vlgmr.msra.gmra.mxu1 %vm617_vm5, %v1489_v22  ;;  %v1467_v47 = vmul.f32 %v5212_v44, %v5951_v25  ;;  %v5214_v1 = vpop.eup %5213 }
 0x647   :  { %4802 = vmatpush3.bf16.msra.mxu1 %v1636_v0  ;;  %4803 = vmatprep.mubr.msk.bf16.mxu1 %vm5398_vm3, %v7243_v46  ;;  %v1477_v25 = vmul.f32 %v5214_v1, %v5954_v62  ;;  %v1830_v5 = vpop.permute.xlu1 %1829 }
 0x648   :  { %v1463_v8 = vpop.xlane.xlu0 %1462  ;;  %v1488_v57 = vpack.c.bf16 %v1467_v47, %v1465_v19  ;;  %4813 = vmatprep.subr.bf16.mxu1 %v7243_v46  ;;  %v1835_v44 = vsel %vm307_vm4, %v1830_v5, 0 }
 0x649   :  { %5223 = vrcp.f32 %v1463_v8 }
 0x64a   :  { %5225 = vrcp.f32 %v1454_v43  ;;  %4786 = vmatmul.mubr.msk.bf16.vlgmr.msra.gmra.mxu0 %vm617_vm5, %v1488_v57 }
 0x64b   :  { %4796 = vmatpush3.bf16.msra.mxu0 %v1589_v49  ;;  %4797 = vmatprep.mubr.msk.bf16.mxu0 %vm5398_vm3, %v7243_v46 }
 0x64c   :  { %v1457_v10 = vpop.xlane.xlu0 %1456  ;;  %4807 = vmatprep.subr.bf16.mxu0 %v7243_v46 }
 0x64d   :  { %5227 = vrcp.f32 %v1457_v10 }
 0x64e   :  { %v5216_v23 = vpop.eup %5215 }
 0x64f   :  { %v1479_v0 = vmul.f32 %v5216_v23, %v5968_v17  ;;  %v5218_v55 = vpop.eup %5217  ;;  %v1881_v17 = vpop.permute.xlu1 %1880 }
 0x650   :  { %v1779_v59 = vpop.permute.xlu0 %1778  ;;  %v1473_v49 = vmul.f32 %v5218_v55, %v5961_v15  ;;  %v1886_v57 = vsel %vm307_vm4, %v1881_v17, 0 }
 0x651   :  { %v1491_v3 = vpack.c.bf16 %v1479_v0, %v1477_v25  ;;  %v1784_v43 = vsel %vm307_vm4, %v1779_v59, 0 }
 0x652   :  { %v5220_v11 = vpop.eup %5219 }
 0x653   :  { %4804 = vmatmul.mubr.msk.bf16.vlgmr.msra.gmra.mxu1 %vm617_vm5, %v1491_v3  ;;  %v1475_v14 = vmul.f32 %v5220_v11, %v5974_v9  ;;  %v5222_v18 = vpop.eup %5221 }
 0x654   :  { %4814 = vmatpush3.bf16.msra.mxu1 %v1730_v45  ;;  %4815 = vmatprep.mubr.msk.bf16.mxu1 %vm5398_vm3, %v7243_v46  ;;  %v1485_v7 = vmul.f32 %v5222_v18, %v5966_v50  ;;  %v1777_v15 = vpop.permute.xlu0 %1776 }
 0x655   :  { %v1490_v63 = vpack.c.bf16 %v1475_v14, %v1473_v49  ;;  %4825 = vmatprep.subr.bf16.mxu1 %v7243_v46 }
 0x656   :  { %v5224_v62 = vpop.eup %5223 }
 0x657   :  { %4798 = vmatmul.mubr.msk.bf16.vlgmr.msra.gmra.mxu0 %vm617_vm5, %v1490_v63  ;;  %v1487_v16 = vmul.f32 %v5224_v62, %v5982_v27  ;;  %v5226_v22 = vpop.eup %5225  ;;  %v1932_v27 = vpop.permute.xlu1 %1931 }
 0x658   :  { %4808 = vmatpush3.bf16.msra.mxu0 %v6002_v4  ;;  %4809 = vmatprep.mubr.msk.bf16.mxu0 %vm5398_vm3, %v7243_v46  ;;  %v1481_v19 = vmul.f32 %v5226_v22, %v5976_v21  ;;  %v1828_v47 = vpop.permute.xlu0 %1827 }
 0x659   :  { %v1493_v9 = vpack.c.bf16 %v1487_v16, %v1485_v7  ;;  %4819 = vmatprep.subr.bf16.mxu0 %v7243_v46 }
 0x65a   :  { %v5228_v45 = vpop.eup %5227 }
 0x65b   :  { %4816 = vmatmul.mubr.msk.bf16.vlgmr.msra.gmra.mxu1 %vm617_vm5, %v1493_v9  ;;  %v1483_v50 = vmul.f32 %v5228_v45, %v5986_v20  ;;  %v1983_v21 = vpop.permute.xlu1 %1982  ;;  %v1937_v20 = vsel %vm307_vm4, %v1932_v27, 0 }
 0x65c   :  { %4826 = vmatpush3.bf16.xpose.msra.mxu1 %v1835_v44  ;;  %4827 = vmatprep.mubr.msk.bf16.mxu1 %vm5398_vm3, %v7243_v46  ;;  %v1879_v8 = vpop.permute.xlu0 %1878  ;;  %v1988_v25 = vsel %vm307_vm4, %v1983_v21, 0 }
 0x65d   :  { %v1492_v4 = vpack.c.bf16 %v1483_v50, %v1481_v19  ;;  %4837 = vmatprep.subr.bf16.mxu1 %v7243_v46 }
 0x65f   :  { %4810 = vmatmul.mubr.msk.bf16.vlgmr.msra.gmra.mxu0 %vm617_vm5, %v1492_v4  ;;  %v2034_v1 = vpop.permute.xlu1 %2033 }
 0x660   :  { %4820 = vmatpush3.bf16.xpose.msra.mxu0 %v1784_v43  ;;  %4821 = vmatprep.mubr.msk.bf16.mxu0 %vm5398_vm3, %v7243_v46  ;;  %v1930_v10 = vpop.permute.xlu0 %1929  ;;  %v2039_v23 = vsel %vm307_vm4, %v2034_v1, 0 }
 0x661   :  { %4831 = vmatprep.subr.bf16.mxu0 %v7243_v46 }
 0x663   :  { %4828 = vmatmul.mubr.msk.bf16.vlgmr.msra.gmra.mxu1 %vm307_vm4, %v1828_v47  ;;  %v2032_v0 = vpop.permute.xlu1 %2031 }
 0x664   :  { %4838 = vmatpush3.bf16.xpose.msra.mxu1 %v1937_v20  ;;  %4839 = vmatprep.mubr.msk.bf16.mxu1 %vm5398_vm3, %v7243_v46  ;;  %v1981_v55 = vpop.permute.xlu0 %1980 }
 0x665   :  { %4849 = vmatprep.subr.bf16.mxu1 %v7243_v46 }
 0x667   :  { %4822 = vmatmul.mubr.msk.bf16.vlgmr.msra.gmra.mxu0 %vm307_vm4, %v1777_v15 }
 0x668   :  { %4832 = vmatpush3.bf16.xpose.msra.mxu0 %v1886_v57  ;;  %4833 = vmatprep.mubr.msk.bf16.mxu0 %vm5398_vm3, %v7243_v46 }
 0x669   :  { %4843 = vmatprep.subr.bf16.mxu0 %v7243_v46 }
 0x66b   :  { %4840 = vmatmul.mubr.msk.bf16.vlgmr.msra.gmra.mxu1 %vm307_vm4, %v1930_v10 }
 0x66c   :  { %4850 = vmatpush3.bf16.xpose.msra.mxu1 %v2039_v23  ;;  %4851 = vmatprep.mubr.msk.bf16.mxu1 %vm5398_vm3, %v7243_v46 }
 0x66d   :  { %4861 = vmatprep.subr.bf16.mxu1 %v7243_v46 }
 0x66f   :  { %4834 = vmatmul.mubr.msk.bf16.vlgmr.msra.gmra.mxu0 %vm307_vm4, %v1879_v8 }
 0x670   :  { %4844 = vmatpush3.bf16.xpose.msra.mxu0 %v1988_v25  ;;  %4845 = vmatprep.mubr.msk.bf16.mxu0 %vm5398_vm3, %v7243_v46 }
 0x671   :  { %4855 = vmatprep.subr.bf16.mxu0 %v7243_v46 }
 0x673   :  { %4852 = vmatmul.mubr.msk.bf16.vlgmr.msra.gmra.mxu1 %vm307_vm4, %v2032_v0 }
 0x674   :  { %4863 = vmatprep.mubr.msk.bf16.mxu1 %vm5398_vm3, %v7243_v46 }
 0x677   :  { %4846 = vmatmul.mubr.msk.bf16.vlgmr.msra.gmra.mxu0 %vm307_vm4, %v1981_v55 }
 0x678   :  { %4857 = vmatprep.mubr.msk.bf16.mxu0 %vm5398_vm3, %v7243_v46 }
 0x706   :  { %v6069_v5 = vpop.f32.mrf.mxu1 }
 0x708   :  { %v4793_v3 = vpop.f32.mrf.mxu1 }
 0x70a   :  { %v6071_v11 = vpop.f32.mrf.mxu0  ;;  %v6073_v59 = vpop.f32.mrf.mxu1 }
 0x70c   :  { %v4787_v14 = vpop.f32.mrf.mxu0  ;;  %v4794_v18 = vpop.f32.mrf.mxu1 }
 0x70e   :  { %v6077_v63 = vpop.f32.mrf.mxu0 }
 0x710   :  { %v4788_v17 = vpop.f32.mrf.mxu0 }
 0x713   :  { %v6081_v7 = vpop.f32.mrf.mxu1 }
 0x715   :  { %v4805_v16 = vpop.f32.mrf.mxu1 }
 0x717   :  { %v6083_v22 = vpop.f32.mrf.mxu0  ;;  %v6085_v15 = vpop.f32.mrf.mxu1 }
 0x719   :  { %v4799_v45 = vpop.f32.mrf.mxu0  ;;  %v4806_v44 = vpop.f32.mrf.mxu1 }
 0x71b   :  { %v6089_v19 = vpop.f32.mrf.mxu0  ;;  %v6091_v50 = vpop.f32.mrf.mxu1 }
 0x71d   :  { %v4800_v4 = vpop.f32.mrf.mxu0  ;;  %v4817_v47 = vpop.f32.mrf.mxu1 }
 0x71f   :  { %v6095_v43 = vpop.f32.mrf.mxu0  ;;  %v6097_v21 = vpop.f32.mrf.mxu1 }
 0x721   :  { %v4811_v8 = vpop.f32.mrf.mxu0  ;;  %v4818_v57 = vpop.f32.mrf.mxu1 }
 0x723   :  { %v6101_v1 = vpop.f32.mrf.mxu0  ;;  %v1871_v10 = vpop.f32.mrf.mxu1 }
 0x724   :  { %v6105_v25 = vmul.f32 0.35355338, %v1871_v10 }
 0x725   :  { %v4812_v0 = vpop.f32.mrf.mxu0  ;;  %v4829_v55 = vpop.f32.mrf.mxu1 }
 0x726   :  { %v2100_v3 = vsel %vm617_vm5, %v6105_v25, -inf }
 0x727   :  { %v1820_v14 = vpop.f32.mrf.mxu0  ;;  %2101 = vmax.xlane.f32.xlu0 %v2100_v3  ;;  %v1874_v18 = vpop.f32.mrf.mxu1 }
 0x728   :  { %v6109_v17 = vmul.f32 0.35355338, %v1820_v14  ;;  %v6111_v44 = vmul.f32 0.35355338, %v1874_v18 }
 0x729   :  { %v4823_v16 = vpop.f32.mrf.mxu0  ;;  %v4830_v45 = vpop.f32.mrf.mxu1 }
 0x72a   :  { %v2094_v4 = vsel %vm617_vm5, %v6109_v17, -inf  ;;  %v2103_v14 = vsel %vm617_vm5, %v6111_v44, -inf }
 0x72b   :  { %v1823_v47 = vpop.f32.mrf.mxu0  ;;  %2095 = vmax.xlane.f32.xlu0 %v2094_v4  ;;  %v1973_v8 = vpop.f32.mrf.mxu1 }
 0x72c   :  { %v6115_v57 = vmul.f32 0.35355338, %v1823_v47  ;;  %v6117_v55 = vmul.f32 0.35355338, %v1973_v8 }
 0x72d   :  { %v4824_v10 = vpop.f32.mrf.mxu0  ;;  %v4841_v0 = vpop.f32.mrf.mxu1 }
 0x72e   :  { %v2097_v3 = vsel %vm617_vm5, %v6115_v57, -inf  ;;  %v2112_v47 = vsel %vm617_vm5, %v6117_v55, -inf }
 0x72f   :  { %2098 = vmax.xlane.f32.xlu1 %v2097_v3  ;;  %2104 = vmax.xlane.f32.xlu0 %v2103_v14  ;;  %v1922_v18 = vpop.f32.mrf.mxu0  ;;  %v1976_v16 = vpop.f32.mrf.mxu1 }
 0x730   :  { %v6123_v4 = vmul.f32 0.35355338, %v1922_v18  ;;  %v6129_v62 = vmul.f32 0.35355338, %v1976_v16 }
 0x731   :  { %v4835_v45 = vpop.f32.mrf.mxu0  ;;  %v4842_v23 = vpop.f32.mrf.mxu1 }
 0x732   :  { %v2106_v23 = vsel %vm617_vm5, %v6123_v4, -inf }
 0x733   :  { %v1925_v10 = vpop.f32.mrf.mxu0  ;;  %2113 = vmax.xlane.f32.xlu1 %v2112_v47  ;;  %v2075_v8 = vpop.f32.mrf.mxu1 }
 0x734   :  { %v6127_v0 = vmul.f32 0.35355338, %v1925_v10  ;;  %v6131_v3 = vmul.f32 0.35355338, %v2075_v8 }
 0x735   :  { %v4836_v20 = vpop.f32.mrf.mxu0  ;;  %v4853_v27 = vpop.f32.mrf.mxu1 }
 0x736   :  { %v2109_v14 = vsel %vm617_vm5, %v6127_v0, -inf  ;;  %v2115_v27 = vsel %vm617_vm5, %v6129_v62, -inf  ;;  %v2124_v20 = vsel %vm617_vm5, %v6131_v3, -inf }
 0x737   :  { %2110 = vmax.xlane.f32.xlu0 %v2109_v14  ;;  %2107 = vmax.xlane.f32.xlu1 %v2106_v23  ;;  %v2024_v18 = vpop.f32.mrf.mxu0  ;;  %v2078_v45 = vpop.f32.mrf.mxu1 }
 0x738   :  { %v6137_v10 = vmul.f32 0.35355338, %v2024_v18  ;;  %v6145_v14 = vmul.f32 0.35355338, %v2078_v45 }
 0x739   :  { %v4847_v47 = vpop.f32.mrf.mxu0  ;;  %v4854_v9 = vpop.f32.mrf.mxu1 }
 0x73a   :  { %v2118_v23 = vsel %vm617_vm5, %v6137_v10, -inf  ;;  %v2127_v18 = vsel %vm617_vm5, %v6145_v14, -inf }
 0x73b   :  { %2116 = vmax.xlane.f32.xlu0 %v2115_v27  ;;  %2125 = vmax.xlane.f32.xlu1 %v2124_v20  ;;  %v2027_v16 = vpop.f32.mrf.mxu0 }
 0x73c   :  { %v6143_v8 = vmul.f32 0.35355338, %v2027_v16 }
 0x73d   :  { %v4848_v49 = vpop.f32.mrf.mxu0 }
 0x73e   :  { %v2121_v9 = vsel %vm617_vm5, %v6143_v8, -inf }
 0x73f   :  { %2119 = vmax.xlane.f32.xlu1 %v2118_v23  ;;  %2122 = vmax.xlane.f32.xlu0 %v2121_v9 }
 0x743   :  { %2128 = vmax.xlane.f32.xlu0 %v2127_v18 }
 0x750   :  { %2232 = vrot.lane.b32.xlu1 %v5609_v56, %s5406_s19 }
 0x754   :  { %2326 = vrot.lane.b32.xlu1 %v5615_v2, %s5406_s19 }
 0x758   :  { %2373 = vrot.lane.b32.xlu1 %v5618_v6, %s5406_s19 }
 0x759   :  { %2279 = vrot.lane.b32.xlu0 %v5612_v60, %s5406_s19 }
 0x75c   :  { %2467 = vrot.lane.b32.xlu1 %v5621_v12, %s5406_s19 }
 0x75d   :  { %2420 = vrot.lane.b32.xlu0 %v5623_v13, %s5406_s19 }
 0x7b0   :  { %v2102_v49 = vpop.xlane.xlu0 %2101 }
 0x7b1   :  { %v2132_v45 = vsub.f32 %v6105_v25, %v2102_v49 }
 0x7b3   :  { %v2146_v47 = vmul.f32 1.442695, %v2132_v45 }
 0x7b4   :  { %v2096_v27 = vpop.xlane.xlu0 %2095 }
 0x7b5   :  { %5229 = vpow2.f32 %v2146_v47  ;;  %v2130_v20 = vsub.f32 %v6109_v17, %v2096_v27 }
 0x7b7   :  { %v2142_v16 = vmul.f32 1.442695, %v2130_v20 }
 0x7b8   :  { %v2099_v23 = vpop.xlane.xlu1 %2098  ;;  %v2105_v9 = vpop.xlane.xlu0 %2104 }
 0x7b9   :  { %5231 = vpow2.f32 %v2142_v16  ;;  %v2131_v18 = vsub.f32 %v6115_v57, %v2099_v23  ;;  %v2133_v46 = vsub.f32 %v6111_v44, %v2105_v9 }
 0x7bb   :  { %v2148_v41 = vmul.f32 1.442695, %v2133_v46  ;;  %v2144_v42 = vmul.f32 1.442695, %v2131_v18 }
 0x7bc   :  { %v2114_v39 = vpop.xlane.xlu1 %2113 }
 0x7bd   :  { %v2136_v40 = vsub.f32 %v6117_v55, %v2114_v39  ;;  %5233 = vpow2.f32 %v2148_v41 }
 0x7be   :  { %5235 = vpow2.f32 %v2144_v42 }
 0x7bf   :  { %v2154_v25 = vmul.f32 1.442695, %v2136_v40 }
 0x7c0   :  { %v2108_v49 = vpop.xlane.xlu1 %2107  ;;  %v2111_v45 = vpop.xlane.xlu0 %2110 }
 0x7c1   :  { %5237 = vpow2.f32 %v2154_v25  ;;  %v2134_v17 = vsub.f32 %v6123_v4, %v2108_v49  ;;  %v2135_v46 = vsub.f32 %v6127_v0, %v2111_v45 }
 0x7c2   :  { %v6165_v47 = vpop.eup %5229 }
 0x7c3   :  { %v2150_v27 = vmul.f32 1.442695, %v2134_v17  ;;  %v2172_v57 = vsel %vm617_vm5, %v6165_v47, 0.0  ;;  %v2152_v16 = vmul.f32 1.442695, %v2135_v46 }
 0x7c4   :  { %v2126_v44 = vpop.xlane.xlu1 %2125  ;;  %2173 = vadd.xlane.f32.xlu1 %v2172_v57  ;;  %v2117_v20 = vpop.xlane.xlu0 %2116  ;;  %v7272_v57 = vmov 0.0  }
 0x7c5   :  { %5239 = vpow2.f32 %v2150_v27  ;;  %v2140_v39 = vsub.f32 %v6131_v3, %v2126_v44  ;;  %v2137_v40 = vsub.f32 %v6129_v62, %v2117_v20 }
 0x7c6   :  { %v6172_v41 = vpop.eup %5231 }
 0x7c7   :  { %v2162_v42 = vmul.f32 1.442695, %v2140_v39  ;;  %v2156_v55 = vmul.f32 1.442695, %v2137_v40  ;;  %v2166_v4 = vsel %vm617_vm5, %v6172_v41, 0.0 }
 0x7c8   :  { %v2120_v23 = vpop.xlane.xlu1 %2119  ;;  %2167 = vadd.xlane.f32.xlu1 %v2166_v4  ;;  %v2123_v9 = vpop.xlane.xlu0 %2122 }
 0x7c9   :  { %5241 = vpow2.f32 %v2162_v42  ;;  %v2138_v0 = vsub.f32 %v6137_v10, %v2120_v23  ;;  %v2139_v62 = vsub.f32 %v6143_v8, %v2123_v9 }
 0x7ca   :  { %5243 = vpow2.f32 %v2156_v55  ;;  %v6177_v18 = vpop.eup %5233 }
 0x7cb   :  { %v2158_v3 = vmul.f32 1.442695, %v2138_v0  ;;  %5245 = vpow2.f32 %v2152_v16  ;;  %v2175_v49 = vsel %vm617_vm5, %v6177_v18, 0.0  ;;  %v6182_v17 = vpop.eup %5235  ;;  %v2160_v44 = vmul.f32 1.442695, %v2139_v62 }
 0x7cc   :  { %v2233_v25 = vpop.permute.xlu1 %2232  ;;  %v2129_v45 = vpop.xlane.xlu0 %2128  ;;  %2176 = vadd.xlane.f32.xlu0 %v2175_v49  ;;  %v2169_v20 = vsel %vm617_vm5, %v6182_v17, 0.0 }
 0x7cd   :  { %5247 = vpow2.f32 %v2158_v3  ;;  %v2141_v27 = vsub.f32 %v6145_v14, %v2129_v45  ;;  %4856 = vmatpush3.bf16.msra.mxu0 %v2233_v25 }
 0x7ce   :  { %v6185_v10 = vpop.eup %5237  ;;  %4867 = vmatprep.subr.bf16.mxu0 %v7272_v57 }
 0x7cf   :  { %v2164_v46 = vmul.f32 1.442695, %v2141_v27  ;;  %v2184_v8 = vsel %vm617_vm5, %v6185_v10, 0.0 }
 0x7d0   :  { %2185 = vadd.xlane.f32.xlu1 %v2184_v8  ;;  %v2280_v39 = vpop.permute.xlu0 %2279  ;;  %2170 = vadd.xlane.f32.xlu0 %v2169_v20  ;;  %v2327_v27 = vpop.permute.xlu1 %2326 }
 0x7d1   :  { %5249 = vpow2.f32 %v2164_v46  ;;  %4862 = vmatpush3.bf16.msra.mxu1 %v2280_v39 }
 0x7d2   :  { %v6192_v40 = vpop.eup %5239  ;;  %4873 = vmatprep.subr.bf16.mxu1 %v7272_v57  ;;  %5251 = vpow2.f32 %v2160_v44 }
 0x7d3   :  { %v2178_v14 = vsel %vm617_vm5, %v6192_v40, 0.0 }
 0x7d4   :  { %2179 = vadd.xlane.f32.xlu1 %v2178_v14  ;;  %v2374_v46 = vpop.permute.xlu1 %2373  ;;  %v6233_v20 = vpop.permute.xlu0 %2420 }
 0x7d6   :  { %v6197_v42 = vpop.eup %5241 }
 0x7d7   :  { %v6199_v55 = vpop.eup %5243  ;;  %v2196_v4 = vsel %vm617_vm5, %v6197_v42, 0.0 }
 0x7d8   :  { %2197 = vadd.xlane.f32.xlu1 %v2196_v4  ;;  %v2187_v16 = vsel %vm617_vm5, %v6199_v55, 0.0  ;;  %v6205_v23 = vpop.eup %5245  ;;  %v2468_v8 = vpop.permute.xlu1 %2467 }
 0x7d9   :  { %2188 = vadd.xlane.f32.xlu0 %v2187_v16  ;;  %v2181_v3 = vsel %vm617_vm5, %v6205_v23, 0.0 }
 0x7da   :  { %v6207_v9 = vpop.eup %5247 }
 0x7db   :  { %v2190_v0 = vsel %vm617_vm5, %v6207_v9, 0.0 }
 0x7dc   :  { %2191 = vadd.xlane.f32.xlu1 %v2190_v0 }
 0x7dd   :  { %2182 = vadd.xlane.f32.xlu0 %v2181_v3 }
 0x7de   :  { %v6213_v62 = vpop.eup %5249 }
 0x7df   :  { %v2199_v25 = vsel %vm617_vm5, %v6213_v62, 0.0  ;;  %v6217_v49 = vpop.eup %5251 }
 0x7e0   :  { %v2193_v45 = vsel %vm617_vm5, %v6217_v49, 0.0 }
 0x7e1   :  { %2200 = vadd.xlane.f32.xlu0 %v2199_v25 }
 0x7e5   :  { %2194 = vadd.xlane.f32.xlu0 %v2193_v45 }
 0x7ed   :  { %2567 = vrot.lane.b32.xlu1 %v5612_v60, %s5407_s20 }
 0x7f1   :  { %2618 = vrot.lane.b32.xlu1 %v5615_v2, %s5407_s20 }
 0x7f5   :  { %2669 = vrot.lane.b32.xlu1 %v5618_v6, %s5407_s20 }
 0x7f9   :  { %2720 = vrot.lane.b32.xlu1 %v5623_v13, %s5407_s20 }
 0x7fb   :  { %2516 = vrot.lane.b32.xlu0 %v5609_v56, %s5407_s20 }
 0x7fd   :  { %2771 = vrot.lane.b32.xlu1 %v5621_v12, %s5407_s20 }
 0x7ff   :  { %2514 = vrot.lane.b32.xlu0 %v5609_v56, %s5408_s21 }
 0x801   :  { %2769 = vrot.lane.b32.xlu1 %v5621_v12, %s5408_s21 }
 0x803   :  { %2565 = vrot.lane.b32.xlu0 %v5612_v60, %s5408_s21 }
 0x807   :  { %2616 = vrot.lane.b32.xlu0 %v5615_v2, %s5408_s21 }
 0x80b   :  { %2667 = vrot.lane.b32.xlu0 %v5618_v6, %s5408_s21 }
 0x80f   :  { %2718 = vrot.lane.b32.xlu0 %v5623_v13, %s5408_s21 }
 0x84d   :  { %v2174_v44 = vpop.xlane.xlu1 %2173 }
 0x84e   :  { %5253 = vrcp.f32 %v2174_v44 }
 0x851   :  { %v2168_v39 = vpop.xlane.xlu1 %2167 }
 0x855   :  { %v2177_v14 = vpop.xlane.xlu0 %2176 }
 0x856   :  { %5255 = vrcp.f32 %v2177_v14 }
 0x857   :  { %5257 = vrcp.f32 %v2168_v39 }
 0x859   :  { %v2186_v4 = vpop.xlane.xlu1 %2185  ;;  %v2171_v16 = vpop.xlane.xlu0 %2170 }
 0x85a   :  { %5259 = vrcp.f32 %v2171_v16 }
 0x85b   :  { %5261 = vrcp.f32 %v2186_v4  ;;  %v5254_v3 = vpop.eup %5253 }
 0x85c   :  { %v2207_v36 = vmul.f32 %v5254_v3, %v6165_v47 }
 0x85d   :  { %v2180_v0 = vpop.xlane.xlu1 %2179 }
 0x861   :  { %v2198_v33 = vpop.xlane.xlu1 %2197 }
 0x862   :  { %v2189_v25 = vpop.xlane.xlu0 %2188 }
 0x863   :  { %5263 = vrcp.f32 %v2189_v25  ;;  %v5256_v45 = vpop.eup %5255 }
 0x864   :  { %5265 = vrcp.f32 %v2180_v0  ;;  %v2209_v29 = vmul.f32 %v5256_v45, %v6177_v18  ;;  %v5258_v44 = vpop.eup %5257 }
 0x865   :  { %v2203_v4 = vmul.f32 %v5258_v44, %v6172_v41  ;;  %v2192_v25 = vpop.xlane.xlu1 %2191 }
 0x866   :  { %v2183_v31 = vpop.xlane.xlu0 %2182  ;;  %v2227_v14 = vpack.c.bf16 %v2209_v29, %v2207_v36 }
 0x867   :  { %5267 = vrcp.f32 %v2183_v31  ;;  %v5260_v39 = vpop.eup %5259 }
 0x868   :  { %5269 = vrcp.f32 %v2198_v33  ;;  %4864 = vmatmul.mubr.msk.bf16.vlgmr.msra.gmra.mxu1 %vm617_vm5, %v2227_v14  ;;  %v2205_v16 = vmul.f32 %v5260_v39, %v6182_v17  ;;  %v5262_v29 = vpop.eup %5261 }
 0x869   :  { %4874 = vmatpush3.bf16.msra.mxu1 %v2374_v46  ;;  %4875 = vmatprep.mubr.msk.bf16.mxu1 %vm5398_vm3, %v7272_v57  ;;  %v2215_v36 = vmul.f32 %v5262_v29, %v6185_v10  ;;  %v2568_v18 = vpop.permute.xlu1 %2567 }
 0x86a   :  { %v2201_v32 = vpop.xlane.xlu0 %2200  ;;  %v2226_v47 = vpack.c.bf16 %v2205_v16, %v2203_v4  ;;  %4885 = vmatprep.subr.bf16.mxu1 %v7272_v57  ;;  %v2573_v16 = vsel %vm307_vm4, %v2568_v18, 0 }
 0x86b   :  { %5271 = vrcp.f32 %v2201_v32 }
 0x86c   :  { %5273 = vrcp.f32 %v2192_v25  ;;  %4858 = vmatmul.mubr.msk.bf16.vlgmr.msra.gmra.mxu0 %vm617_vm5, %v2226_v47 }
 0x86d   :  { %4868 = vmatpush3.bf16.msra.mxu0 %v2327_v27  ;;  %4869 = vmatprep.mubr.msk.bf16.mxu0 %vm5398_vm3, %v7272_v57 }
 0x86e   :  { %v2195_v31 = vpop.xlane.xlu0 %2194  ;;  %4879 = vmatprep.subr.bf16.mxu0 %v7272_v57 }
 0x86f   :  { %5275 = vrcp.f32 %v2195_v31 }
 0x870   :  { %v5264_v33 = vpop.eup %5263 }
 0x871   :  { %v2217_v32 = vmul.f32 %v5264_v33, %v6199_v55  ;;  %v5266_v41 = vpop.eup %5265  ;;  %v2619_v55 = vpop.permute.xlu1 %2618 }
 0x872   :  { %v2517_v0 = vpop.permute.xlu0 %2516  ;;  %v2211_v27 = vmul.f32 %v5266_v41, %v6192_v40  ;;  %v2624_v33 = vsel %vm307_vm4, %v2619_v55, 0 }
 0x873   :  { %v2229_v17 = vpack.c.bf16 %v2217_v32, %v2215_v36  ;;  %v2522_v29 = vsel %vm307_vm4, %v2517_v0, 0 }
 0x874   :  { %v5268_v46 = vpop.eup %5267 }
 0x875   :  { %4876 = vmatmul.mubr.msk.bf16.vlgmr.msra.gmra.mxu1 %vm617_vm5, %v2229_v17  ;;  %v2213_v3 = vmul.f32 %v5268_v46, %v6205_v23  ;;  %v5270_v45 = vpop.eup %5269 }
 0x876   :  { %4886 = vmatpush3.bf16.msra.mxu1 %v2468_v8  ;;  %4887 = vmatprep.mubr.msk.bf16.mxu1 %vm5398_vm3, %v7272_v57  ;;  %v2223_v14 = vmul.f32 %v5270_v45, %v6197_v42  ;;  %v2515_v40 = vpop.permute.xlu0 %2514 }
 0x877   :  { %v2228_v44 = vpack.c.bf16 %v2213_v3, %v2211_v27  ;;  %4897 = vmatprep.subr.bf16.mxu1 %v7272_v57 }
 0x878   :  { %v5272_v10 = vpop.eup %5271 }
 0x879   :  { %4870 = vmatmul.mubr.msk.bf16.vlgmr.msra.gmra.mxu0 %vm617_vm5, %v2228_v44  ;;  %v2225_v39 = vmul.f32 %v5272_v10, %v6213_v62  ;;  %v5274_v4 = vpop.eup %5273  ;;  %v2670_v62 = vpop.permute.xlu1 %2669 }
 0x87a   :  { %4880 = vmatpush3.bf16.msra.mxu0 %v6233_v20  ;;  %4881 = vmatprep.mubr.msk.bf16.mxu0 %vm5398_vm3, %v7272_v57  ;;  %v2219_v25 = vmul.f32 %v5274_v4, %v6207_v9  ;;  %v2566_v47 = vpop.permute.xlu0 %2565 }
 0x87b   :  { %v2231_v23 = vpack.c.bf16 %v2225_v39, %v2223_v14  ;;  %4891 = vmatprep.subr.bf16.mxu0 %v7272_v57 }
 0x87c   :  { %v5276_v8 = vpop.eup %5275 }
 0x87d   :  { %4888 = vmatmul.mubr.msk.bf16.vlgmr.msra.gmra.mxu1 %vm617_vm5, %v2231_v23  ;;  %v2221_v42 = vmul.f32 %v5276_v8, %v6217_v49  ;;  %v2721_v9 = vpop.permute.xlu1 %2720  ;;  %v2675_v49 = vsel %vm307_vm4, %v2670_v62, 0 }
 0x87e   :  { %4898 = vmatpush3.bf16.xpose.msra.mxu1 %v2573_v16  ;;  %4899 = vmatprep.mubr.msk.bf16.mxu1 %vm5398_vm3, %v7272_v57  ;;  %v2617_v31 = vpop.permute.xlu0 %2616  ;;  %v2726_v18 = vsel %vm307_vm4, %v2721_v9, 0 }
 0x87f   :  { %v2230_v20 = vpack.c.bf16 %v2221_v42, %v2219_v25  ;;  %4909 = vmatprep.subr.bf16.mxu1 %v7272_v57 }
 0x881   :  { %4882 = vmatmul.mubr.msk.bf16.vlgmr.msra.gmra.mxu0 %vm617_vm5, %v2230_v20  ;;  %v2772_v36 = vpop.permute.xlu1 %2771 }
 0x882   :  { %4892 = vmatpush3.bf16.xpose.msra.mxu0 %v2522_v29  ;;  %4893 = vmatprep.mubr.msk.bf16.mxu0 %vm5398_vm3, %v7272_v57  ;;  %v2668_v32 = vpop.permute.xlu0 %2667  ;;  %v2777_v41 = vsel %vm307_vm4, %v2772_v36, 0 }
 0x883   :  { %4903 = vmatprep.subr.bf16.mxu0 %v7272_v57 }
 0x885   :  { %4900 = vmatmul.mubr.msk.bf16.vlgmr.msra.gmra.mxu1 %vm307_vm4, %v2566_v47  ;;  %v2770_v17 = vpop.permute.xlu1 %2769 }
 0x886   :  { %4910 = vmatpush3.bf16.xpose.msra.mxu1 %v2675_v49  ;;  %4911 = vmatprep.mubr.msk.bf16.mxu1 %vm5398_vm3, %v7272_v57  ;;  %v2719_v46 = vpop.permute.xlu0 %2718 }
 0x887   :  { %4921 = vmatprep.subr.bf16.mxu1 %v7272_v57 }
 0x889   :  { %4894 = vmatmul.mubr.msk.bf16.vlgmr.msra.gmra.mxu0 %vm307_vm4, %v2515_v40 }
 0x88a   :  { %4904 = vmatpush3.bf16.xpose.msra.mxu0 %v2624_v33  ;;  %4905 = vmatprep.mubr.msk.bf16.mxu0 %vm5398_vm3, %v7272_v57 }
 0x88b   :  { %4915 = vmatprep.subr.bf16.mxu0 %v7272_v57 }
 0x88d   :  { %4912 = vmatmul.mubr.msk.bf16.vlgmr.msra.gmra.mxu1 %vm307_vm4, %v2668_v32 }
 0x88e   :  { %4922 = vmatpush3.bf16.xpose.msra.mxu1 %v2777_v41  ;;  %4923 = vmatprep.mubr.msk.bf16.mxu1 %vm5398_vm3, %v7272_v57 }
 0x88f   :  { %4933 = vmatprep.subr.bf16.mxu1 %v7272_v57 }
 0x891   :  { %4906 = vmatmul.mubr.msk.bf16.vlgmr.msra.gmra.mxu0 %vm307_vm4, %v2617_v31 }
 0x892   :  { %4916 = vmatpush3.bf16.xpose.msra.mxu0 %v2726_v18  ;;  %4917 = vmatprep.mubr.msk.bf16.mxu0 %vm5398_vm3, %v7272_v57 }
 0x893   :  { %4927 = vmatprep.subr.bf16.mxu0 %v7272_v57 }
 0x895   :  { %4924 = vmatmul.mubr.msk.bf16.vlgmr.msra.gmra.mxu1 %vm307_vm4, %v2770_v17 }
 0x896   :  { %4935 = vmatprep.mubr.msk.bf16.mxu1 %vm5398_vm3, %v7272_v57 }
 0x899   :  { %4918 = vmatmul.mubr.msk.bf16.vlgmr.msra.gmra.mxu0 %vm307_vm4, %v2719_v46 }
 0x89a   :  { %4929 = vmatprep.mubr.msk.bf16.mxu0 %vm5398_vm3, %v7272_v57 }
 0x928   :  { %v6300_v0 = vpop.f32.mrf.mxu1 }
 0x92a   :  { %v4865_v27 = vpop.f32.mrf.mxu1 }
 0x92c   :  { %v6302_v3 = vpop.f32.mrf.mxu0  ;;  %v6304_v45 = vpop.f32.mrf.mxu1 }
 0x92e   :  { %v4859_v10 = vpop.f32.mrf.mxu0  ;;  %v4866_v55 = vpop.f32.mrf.mxu1 }
 0x930   :  { %v6308_v14 = vpop.f32.mrf.mxu0 }
 0x932   :  { %v4860_v4 = vpop.f32.mrf.mxu0 }
 0x935   :  { %v6312_v40 = vpop.f32.mrf.mxu1 }
 0x937   :  { %v4877_v23 = vpop.f32.mrf.mxu1 }
 0x939   :  { %v6314_v8 = vpop.f32.mrf.mxu0  ;;  %v6316_v16 = vpop.f32.mrf.mxu1 }
 0x93b   :  { %v4871_v42 = vpop.f32.mrf.mxu0  ;;  %v4878_v62 = vpop.f32.mrf.mxu1 }
 0x93d   :  { %v6320_v20 = vpop.f32.mrf.mxu0  ;;  %v6322_v47 = vpop.f32.mrf.mxu1 }
 0x93f   :  { %v4872_v9 = vpop.f32.mrf.mxu0  ;;  %v4889_v49 = vpop.f32.mrf.mxu1 }
 0x941   :  { %v6326_v31 = vpop.f32.mrf.mxu0  ;;  %v6328_v33 = vpop.f32.mrf.mxu1 }
 0x943   :  { %v4883_v32 = vpop.f32.mrf.mxu0  ;;  %v4890_v41 = vpop.f32.mrf.mxu1 }
 0x945   :  { %v6332_v18 = vpop.f32.mrf.mxu0  ;;  %v2609_v17 = vpop.f32.mrf.mxu1 }
 0x946   :  { %v6336_v27 = vmul.f32 0.35355338, %v2609_v17 }
 0x947   :  { %v4884_v10 = vpop.f32.mrf.mxu0  ;;  %v4901_v55 = vpop.f32.mrf.mxu1 }
 0x948   :  { %v2838_v4 = vsel %vm617_vm5, %v6336_v27, -inf }
 0x949   :  { %v2558_v23 = vpop.f32.mrf.mxu0  ;;  %2839 = vmax.xlane.f32.xlu0 %v2838_v4  ;;  %v2612_v42 = vpop.f32.mrf.mxu1 }
 0x94a   :  { %v6340_v62 = vmul.f32 0.35355338, %v2558_v23  ;;  %v6342_v32 = vmul.f32 0.35355338, %v2612_v42 }
 0x94b   :  { %v4895_v9 = vpop.f32.mrf.mxu0  ;;  %v4902_v49 = vpop.f32.mrf.mxu1 }
 0x94c   :  { %v2832_v41 = vsel %vm617_vm5, %v6340_v62, -inf  ;;  %v2841_v23 = vsel %vm617_vm5, %v6342_v32, -inf }
 0x94d   :  { %v2561_v46 = vpop.f32.mrf.mxu0  ;;  %2833 = vmax.xlane.f32.xlu0 %v2832_v41  ;;  %v2711_v17 = vpop.f32.mrf.mxu1 }
 0x94e   :  { %v6346_v10 = vmul.f32 0.35355338, %v2561_v46  ;;  %v6348_v29 = vmul.f32 0.35355338, %v2711_v17 }
 0x94f   :  { %v4896_v55 = vpop.f32.mrf.mxu0  ;;  %v4913_v36 = vpop.f32.mrf.mxu1 }
 0x950   :  { %v2835_v4 = vsel %vm617_vm5, %v6346_v10, -inf  ;;  %v2850_v46 = vsel %vm617_vm5, %v6348_v29, -inf }
 0x951   :  { %2836 = vmax.xlane.f32.xlu1 %v2835_v4  ;;  %2842 = vmax.xlane.f32.xlu0 %v2841_v23  ;;  %v2660_v42 = vpop.f32.mrf.mxu0  ;;  %v2714_v9 = vpop.f32.mrf.mxu1 }
 0x952   :  { %v2824_v41 = vmul.f32 0.35355338, %v2660_v42  ;;  %v6358_v34 = vmul.f32 0.35355338, %v2714_v9 }
 0x953   :  { %v4907_v49 = vpop.f32.mrf.mxu0  ;;  %v4914_v39 = vpop.f32.mrf.mxu1 }
 0x954   :  { %v2844_v39 = vsel %vm617_vm5, %v2824_v41, -inf }
 0x955   :  { %v2663_v55 = vpop.f32.mrf.mxu0  ;;  %2851 = vmax.xlane.f32.xlu1 %v2850_v46  ;;  %v2813_v36 = vpop.f32.mrf.mxu1 }
 0x956   :  { %v6356_v17 = vmul.f32 0.35355338, %v2663_v55  ;;  %v6360_v28 = vmul.f32 0.35355338, %v2813_v36 }
 0x957   :  { %v4908_v25 = vpop.f32.mrf.mxu0  ;;  %v4925_v44 = vpop.f32.mrf.mxu1 }
 0x958   :  { %v2847_v4 = vsel %vm617_vm5, %v6356_v17, -inf  ;;  %v2853_v44 = vsel %vm617_vm5, %v6358_v34, -inf  ;;  %v2862_v25 = vsel %vm617_vm5, %v6360_v28, -inf }
 0x959   :  { %2848 = vmax.xlane.f32.xlu0 %v2847_v4  ;;  %2845 = vmax.xlane.f32.xlu1 %v2844_v39  ;;  %v2762_v23 = vpop.f32.mrf.mxu0  ;;  %v2816_v42 = vpop.f32.mrf.mxu1 }
 0x95a   :  { %v6365_v30 = vmul.f32 0.35355338, %v2762_v23  ;;  %v6373_v4 = vmul.f32 0.35355338, %v2816_v42 }
 0x95b   :  { %v4919_v49 = vpop.f32.mrf.mxu0  ;;  %v4926_v46 = vpop.f32.mrf.mxu1 }
 0x95c   :  { %v2856_v39 = vsel %vm617_vm5, %v6365_v30, -inf  ;;  %v2865_v49 = vsel %vm617_vm5, %v6373_v4, -inf }
 0x95d   :  { %2854 = vmax.xlane.f32.xlu0 %v2853_v44  ;;  %2863 = vmax.xlane.f32.xlu1 %v2862_v25  ;;  %v2765_v9 = vpop.f32.mrf.mxu0 }
 0x95e   :  { %v6371_v55 = vmul.f32 0.35355338, %v2765_v9 }
 0x95f   :  { %v4920_v36 = vpop.f32.mrf.mxu0 }
 0x960   :  { %v2859_v23 = vsel %vm617_vm5, %v6371_v55, -inf }
 0x961   :  { %2857 = vmax.xlane.f32.xlu1 %v2856_v39  ;;  %2860 = vmax.xlane.f32.xlu0 %v2859_v23 }
 0x965   :  { %2866 = vmax.xlane.f32.xlu0 %v2865_v49 }
 0x972   :  { %2970 = vrot.lane.b32.xlu1 %v5609_v56, %s5409_s22 }
 0x976   :  { %3064 = vrot.lane.b32.xlu1 %v5615_v2, %s5409_s22 }
 0x97a   :  { %3111 = vrot.lane.b32.xlu1 %v5618_v6, %s5409_s22 }
 0x97b   :  { %3017 = vrot.lane.b32.xlu0 %v5612_v60, %s5409_s22 }
 0x9d2   :  { %v2840_v42 = vpop.xlane.xlu0 %2839 }
 0x9d3   :  { %v2870_v46 = vsub.f32 %v6336_v27, %v2840_v42 }
 0x9d5   :  { %v2884_v44 = vmul.f32 1.442695, %v2870_v46 }
 0x9d6   :  { %v2834_v25 = vpop.xlane.xlu0 %2833 }
 0x9d7   :  { %5277 = vpow2.f32 %v2884_v44  ;;  %v2868_v9 = vsub.f32 %v6340_v62, %v2834_v25 }
 0x9d9   :  { %v2880_v36 = vmul.f32 1.442695, %v2868_v9 }
 0x9da   :  { %v2837_v39 = vpop.xlane.xlu1 %2836  ;;  %v2843_v56 = vpop.xlane.xlu0 %2842 }
 0x9db   :  { %5279 = vpow2.f32 %v2880_v36  ;;  %v2869_v2 = vsub.f32 %v6346_v10, %v2837_v39  ;;  %v2871_v23 = vsub.f32 %v6342_v32, %v2843_v56 }
 0x9dd   :  { %v2886_v6 = vmul.f32 1.442695, %v2871_v23  ;;  %v2882_v49 = vmul.f32 1.442695, %v2869_v2 }
 0x9de   :  { %v2852_v26 = vpop.xlane.xlu1 %2851 }
 0x9df   :  { %v2874_v60 = vsub.f32 %v6348_v29, %v2852_v26  ;;  %5281 = vpow2.f32 %v2886_v6 }
 0x9e0   :  { %5283 = vpow2.f32 %v2882_v49 }
 0x9e1   :  { %v2892_v27 = vmul.f32 1.442695, %v2874_v60 }
 0x9e2   :  { %v2846_v42 = vpop.xlane.xlu1 %2845  ;;  %v2849_v46 = vpop.xlane.xlu0 %2848 }
 0x9e3   :  { %5285 = vpow2.f32 %v2892_v27  ;;  %v2872_v62 = vsub.f32 %v2824_v41, %v2846_v42  ;;  %v2873_v32 = vsub.f32 %v6356_v17, %v2849_v46 }
 0x9e4   :  { %v6394_v44 = vpop.eup %5277 }
 0x9e5   :  { %v2888_v25 = vmul.f32 1.442695, %v2872_v62  ;;  %v2910_v10 = vsel %vm617_vm5, %v6394_v44, 0.0  ;;  %v2890_v23 = vmul.f32 1.442695, %v2873_v32 }
 0x9e6   :  { %v2864_v9 = vpop.xlane.xlu1 %2863  ;;  %2911 = vadd.xlane.f32.xlu1 %v2910_v10  ;;  %v2855_v36 = vpop.xlane.xlu0 %2854 }
 0x9e7   :  { %5287 = vpow2.f32 %v2888_v25  ;;  %v2878_v26 = vsub.f32 %v6360_v28, %v2864_v9  ;;  %v2875_v29 = vsub.f32 %v6358_v34, %v2855_v36 }
 0x9e8   :  { %v6401_v39 = vpop.eup %5279 }
 0x9e9   :  { %v2900_v56 = vmul.f32 1.442695, %v2878_v26  ;;  %v2894_v41 = vmul.f32 1.442695, %v2875_v29  ;;  %v2904_v2 = vsel %vm617_vm5, %v6401_v39, 0.0 }
 0x9ea   :  { %v2858_v6 = vpop.xlane.xlu1 %2857  ;;  %2905 = vadd.xlane.f32.xlu1 %v2904_v2  ;;  %v2861_v49 = vpop.xlane.xlu0 %2860 }
 0x9eb   :  { %5289 = vpow2.f32 %v2900_v56  ;;  %v2876_v17 = vsub.f32 %v6365_v30, %v2858_v6  ;;  %v2877_v34 = vsub.f32 %v6371_v55, %v2861_v49 }
 0x9ec   :  { %5291 = vpow2.f32 %v2894_v41  ;;  %v6406_v60 = vpop.eup %5281 }
 0x9ed   :  { %v2896_v28 = vmul.f32 1.442695, %v2876_v17  ;;  %5293 = vpow2.f32 %v2890_v23  ;;  %v2913_v42 = vsel %vm617_vm5, %v6406_v60, 0.0  ;;  %v6411_v62 = vpop.eup %5283  ;;  %v2898_v32 = vmul.f32 1.442695, %v2877_v34 }
 0x9ee   :  { %v2971_v27 = vpop.permute.xlu1 %2970  ;;  %v2867_v46 = vpop.xlane.xlu0 %2866  ;;  %2914 = vadd.xlane.f32.xlu0 %v2913_v42  ;;  %v2907_v9 = vsel %vm617_vm5, %v6411_v62, 0.0 }
 0x9ef   :  { %5295 = vpow2.f32 %v2896_v28  ;;  %v2879_v25 = vsub.f32 %v6373_v4, %v2867_v46  ;;  %4928 = vmatpush3.bf16.msra.mxu0 %v2971_v27  ;;  %v7273_v46 = vpack.i.bf16 %v6073_v59, %v6069_v5  ;;  %v7277_v5 = vpack.i.bf16 %v6077_v63, %v6071_v11 }
 0x9f0   :  { %v6414_v30 = vpop.eup %5285  ;;  %4939 = vmatprep.subr.bf16.mxu0 %v7272_v57  ;;  %v7278_v59 = vpack.i.bf16 %v6308_v14, %v6302_v3 }
 0x9f1   :  { %v2902_v10 = vmul.f32 1.442695, %v2879_v25  ;;  %v2922_v55 = vsel %vm617_vm5, %v6414_v30, 0.0  ;;  %v7274_v25 = vpack.i.bf16 %v6304_v45, %v6300_v0 }
 0x9f2   :  { %2923 = vadd.xlane.f32.xlu1 %v2922_v55  ;;  %v3018_v36 = vpop.permute.xlu0 %3017  ;;  %2908 = vadd.xlane.f32.xlu0 %v2907_v9 }
 0x9f3   :  { %5297 = vpow2.f32 %v2902_v10  ;;  %4934 = vmatpush3.bf16.msra.mxu1 %v3018_v36  ;;  %v7275_v10 = vpack.i.bf16 %v6085_v15, %v6081_v7  ;;  %v7279_v7 = vpack.i.bf16 %v6089_v19, %v6083_v22  ;;  %v3065_v15 = vpop.permute.xlu1 %3064 }
 0x9f4   :  { %v6421_v26 = vpop.eup %5287  ;;  %4945 = vmatprep.subr.bf16.mxu1 %v7272_v57  ;;  %5299 = vpow2.f32 %v2898_v32 }
 0x9f5   :  { %v2916_v4 = vsel %vm617_vm5, %v6421_v26, 0.0 }
 0x9f6   :  { %2917 = vadd.xlane.f32.xlu1 %v2916_v4 }
 0x9f7   :  { %v3112_v0 = vpop.permute.xlu1 %3111 }
 0x9f8   :  { %v6426_v29 = vpop.eup %5289 }
 0x9f9   :  { %v6428_v56 = vpop.eup %5291  ;;  %v2934_v41 = vsel %vm617_vm5, %v6426_v29, 0.0 }
 0x9fa   :  { %2935 = vadd.xlane.f32.xlu1 %v2934_v41  ;;  %v2925_v2 = vsel %vm617_vm5, %v6428_v56, 0.0  ;;  %v6434_v23 = vpop.eup %5293 }
 0x9fb   :  { %2926 = vadd.xlane.f32.xlu0 %v2925_v2  ;;  %v2919_v17 = vsel %vm617_vm5, %v6434_v23, 0.0 }
 0x9fc   :  { %v6436_v6 = vpop.eup %5295 }
 0x9fd   :  { %v2928_v49 = vsel %vm617_vm5, %v6436_v6, 0.0 }
 0x9fe   :  { %2929 = vadd.xlane.f32.xlu1 %v2928_v49 }
 0x9ff   :  { %2920 = vadd.xlane.f32.xlu0 %v2919_v17 }
 0xa00   :  { %v6442_v28 = vpop.eup %5297 }
 0xa01   :  { %v2937_v34 = vsel %vm617_vm5, %v6442_v28, 0.0  ;;  %v6446_v27 = vpop.eup %5299 }
 0xa02   :  { %v2931_v42 = vsel %vm617_vm5, %v6446_v27, 0.0 }
 0xa03   :  { %2938 = vadd.xlane.f32.xlu0 %v2937_v34 }
 0xa07   :  { %2932 = vadd.xlane.f32.xlu0 %v2931_v42 }
 0xa0f   :  { %3205 = vrot.lane.b32.xlu1 %v5621_v12, %s5409_s22  ;;  %v7276_v12 = vpack.i.bf16 %v6316_v16, %v6312_v40 }
 0xa13   :  { %5049 = vrot.lane.b32.xlu1 %v7273_v46, %s5410_s23 }
 0xa17   :  { %5059 = vrot.lane.b32.xlu1 %v7274_v25, %s5411_s24 }
 0xa1b   :  { %5069 = vrot.lane.b32.xlu1 %v7275_v10, %s5410_s23 }
 0xa1d   :  { %3158 = vrot.lane.b32.xlu0 %v5623_v13, %s5409_s22  ;;  %v7280_v13 = vpack.i.bf16 %v6320_v20, %v6314_v8 }
 0xa1f   :  { %5079 = vrot.lane.b32.xlu1 %v7276_v12, %s5411_s24 }
 0xa21   :  { %5044 = vrot.lane.b32.xlu0 %v7277_v5, %s5410_s23 }
 0xa25   :  { %5054 = vrot.lane.b32.xlu0 %v7278_v59, %s5411_s24 }
 0xa29   :  { %5064 = vrot.lane.b32.xlu0 %v7279_v7, %s5410_s23 }
 0xa2d   :  { %5074 = vrot.lane.b32.xlu0 %v7280_v13, %s5411_s24 }
 0xa6f   :  { %v2912_v45 = vpop.xlane.xlu1 %2911 }
 0xa70   :  { %5301 = vrcp.f32 %v2912_v45 }
 0xa73   :  { %v2906_v11 = vpop.xlane.xlu1 %2905 }
 0xa77   :  { %v2915_v63 = vpop.xlane.xlu0 %2914 }
 0xa78   :  { %5303 = vrcp.f32 %v2915_v63 }
 0xa79   :  { %5305 = vrcp.f32 %v2906_v11 }
 0xa7b   :  { %v2924_v3 = vpop.xlane.xlu1 %2923  ;;  %v2909_v14 = vpop.xlane.xlu0 %2908 }
 0xa7c   :  { %5307 = vrcp.f32 %v2909_v14 }
 0xa7d   :  { %5309 = vrcp.f32 %v2924_v3  ;;  %v5302_v22 = vpop.eup %5301 }
 0xa7e   :  { %v2945_v8 = vmul.f32 %v5302_v22, %v6394_v44 }
 0xa7f   :  { %v2918_v40 = vpop.xlane.xlu1 %2917 }
 0xa83   :  { %v2936_v55 = vpop.xlane.xlu1 %2935 }
 0xa84   :  { %v2927_v19 = vpop.xlane.xlu0 %2926 }
 0xa85   :  { %5311 = vrcp.f32 %v2927_v19  ;;  %v5304_v16 = vpop.eup %5303 }
 0xa86   :  { %5313 = vrcp.f32 %v2918_v40  ;;  %v2947_v20 = vmul.f32 %v5304_v16, %v6406_v60  ;;  %v5306_v32 = vpop.eup %5305 }
 0xa87   :  { %v2941_v41 = vmul.f32 %v5306_v32, %v6401_v39  ;;  %v2930_v49 = vpop.xlane.xlu1 %2929 }
 0xa88   :  { %v2921_v9 = vpop.xlane.xlu0 %2920  ;;  %v2965_v36 = vpack.c.bf16 %v2947_v20, %v2945_v8 }
 0xa89   :  { %5315 = vrcp.f32 %v2921_v9  ;;  %v5308_v4 = vpop.eup %5307 }
 0xa8a   :  { %5317 = vrcp.f32 %v2936_v55  ;;  %4936 = vmatmul.mubr.msk.bf16.vlgmr.msra.gmra.mxu1 %vm617_vm5, %v2965_v36  ;;  %v2943_v2 = vmul.f32 %v5308_v4, %v6411_v62  ;;  %v5310_v60 = vpop.eup %5309  ;;  %v7281_v4 = vpack.i.bf16 %v6097_v21, %v6091_v50 }
 0xa8b   :  { %4946 = vmatpush3.bf16.msra.mxu1 %v3112_v0  ;;  %4947 = vmatprep.mubr.msk.bf16.mxu1 %vm5398_vm3, %v7272_v57  ;;  %v2953_v62 = vmul.f32 %v5310_v60, %v6414_v30  ;;  %v3206_v12 = vpop.permute.xlu1 %3205 }
 0xa8c   :  { %v2939_v17 = vpop.xlane.xlu0 %2938  ;;  %v2964_v44 = vpack.c.bf16 %v2943_v2, %v2941_v41  ;;  %4957 = vmatprep.subr.bf16.mxu1 %v7272_v57 }
 0xa8d   :  { %5319 = vrcp.f32 %v2939_v17 }
 0xa8e   :  { %5321 = vrcp.f32 %v2930_v49  ;;  %4930 = vmatmul.mubr.msk.bf16.vlgmr.msra.gmra.mxu0 %vm617_vm5, %v2964_v44  ;;  %v7282_v49 = vpack.i.bf16 %v6101_v1, %v6095_v43 }
 0xa8f   :  { %4940 = vmatpush3.bf16.msra.mxu0 %v3065_v15  ;;  %4941 = vmatprep.mubr.msk.bf16.mxu0 %vm5398_vm3, %v7272_v57 }
 0xa90   :  { %v2933_v34 = vpop.xlane.xlu0 %2932  ;;  %4951 = vmatprep.subr.bf16.mxu0 %v7272_v57 }
 0xa91   :  { %5323 = vrcp.f32 %v2933_v34 }
 0xa92   :  { %v5312_v39 = vpop.eup %5311 }
 0xa93   :  { %v2955_v42 = vmul.f32 %v5312_v39, %v6428_v56  ;;  %v5314_v46 = vpop.eup %5313 }
 0xa94   :  { %v2949_v5 = vmul.f32 %v5314_v46, %v6421_v26  ;;  %v3159_v0 = vpop.permute.xlu0 %3158 }
 0xa95   :  { %v2967_v25 = vpack.c.bf16 %v2955_v42, %v2953_v62 }
 0xa96   :  { %v5316_v10 = vpop.eup %5315 }
 0xa97   :  { %4948 = vmatmul.mubr.msk.bf16.vlgmr.msra.gmra.mxu1 %vm617_vm5, %v2967_v25  ;;  %v2951_v59 = vmul.f32 %v5316_v10, %v6434_v23  ;;  %v5318_v7 = vpop.eup %5317  ;;  %v7283_v25 = vpack.i.bf16 %v6328_v33, %v6322_v47  ;;  %v5050_v47 = vpop.permute.xlu1 %5049 }
 0xa98   :  { %4958 = vmatpush3.bf16.msra.mxu1 %v3206_v12  ;;  %4959 = vmatprep.mubr.msk.bf16.mxu1 %vm5398_vm3, %v7272_v57  ;;  %v2961_v30 = vmul.f32 %v5318_v7, %v6426_v29  ;;  %v3441_v29 = vld [vmem:[%s7229_s4 + $0x10] sm:$0xff]  ;;  %v5045_v33 = vpop.permute.xlu0 %5044 }
 0xa99   :  { %v2966_v13 = vpack.c.bf16 %v2951_v59, %v2949_v5  ;;  %v7284_v59 = vpack.i.bf16 %v6332_v18, %v6326_v31 }
 0xa9a   :  { %v5320_v15 = vpop.eup %5319 }
 0xa9b   :  { %v2963_v56 = vmul.f32 %v5320_v15, %v6442_v28  ;;  %4942 = vmatmul.mubr.msk.bf16.vlgmr.msra.gmra.mxu0 %vm617_vm5, %v2966_v13  ;;  %v5322_v45 = vpop.eup %5321  ;;  %v3442_v28 = vld [vmem:[%s7229_s4 + $0x18] sm:$0xff] }
 0xa9c   :  { %4952 = vmatpush3.bf16.msra.mxu0 %v3159_v0  ;;  %4953 = vmatprep.mubr.msk.bf16.mxu0 %vm5398_vm3, %v7272_v57  ;;  %v2957_v11 = vmul.f32 %v5322_v45, %v6436_v6  ;;  %v3444_v57 = vpack.c.bf16 %v3442_v28, %v3441_v29  ;;  %v3439_v6 = vld [vmem:[%s7229_s4] sm:$0xff]  ;;  %v5047_v29 = vunpack.i.h.bf16 %v5045_v33  ;;  %v5046_v28 = vunpack.i.l.bf16 %v5045_v33 }
 0xa9d   :  { %v2969_v26 = vpack.c.bf16 %v2963_v56, %v2961_v30  ;;  %v5060_v30 = vpop.permute.xlu1 %5059  ;;  %v5055_v56 = vpop.permute.xlu0 %5054 }
 0xa9e   :  { %v5324_v23 = vpop.eup %5323  ;;  %4963 = vmatprep.subr.bf16.mxu0 %v3444_v57 }
 0xa9f   :  { %4960 = vmatmul.mubr.msk.bf16.vlgmr.msra.gmra.mxu1 %vm617_vm5, %v2969_v26  ;;  %v2959_v63 = vmul.f32 %v5324_v23, %v6446_v27  ;;  %v3440_v27 = vld [vmem:[%s7229_s4 + $0x8] sm:$0xff]  ;;  %v5052_v23 = vunpack.i.h.bf16 %v5050_v47 }
 0xaa0   :  { %v3443_v14 = vpack.c.bf16 %v3440_v27, %v3439_v6  ;;  %v5056_v6 = vunpack.i.l.bf16 %v5055_v56 }
 0xaa1   :  { %v2968_v3 = vpack.c.bf16 %v2959_v63, %v2957_v11  ;;  %v5070_v0 = vpop.permute.xlu1 %5069  ;;  %v5065_v45 = vpop.permute.xlu0 %5064  ;;  %v5051_v11 = vunpack.i.l.bf16 %v5050_v47  ;;  %v5062_v63 = vunpack.i.h.bf16 %v5060_v30 }
 0xaa3   :  { %4954 = vmatmul.mubr.msk.bf16.vlgmr.msra.gmra.mxu0 %vm617_vm5, %v2968_v3  ;;  %v5061_v3 = vunpack.i.l.bf16 %v5060_v30 }
 0xaa4   :  { %4964 = vmatpush3.bf16.msra.mxu0 %v3444_v57  ;;  %v5057_v57 = vunpack.i.h.bf16 %v5055_v56 }
 0xaa5   :  { %4965 = vmatprep.subr.bf16.mxu0 %v3443_v14  ;;  %v5080_v26 = vpop.permute.xlu1 %5079  ;;  %v5075_v31 = vpop.permute.xlu0 %5074 }
 0xaa8   :  { %4966 = vmatpush3.bf16.msra.mxu0 %v3443_v14 }
 0xb4a   :  { %v3057_v40 = vpop.f32.mrf.mxu1 }
 0xb4c   :  { %v4937_v22 = vpop.f32.mrf.mxu1 }
 0xb4d   :  { %v3398_v22 = vsel %vm307_vm4, %v5850_v24, %v5051_v11 }
 0xb4e   :  { %v3010_v19 = vpop.f32.mrf.mxu0  ;;  %v3060_v16 = vpop.f32.mrf.mxu1 }
 0xb4f   :  { %v5083_v55 = vpack.i.bf16 %v3060_v16, %v3057_v40  ;;  %v3399_v40 = vsel %vm307_vm4, %v5854_v37, %v5052_v23 }
 0xb50   :  { %v4931_v8 = vpop.f32.mrf.mxu0  ;;  %v4938_v20 = vpop.f32.mrf.mxu1  ;;  %v3411_v16 = vsel %vm617_vm5, %v3399_v40, %v5062_v63 }
 0xb51   :  { %5084 = vrot.lane.b32.xlu1 %v5083_v55, %s5412_s30  ;;  %v3397_v8 = vsel %vm307_vm4, %v5856_v48, %v5047_v29  ;;  %v3396_v20 = vsel %vm307_vm4, %v5852_v35, %v5046_v28  ;;  %v5072_v35 = vunpack.i.h.bf16 %v5070_v0 }
 0xb52   :  { %v3013_v32 = vpop.f32.mrf.mxu0  ;;  %v3409_v37 = vsel %vm617_vm5, %v3397_v8, %v5057_v57 }
 0xb53   :  { %v5088_v9 = vpack.i.bf16 %v3013_v32, %v3010_v19  ;;  %v3410_v19 = vsel %vm617_vm5, %v3398_v22, %v5061_v3 }
 0xb54   :  { %v4932_v36 = vpop.f32.mrf.mxu0 }
 0xb55   :  { %5099 = vrot.lane.b32.xlu1 %v7281_v4, %s5410_s23  ;;  %5089 = vrot.lane.b32.xlu0 %v5088_v9, %s5412_s30  ;;  %v3408_v36 = vsel %vm617_vm5, %v3396_v20, %v5056_v6 }
 0xb57   :  { %v3151_v41 = vpop.f32.mrf.mxu1 }
 0xb59   :  { %v4949_v2 = vpop.f32.mrf.mxu1  ;;  %5094 = vrot.lane.b32.xlu0 %v7282_v49, %s5410_s23 }
 0xb5b   :  { %v3104_v17 = vpop.f32.mrf.mxu0  ;;  %v3154_v44 = vpop.f32.mrf.mxu1 }
 0xb5c   :  { %v5103_v60 = vpack.i.bf16 %v3154_v44, %v3151_v41  ;;  %v5071_v44 = vunpack.i.l.bf16 %v5070_v0 }
 0xb5d   :  { %v4943_v34 = vpop.f32.mrf.mxu0  ;;  %v4950_v39 = vpop.f32.mrf.mxu1 }
 0xb5e   :  { %5104 = vrot.lane.b32.xlu1 %v5103_v60, %s5412_s30  ;;  %v5082_v60 = vunpack.i.h.bf16 %v5080_v26  ;;  %v5081_v34 = vunpack.i.l.bf16 %v5080_v26 }
 0xb5f   :  { %v3107_v62 = vpop.f32.mrf.mxu0  ;;  %v3245_v42 = vpop.f32.mrf.mxu1 }
 0xb60   :  { %v5108_v50 = vpack.i.bf16 %v3107_v62, %v3104_v17 }
 0xb61   :  { %v4944_v21 = vpop.f32.mrf.mxu0  ;;  %v4961_v46 = vpop.f32.mrf.mxu1 }
 0xb62   :  { %5119 = vrot.lane.b32.xlu1 %v7283_v25, %s5411_s24  ;;  %5109 = vrot.lane.b32.xlu0 %v5108_v50, %s5412_s30  ;;  %v5066_v50 = vunpack.i.l.bf16 %v5065_v45  ;;  %v5077_v21 = vunpack.i.h.bf16 %v5075_v31  ;;  %v5076_v46 = vunpack.i.l.bf16 %v5075_v31 }
 0xb63   :  { %v3198_v43 = vpop.f32.mrf.mxu0  ;;  %v3248_v1 = vpop.f32.mrf.mxu1 }
 0xb64   :  { %v5128_v10 = vpack.i.bf16 %v3248_v1, %v3245_v42  ;;  %v5067_v42 = vunpack.i.h.bf16 %v5065_v45  ;;  %v3403_v1 = vsel %vm307_vm4, %v5862_v53, %v5072_v35 }
 0xb65   :  { %v4955_v12 = vpop.f32.mrf.mxu0  ;;  %v4962_v5 = vpop.f32.mrf.mxu1 }
 0xb66   :  { %5114 = vrot.lane.b32.xlu0 %v7284_v59, %s5411_s24  ;;  %5129 = vrot.lane.b32.xlu1 %v5128_v10, %s5412_s30  ;;  %v3402_v10 = vsel %vm307_vm4, %v5858_v54, %v5071_v44  ;;  %v3415_v5 = vsel %vm617_vm5, %v3403_v1, %v5082_v60  ;;  %v7286_v60 = vld [vmem:[#allocation4_spill] sm:$0xff]  ;;  %v7289_v1 = vld [vmem:[#allocation6_spill] sm:$0xff] }
 0xb67   :  { %v3201_v7 = vpop.f32.mrf.mxu0  ;;  %v3414_v12 = vsel %vm617_vm5, %v3402_v10, %v5081_v34 }
 0xb68   :  { %v5123_v13 = vpack.i.bf16 %v3201_v7, %v3198_v43 }
 0xb69   :  { %v4956_v15 = vpop.f32.mrf.mxu0 }
 0xb6a   :  { %5124 = vrot.lane.b32.xlu0 %v5123_v13, %s5412_s30  ;;  %v3401_v13 = vsel %vm307_vm4, %v5864_v58, %v5067_v42  ;;  %v3400_v15 = vsel %vm307_vm4, %v5860_v52, %v5066_v50 }
 0xb6b   :  { %v3412_v30 = vsel %vm617_vm5, %v3400_v15, %v5076_v46  ;;  %v3413_v53 = vsel %vm617_vm5, %v3401_v13, %v5077_v21 }
 0xbc3   :  { %v5085_v18 = vpop.permute.xlu1 %5084 }
 0xbc4   :  { %v5087_v27 = vunpack.i.h.bf16 %v5085_v18  ;;  %v5086_v14 = vunpack.i.l.bf16 %v5085_v18 }
 0xbc6   :  { %v3424_v24 = vsel %vm3420_vm6, %v3411_v16, %v5087_v27  ;;  %v3423_v4 = vsel %vm3420_vm6, %v3410_v19, %v5086_v14  ;;  %v7285_v19 = vld [vmem:[#allocation14_spill] sm:$0xff] }
 0xbc7   :  { %v5090_v55 = vpop.permute.xlu0 %5089  ;;  %v5100_v49 = vpop.permute.xlu1 %5099  ;;  %v3434_v48 = vpack.c.bf16 %v3424_v24, %v3423_v4 }
 0xbc8   :  { %v5092_v32 = vunpack.i.h.bf16 %v5090_v55  ;;  %v5091_v9 = vunpack.i.l.bf16 %v5090_v55  ;;  %v5102_v0 = vunpack.i.h.bf16 %v5100_v49  ;;  %v5101_v23 = vunpack.i.l.bf16 %v5100_v49  ;;  %v4483_v49 = vld [vmem:[%s7230_s5] ss:$0 sm:$0xff] }
 0xbca   :  { %v3421_v41 = vsel %vm3420_vm6, %v3408_v36, %v5091_v9  ;;  %v3422_v2 = vsel %vm3420_vm6, %v3409_v37, %v5092_v32  ;;  %v3407_v14 = vsel %vm307_vm4, %v5870_v51, %v5102_v0  ;;  %v3406_v40 = vsel %vm307_vm4, %v5866_v61, %v5101_v23  ;;  %v7291_v0 = vld [vmem:[#allocation3_spill] sm:$0xff] }
 0xbcb   :  { %v3433_v17 = vpack.c.bf16 %v3422_v2, %v3421_v41  ;;  %v5095_v39 = vpop.permute.xlu0 %5094 }
 0xbcc   :  { %v5097_v58 = vunpack.i.h.bf16 %v5095_v39  ;;  %v5096_v11 = vunpack.i.l.bf16 %v5095_v39 }
 0xbcd   :  { %4967 = vmatprep.mubr.msk.bf16.mxu0 %vm198_vm2, %v3433_v17 }
 0xbce   :  { %4968 = vmatmul.mubr.msk.bf16.vlgmr.msra.gmra.mxu0 %vm198_vm2, %v3434_v48  ;;  %v3405_v22 = vsel %vm307_vm4, %v5872_v38, %v5097_v58  ;;  %v3404_v16 = vsel %vm307_vm4, %v7285_v19, %v5096_v11  ;;  %v7292_v11 = vld [vmem:[#allocation9_spill] sm:$0xff]  ;;  %v7295_v19 = vld [vmem:[#allocation10_spill] sm:$0xff] }
 0xbd0   :  { %v5105_v62 = vpop.permute.xlu1 %5104 }
 0xbd1   :  { %v5107_v25 = vunpack.i.h.bf16 %v5105_v62  ;;  %v5106_v43 = vunpack.i.l.bf16 %v5105_v62  ;;  %v7287_v62 = vld [vmem:[#allocation2_spill] sm:$0xff] }
 0xbd3   :  { %v3428_v54 = vsel %vm3420_vm6, %v3415_v5, %v5107_v25  ;;  %v3427_v56 = vsel %vm3420_vm6, %v3414_v12, %v5106_v43  ;;  %v7288_v25 = vld [vmem:[#allocation8_spill] sm:$0xff] }
 0xbd4   :  { %v5120_v59 = vpop.permute.xlu1 %5119  ;;  %v5110_v7 = vpop.permute.xlu0 %5109  ;;  %v3436_v31 = vpack.c.bf16 %v3428_v54, %v3427_v56 }
 0xbd5   :  { %v5112_v47 = vunpack.i.h.bf16 %v5110_v7  ;;  %v5111_v33 = vunpack.i.l.bf16 %v5110_v7  ;;  %v5122_v18 = vunpack.i.h.bf16 %v5120_v59  ;;  %v5121_v29 = vunpack.i.l.bf16 %v5120_v59 }
 0xbd7   :  { %v3425_v45 = vsel %vm3420_vm6, %v3412_v30, %v5111_v33  ;;  %v3426_v26 = vsel %vm3420_vm6, %v3413_v53, %v5112_v47  ;;  %v3419_v8 = vsel %vm617_vm5, %v3407_v14, %v5122_v18  ;;  %v3418_v20 = vsel %vm617_vm5, %v3406_v40, %v5121_v29  ;;  %v7290_v30 = vld [vmem:[#allocation5_spill] sm:$0xff] }
 0xbd8   :  { %v3435_v63 = vpack.c.bf16 %v3426_v26, %v3425_v45  ;;  %v5130_v52 = vpop.permute.xlu1 %5129  ;;  %v5115_v3 = vpop.permute.xlu0 %5114 }
 0xbd9   :  { %v5132_v28 = vunpack.i.h.bf16 %v5130_v52  ;;  %v5131_v57 = vunpack.i.l.bf16 %v5130_v52  ;;  %v5117_v6 = vunpack.i.h.bf16 %v5115_v3  ;;  %v5116_v27 = vunpack.i.l.bf16 %v5115_v3  ;;  %v7293_v52 = vld [vmem:[#allocation7_spill] sm:$0xff] }
 0xbda   :  { %4971 = vmatprep.mubr.msk.bf16.mxu0 %vm198_vm2, %v3435_v63 }
 0xbdb   :  { %4972 = vmatmul.mubr.msk.bf16.gmra.mxu0 %vm198_vm2, %v3436_v31  ;;  %v3432_v36 = vsel %vm3420_vm6, %v3419_v8, %v5132_v28  ;;  %v3431_v51 = vsel %vm3420_vm6, %v3418_v20, %v5131_v57  ;;  %v3416_v37 = vsel %vm617_vm5, %v3404_v16, %v5116_v27  ;;  %v3417_v61 = vsel %vm617_vm5, %v3405_v22, %v5117_v6  ;;  %v7294_v27 = vld [vmem:[#allocation11_spill] sm:$0xff] }
 0xbdc   :  { %v5125_v55 = vpop.permute.xlu0 %5124  ;;  %v3438_v41 = vpack.c.bf16 %v3432_v36, %v3431_v51  ;;  %v7297_v36 = vld [vmem:[#allocation12_spill] sm:$0xff] }
 0xbdd   :  { %v5127_v32 = vunpack.i.h.bf16 %v5125_v55  ;;  %v5126_v9 = vunpack.i.l.bf16 %v5125_v55 }
 0xbdf   :  { %v3429_v38 = vsel %vm3420_vm6, %v3416_v37, %v5126_v9  ;;  %v3430_v24 = vsel %vm3420_vm6, %v3417_v61, %v5127_v32  ;;  %v7296_v32 = vld [vmem:[#allocation13_spill] sm:$0xff] }
 0xbe0   :  { %v3437_v4 = vpack.c.bf16 %v3430_v24, %v3429_v38 }
 0xbe2   :  { %4975 = vmatprep.mubr.msk.bf16.mxu0 %vm198_vm2, %v3437_v4 }
 0xbe3   :  { %4976 = vmatmul.mubr.msk.bf16.gmra.mxu0 %vm198_vm2, %v3438_v41 }
 0xc8e   :  { %v4969_v2 = vpop.f32.mrf.mxu0 }
 0xc8f   :  { %v3513_v48 = vadd.f32 %v4969_v2, %v4483_v49 }
 0xc90   :  { %v3504_v17 = vpop.f32.mrf.mxu0 }
 0xc91   :  { %v3505_v35 = vadd.f32 %v4483_v49, %v3504_v17  ;;  %v3553_v42 = vadd.f32 %v7287_v62, %v3513_v48 }
 0xc92   :  { %v4970_v44 = vpop.f32.mrf.mxu0 }
 0xc93   :  { %v3551_v34 = vadd.f32 %v3505_v35, %v7286_v60  ;;  %v3516_v50 = vadd.f32 %v4970_v44, %v4483_v49  ;;  %v3571_v5 = vsel %vm198_vm2, %v3553_v42, 0.0 }
 0xc94   :  { %v3507_v39 = vpop.f32.mrf.mxu0 }
 0xc95   :  { %v3508_v21 = vadd.f32 %v4483_v49, %v3507_v39  ;;  %v3565_v46 = vsel %vm198_vm2, %v3551_v34, 0.0  ;;  %v6610_v10 = vadd.f32 %v7289_v1, %v3516_v50 }
 0xc96   :  { %3566 = vadd.xlane.f32.xlu0 %v3565_v46 }
 0xc97   :  { %v3552_v43 = vadd.f32 %v3508_v21, %v7288_v25  ;;  %v3574_v47 = vsel %vm198_vm2, %v6610_v10, 0.0 }
 0xc99   :  { %v3568_v12 = vsel %vm198_vm2, %v3552_v43, 0.0 }
 0xc9a   :  { %3569 = vadd.xlane.f32.xlu1 %v3568_v12  ;;  %3572 = vadd.xlane.f32.xlu0 %v3571_v5 }
 0xc9b   :  { %v4973_v59 = vpop.f32.mrf.mxu0 }
 0xc9c   :  { %v3529_v13 = vadd.f32 %v4973_v59, %v4483_v49 }
 0xc9d   :  { %v3520_v7 = vpop.f32.mrf.mxu0 }
 0xc9e   :  { %v3521_v15 = vadd.f32 %v4483_v49, %v3520_v7  ;;  %3575 = vadd.xlane.f32.xlu0 %v3574_v47  ;;  %v6618_v45 = vadd.f32 %v7291_v0, %v3529_v13 }
 0xc9f   :  { %v4974_v33 = vpop.f32.mrf.mxu0 }
 0xca0   :  { %v3555_v53 = vadd.f32 %v3521_v15, %v7290_v30  ;;  %v3532_v54 = vadd.f32 %v4974_v33, %v4483_v49  ;;  %v3583_v28 = vsel %vm198_vm2, %v6618_v45, 0.0 }
 0xca1   :  { %v3523_v56 = vpop.f32.mrf.mxu0 }
 0xca2   :  { %v3524_v26 = vadd.f32 %v4483_v49, %v3523_v56  ;;  %v3577_v23 = vsel %vm198_vm2, %v3555_v53, 0.0  ;;  %v6623_v3 = vadd.f32 %v7293_v52, %v3532_v54 }
 0xca3   :  { %v4977_v58 = vpop.f32.mrf.mxu0  ;;  %3578 = vadd.xlane.f32.xlu1 %v3577_v23 }
 0xca4   :  { %v3556_v63 = vadd.f32 %v3524_v26, %v7292_v11  ;;  %v3545_v18 = vadd.f32 %v4977_v58, %v4483_v49  ;;  %v3586_v22 = vsel %vm198_vm2, %v6623_v3, 0.0 }
 0xca5   :  { %v3536_v31 = vpop.f32.mrf.mxu0 }
 0xca6   :  { %v3537_v29 = vadd.f32 %v4483_v49, %v3536_v31  ;;  %v3580_v57 = vsel %vm198_vm2, %v3556_v63, 0.0  ;;  %v6632_v16 = vadd.f32 %v7295_v19, %v3545_v18 }
 0xca7   :  { %v4978_v6 = vpop.f32.mrf.mxu0  ;;  %3584 = vadd.xlane.f32.xlu1 %v3583_v28  ;;  %3581 = vadd.xlane.f32.xlu0 %v3580_v57 }
 0xca8   :  { %v3559_v14 = vadd.f32 %v3537_v29, %v7294_v27  ;;  %v3548_v55 = vadd.f32 %v4978_v6, %v4483_v49  ;;  %v3595_v37 = vsel %vm198_vm2, %v6632_v16, 0.0 }
 0xca9   :  { %v3539_v40 = vpop.f32.mrf.mxu0 }
 0xcaa   :  { %v3540_v8 = vadd.f32 %v4483_v49, %v3539_v40  ;;  %v3589_v20 = vsel %vm198_vm2, %v3559_v14, 0.0  ;;  %v6639_v51 = vadd.f32 %v7297_v36, %v3548_v55 }
 0xcab   :  { %3590 = vadd.xlane.f32.xlu1 %v3589_v20  ;;  %3587 = vadd.xlane.f32.xlu0 %v3586_v22 }
 0xcac   :  { %v6636_v9 = vadd.f32 %v3540_v8, %v7296_v32  ;;  %v3598_v38 = vsel %vm198_vm2, %v6639_v51, 0.0 }
 0xcae   :  { %v3592_v61 = vsel %vm198_vm2, %v6636_v9, 0.0 }
 0xcaf   :  { %3596 = vadd.xlane.f32.xlu1 %v3595_v37  ;;  %3593 = vadd.xlane.f32.xlu0 %v3592_v61  ;;  %v3766_v37 = vld [vmem:[%s7231_s6 + $0x10] sm:$0xff] }
 0xcb3   :  { %3599 = vadd.xlane.f32.xlu0 %v3598_v38  ;;  %v3764_v38 = vld [vmem:[%s7231_s6] sm:$0xff] }
 0xd1f   :  { %v3567_v24 = vpop.xlane.xlu0 %3566 }
 0xd20   :  { %v3602_v4 = vmul.f32 0.03125, %v3567_v24  ;;  %v3765_v24 = vld [vmem:[%s7231_s6 + $0x8] sm:$0xff] }
 0xd22   :  { %v6647_v41 = vsub.f32 %v3551_v34, %v3602_v4  ;;  %v3768_v4 = vpack.c.bf16 %v3765_v24, %v3764_v38 }
 0xd23   :  { %v3570_v2 = vpop.xlane.xlu1 %3569  ;;  %v3573_v49 = vpop.xlane.xlu0 %3572 }
 0xd24   :  { %v3603_v17 = vmul.f32 0.03125, %v3570_v2  ;;  %v3604_v48 = vmul.f32 0.03125, %v3573_v49  ;;  %v3626_v35 = vmul.f32 %v6647_v41, %v6647_v41  ;;  %v3908_v2 = vld [vmem:[%s7232_s8 + $0x70] sm:$0xff]  ;;  %v3909_v49 = vld [vmem:[%s7232_s8 + $0x78] sm:$0xff] }
 0xd26   :  { %v6651_v44 = vsub.f32 %v3552_v43, %v3603_v17  ;;  %v6653_v60 = vsub.f32 %v3553_v42, %v3604_v48  ;;  %v3638_v39 = vsel %vm198_vm2, %v3626_v35, 0.0  ;;  %v3906_v17 = vld [vmem:[%s7232_s8 + $0x60] sm:$0xff]  ;;  %v3917_v48 = vpack.c.bf16 %v3909_v49, %v3908_v2  ;;  %v3907_v35 = vld [vmem:[%s7232_s8 + $0x68] sm:$0xff] }
 0xd27   :  { %3639 = vadd.xlane.f32.xlu1 %v3638_v39  ;;  %v3576_v62 = vpop.xlane.xlu0 %3575  ;;  %v3916_v39 = vpack.c.bf16 %v3907_v35, %v3906_v17  ;;  %v4491_v49 = vld [vmem:[%s7234_s11] ss:$0 sm:$0xff] }
 0xd28   :  { %v3605_v50 = vmul.f32 0.03125, %v3576_v62  ;;  %v3627_v34 = vmul.f32 %v6651_v44, %v6651_v44  ;;  %v3628_v21 = vmul.f32 %v6653_v60, %v6653_v60  ;;  %v3904_v62 = vld [vmem:[%s7232_s8 + $0x50] sm:$0xff]  ;;  %4995 = vmatprep.subr.bf16.mxu0 %v3917_v48 }
 0xd29   :  { %4996 = vmatpush3.bf16.msra.mxu0 %v3917_v48 }
 0xd2a   :  { %v6661_v46 = vsub.f32 %v6610_v10, %v3605_v50  ;;  %v3641_v25 = vsel %vm198_vm2, %v3627_v34, 0.0  ;;  %v3644_v43 = vsel %vm198_vm2, %v3628_v21, 0.0  ;;  %v3905_v50 = vld [vmem:[%s7232_s8 + $0x58] sm:$0xff]  ;;  %4997 = vmatprep.subr.bf16.mxu0 %v3916_v39  ;;  %v3902_v21 = vld [vmem:[%s7232_s8 + $0x40] sm:$0xff] }
 0xd2b   :  { %3642 = vadd.xlane.f32.xlu0 %v3641_v25  ;;  %3645 = vadd.xlane.f32.xlu1 %v3644_v43  ;;  %v3915_v34 = vpack.c.bf16 %v3905_v50, %v3904_v62  ;;  %v3903_v25 = vld [vmem:[%s7232_s8 + $0x48] sm:$0xff] }
 0xd2c   :  { %v3579_v42 = vpop.xlane.xlu1 %3578  ;;  %v3629_v12 = vmul.f32 %v6661_v46, %v6661_v46  ;;  %v3914_v43 = vpack.c.bf16 %v3903_v25, %v3902_v21 }
 0xd2d   :  { %v3606_v1 = vmul.f32 0.03125, %v3579_v42  ;;  %4998 = vmatpush3.bf16.msra.mxu0 %v3916_v39  ;;  %v3900_v42 = vld [vmem:[%s7232_s8 + $0x30] sm:$0xff] }
 0xd2e   :  { %v3647_v59 = vsel %vm198_vm2, %v3629_v12, 0.0  ;;  %4999 = vmatprep.subr.bf16.mxu0 %v3915_v34 }
 0xd2f   :  { %v6667_v5 = vsub.f32 %v3555_v53, %v3606_v1  ;;  %3648 = vadd.xlane.f32.xlu0 %v3647_v59  ;;  %v3901_v1 = vld [vmem:[%s7232_s8 + $0x38] sm:$0xff] }
 0xd30   :  { %v3585_v7 = vpop.xlane.xlu1 %3584  ;;  %v3582_v13 = vpop.xlane.xlu0 %3581  ;;  %v3913_v12 = vpack.c.bf16 %v3901_v1, %v3900_v42 }
 0xd31   :  { %v3608_v10 = vmul.f32 0.03125, %v3585_v7  ;;  %v3607_v15 = vmul.f32 0.03125, %v3582_v13  ;;  %v3630_v47 = vmul.f32 %v6667_v5, %v6667_v5  ;;  %5000 = vmatpush3.bf16.msra.mxu0 %v3915_v34 }
 0xd32   :  { %5001 = vmatprep.subr.bf16.mxu0 %v3914_v43 }
 0xd33   :  { %v6673_v33 = vsub.f32 %v6618_v45, %v3608_v10  ;;  %v6675_v30 = vsub.f32 %v3556_v63, %v3607_v15  ;;  %v3650_v54 = vsel %vm198_vm2, %v3630_v47, 0.0 }
 0xd34   :  { %v3591_v56 = vpop.xlane.xlu1 %3590  ;;  %3651 = vadd.xlane.f32.xlu1 %v3650_v54  ;;  %v3588_v53 = vpop.xlane.xlu0 %3587 }
 0xd35   :  { %v3610_v0 = vmul.f32 0.03125, %v3591_v56  ;;  %v3609_v26 = vmul.f32 0.03125, %v3588_v53  ;;  %v3632_v23 = vmul.f32 %v6673_v33, %v6673_v33  ;;  %v3631_v58 = vmul.f32 %v6675_v30, %v6675_v30  ;;  %5002 = vmatpush3.bf16.msra.mxu0 %v3914_v43 }
 0xd36   :  { %5003 = vmatprep.subr.bf16.mxu0 %v3913_v12 }
 0xd37   :  { %v6682_v11 = vsub.f32 %v3559_v14, %v3610_v0  ;;  %v6685_v45 = vsub.f32 %v6623_v3, %v3609_v26  ;;  %v3656_v63 = vsel %vm198_vm2, %v3632_v23, 0.0  ;;  %v3653_v52 = vsel %vm198_vm2, %v3631_v58, 0.0 }
 0xd38   :  { %v3597_v31 = vpop.xlane.xlu1 %3596  ;;  %3657 = vadd.xlane.f32.xlu1 %v3656_v63  ;;  %3654 = vadd.xlane.f32.xlu0 %v3653_v52  ;;  %v3594_v18 = vpop.xlane.xlu0 %3593 }
 0xd39   :  { %v3612_v29 = vmul.f32 0.03125, %v3597_v31  ;;  %v3611_v28 = vmul.f32 0.03125, %v3594_v18  ;;  %v3634_v57 = vmul.f32 %v6682_v11, %v6682_v11  ;;  %v3633_v6 = vmul.f32 %v6685_v45, %v6685_v45  ;;  %5004 = vmatpush3.bf16.msra.mxu0 %v3913_v12 }
 0xd3b   :  { %v6694_v27 = vsub.f32 %v6632_v16, %v3612_v29  ;;  %v6697_v3 = vsub.f32 %v6636_v9, %v3611_v28  ;;  %v3662_v14 = vsel %vm198_vm2, %v3634_v57, 0.0  ;;  %v3659_v40 = vsel %vm198_vm2, %v3633_v6, 0.0 }
 0xd3c   :  { %3663 = vadd.xlane.f32.xlu1 %v3662_v14  ;;  %3660 = vadd.xlane.f32.xlu0 %v3659_v40  ;;  %v3600_v22 = vpop.xlane.xlu0 %3599 }
 0xd3d   :  { %v3613_v19 = vmul.f32 0.03125, %v3600_v22  ;;  %v3636_v55 = vmul.f32 %v6694_v27, %v6694_v27  ;;  %v3635_v8 = vmul.f32 %v6697_v3, %v6697_v3 }
 0xd3f   :  { %v6706_v16 = vsub.f32 %v6639_v51, %v3613_v19  ;;  %v3668_v20 = vsel %vm198_vm2, %v3636_v55, 0.0  ;;  %v3665_v32 = vsel %vm198_vm2, %v3635_v8, 0.0  ;;  %v3767_v51 = vld [vmem:[%s7231_s6 + $0x18] sm:$0xff]  ;;  %v6759_v55 = vld [vmem:[%s7233_s10] ss:$0 sm:$0xff] }
 0xd40   :  { %3669 = vadd.xlane.f32.xlu1 %v3668_v20  ;;  %3666 = vadd.xlane.f32.xlu0 %v3665_v32  ;;  %v3769_v61 = vpack.c.bf16 %v3767_v51, %v3766_v37 }
 0xd41   :  { %v3637_v9 = vmul.f32 %v6706_v16, %v6706_v16 }
 0xd42   :  { %4979 = vmatprep.subr.bf16.mxu1 %v3769_v61 }
 0xd43   :  { %v3671_v36 = vsel %vm198_vm2, %v3637_v9, 0.0  ;;  %4980 = vmatpush3.bf16.msra.mxu1 %v3769_v61 }
 0xd44   :  { %3672 = vadd.xlane.f32.xlu0 %v3671_v36  ;;  %4981 = vmatprep.subr.bf16.mxu1 %v3768_v4 }
 0xd47   :  { %4982 = vmatpush3.bf16.msra.mxu1 %v3768_v4 }
 0xdb0   :  { %v3640_v59 = vpop.xlane.xlu1 %3639 }
 0xdb1   :  { %v3674_v7 = vmul.f32 0.03125, %v3640_v59 }
 0xdb3   :  { %v3686_v13 = vadd.f32 1e-05, %v3674_v7 }
 0xdb4   :  { %v3646_v10 = vpop.xlane.xlu1 %3645  ;;  %v3643_v15 = vpop.xlane.xlu0 %3642 }
 0xdb5   :  { %5325 = vrsqrt.f32 %v3686_v13  ;;  %v3676_v47 = vmul.f32 0.03125, %v3646_v10  ;;  %v3675_v54 = vmul.f32 0.03125, %v3643_v15 }
 0xdb7   :  { %v3688_v56 = vadd.f32 1e-05, %v3676_v47  ;;  %v3687_v53 = vadd.f32 1e-05, %v3675_v54 }
 0xdb8   :  { %v3649_v0 = vpop.xlane.xlu0 %3648 }
 0xdb9   :  { %5327 = vrsqrt.f32 %v3688_v56  ;;  %v3677_v26 = vmul.f32 0.03125, %v3649_v0 }
 0xdba   :  { %5329 = vrsqrt.f32 %v3687_v53 }
 0xdbb   :  { %v3689_v23 = vadd.f32 1e-05, %v3677_v26 }
 0xdbd   :  { %v3652_v58 = vpop.xlane.xlu1 %3651  ;;  %5331 = vrsqrt.f32 %v3689_v23 }
 0xdbe   :  { %v3678_v63 = vmul.f32 0.03125, %v3652_v58 }
 0xdc0   :  { %v3690_v52 = vadd.f32 1e-05, %v3678_v63 }
 0xdc1   :  { %v3658_v31 = vpop.xlane.xlu1 %3657  ;;  %v3655_v18 = vpop.xlane.xlu0 %3654 }
 0xdc2   :  { %5333 = vrsqrt.f32 %v3690_v52  ;;  %v3680_v29 = vmul.f32 0.03125, %v3658_v31  ;;  %v3679_v28 = vmul.f32 0.03125, %v3655_v18  ;;  %v5326_v57 = vpop.eup %5325 }
 0xdc3   :  { %v3710_v19 = vmul.f32 %v5326_v57, %v6647_v41 }
 0xdc4   :  { %v3692_v6 = vadd.f32 1e-05, %v3680_v29  ;;  %v3691_v14 = vadd.f32 1e-05, %v3679_v28 }
 0xdc5   :  { %v3664_v40 = vpop.xlane.xlu1 %3663  ;;  %v3661_v22 = vpop.xlane.xlu0 %3660  ;;  %v3728_v41 = vmul.f32 %v6759_v55, %v3710_v19 }
 0xdc6   :  { %5335 = vrsqrt.f32 %v3692_v6  ;;  %v3682_v8 = vmul.f32 0.03125, %v3664_v40  ;;  %v3681_v20 = vmul.f32 0.03125, %v3661_v22  ;;  %v5328_v32 = vpop.eup %5327 }
 0xdc7   :  { %5337 = vrsqrt.f32 %v3691_v14  ;;  %v5330_v9 = vpop.eup %5329  ;;  %v3712_v36 = vmul.f32 %v5328_v32, %v6653_v60  ;;  %v6770_v50 = vadd.f32 %v4491_v49, %v3728_v41 }
 0xdc8   :  { %v3694_v37 = vadd.f32 1e-05, %v3682_v8  ;;  %v3693_v51 = vadd.f32 1e-05, %v3681_v20  ;;  %v3711_v24 = vmul.f32 %v5330_v9, %v6651_v44  ;;  %v3898_v9 = vld [vmem:[%s7232_s8 + $0x20] sm:$0xff] }
 0xdc9   :  { %v3670_v61 = vpop.xlane.xlu1 %3669  ;;  %v3667_v38 = vpop.xlane.xlu0 %3666  ;;  %v3730_v60 = vmul.f32 %v6759_v55, %v3712_v36 }
 0xdca   :  { %5339 = vrsqrt.f32 %v3694_v37  ;;  %v3684_v4 = vmul.f32 0.03125, %v3670_v61  ;;  %v3683_v2 = vmul.f32 0.03125, %v3667_v38  ;;  %v5332_v17 = vpop.eup %5331  ;;  %v3729_v48 = vmul.f32 %v6759_v55, %v3711_v24  ;;  %v3896_v37 = vld [vmem:[%s7232_s8 + $0x10] sm:$0xff]  ;;  %v3894_v38 = vld [vmem:[%s7232_s8] sm:$0xff]  ;;  %v3895_v24 = vld [vmem:[%s7232_s8 + $0x8] sm:$0xff] }
 0xdcb   :  { %5341 = vrsqrt.f32 %v3693_v51  ;;  %v3713_v35 = vmul.f32 %v5332_v17, %v6661_v46  ;;  %v6777_v12 = vadd.f32 %v4491_v49, %v3730_v60  ;;  %v3897_v51 = vld [vmem:[%s7232_s8 + $0x18] sm:$0xff]  ;;  %v3910_v41 = vpack.c.bf16 %v3895_v24, %v3894_v38 }
 0xdcc   :  { %v3696_v39 = vadd.f32 1e-05, %v3684_v4  ;;  %v3695_v62 = vadd.f32 1e-05, %v3683_v2  ;;  %v6772_v34 = vadd.f32 %v4491_v49, %v3729_v48  ;;  %v3911_v61 = vpack.c.bf16 %v3897_v51, %v3896_v37 }
 0xdcd   :  { %v3673_v44 = vpop.xlane.xlu0 %3672  ;;  %v3731_v21 = vmul.f32 %v6759_v55, %v3713_v35 }
 0xdce   :  { %5343 = vrsqrt.f32 %v3696_v39  ;;  %v3685_v25 = vmul.f32 0.03125, %v3673_v44  ;;  %v3758_v42 = vpack.c.bf16 %v6772_v34, %v6770_v50 }
 0xdcf   :  { %v5334_v43 = vpop.eup %5333  ;;  %5345 = vrsqrt.f32 %v3695_v62  ;;  %v6779_v46 = vadd.f32 %v4491_v49, %v3731_v21 }
 0xdd0   :  { %v3697_v1 = vadd.f32 1e-05, %v3685_v25  ;;  %v3714_v59 = vmul.f32 %v5334_v43, %v6667_v5  ;;  %4983 = vmatprep.mubr.msk.bf16.mxu1 %vm198_vm2, %v3758_v42 }
 0xdd1   :  { %v3759_v7 = vpack.c.bf16 %v6779_v46, %v6777_v12 }
 0xdd2   :  { %5347 = vrsqrt.f32 %v3697_v1  ;;  %v3732_v15 = vmul.f32 %v6759_v55, %v3714_v59 }
 0xdd3   :  { %v5336_v13 = vpop.eup %5335  ;;  %4984 = vmatmul.mubr.msk.bf16.vlgmr.msra.gmra.mxu1 %vm198_vm2, %v3759_v7 }
 0xdd4   :  { %v5338_v10 = vpop.eup %5337  ;;  %v3716_v47 = vmul.f32 %v5336_v13, %v6673_v33  ;;  %v6790_v0 = vadd.f32 %v4491_v49, %v3732_v15 }
 0xdd5   :  { %v3715_v54 = vmul.f32 %v5338_v10, %v6675_v30 }
 0xdd6   :  { %v3734_v58 = vmul.f32 %v6759_v55, %v3716_v47 }
 0xdd7   :  { %v5340_v56 = vpop.eup %5339  ;;  %v3733_v53 = vmul.f32 %v6759_v55, %v3715_v54 }
 0xdd8   :  { %v5342_v5 = vpop.eup %5341  ;;  %v3718_v63 = vmul.f32 %v5340_v56, %v6682_v11  ;;  %v6802_v29 = vadd.f32 %v4491_v49, %v3734_v58 }
 0xdd9   :  { %v3717_v26 = vmul.f32 %v5342_v5, %v6685_v45  ;;  %v6793_v23 = vadd.f32 %v4491_v49, %v3733_v53 }
 0xdda   :  { %v3736_v57 = vmul.f32 %v6759_v55, %v3718_v63 }
 0xddb   :  { %v5344_v52 = vpop.eup %5343  ;;  %v3760_v33 = vpack.c.bf16 %v6793_v23, %v6790_v0  ;;  %v3735_v30 = vmul.f32 %v6759_v55, %v3717_v26 }
 0xddc   :  { %v5346_v31 = vpop.eup %5345  ;;  %v3720_v18 = vmul.f32 %v5344_v52, %v6694_v27  ;;  %v6814_v22 = vadd.f32 %v4491_v49, %v3736_v57 }
 0xddd   :  { %4987 = vmatprep.mubr.msk.bf16.mxu1 %vm198_vm2, %v3760_v33  ;;  %v6804_v45 = vadd.f32 %v4491_v49, %v3735_v30  ;;  %v3719_v28 = vmul.f32 %v5346_v31, %v6697_v3 }
 0xdde   :  { %v3738_v27 = vmul.f32 %v6759_v55, %v3720_v18 }
 0xddf   :  { %v5348_v11 = vpop.eup %5347  ;;  %v3761_v6 = vpack.c.bf16 %v6804_v45, %v6802_v29  ;;  %v3737_v14 = vmul.f32 %v6759_v55, %v3719_v28 }
 0xde0   :  { %v3721_v40 = vmul.f32 %v5348_v11, %v6706_v16  ;;  %v6821_v20 = vadd.f32 %v4491_v49, %v3738_v27 }
 0xde1   :  { %4988 = vmatmul.mubr.msk.bf16.gmra.mxu1 %vm198_vm2, %v3761_v6  ;;  %v6816_v19 = vadd.f32 %v4491_v49, %v3737_v14 }
 0xde2   :  { %v3739_v3 = vmul.f32 %v6759_v55, %v3721_v40  ;;  %v3899_v55 = vld [vmem:[%s7232_s8 + $0x28] sm:$0xff] }
 0xde3   :  { %v3762_v8 = vpack.c.bf16 %v6816_v19, %v6814_v22  ;;  %v3912_v36 = vpack.c.bf16 %v3899_v55, %v3898_v9  ;;  %v4499_v9 = vld [vmem:[%s7236_s9] ss:$0 sm:$0xff] }
 0xde4   :  { %v6823_v32 = vadd.f32 %v4491_v49, %v3739_v3  ;;  %v4492_v49 = vld [vmem:[%s7235_s7] ss:$0 sm:$0xff] }
 0xde5   :  { %4991 = vmatprep.mubr.msk.bf16.mxu1 %vm198_vm2, %v3762_v8  ;;  %5005 = vmatprep.subr.bf16.mxu0 %v3912_v36 }
 0xde6   :  { %v3763_v16 = vpack.c.bf16 %v6823_v32, %v6821_v20  ;;  %5006 = vmatpush3.bf16.msra.mxu0 %v3912_v36 }
 0xde7   :  { %5007 = vmatprep.subr.bf16.mxu0 %v3911_v61 }
 0xde9   :  { %4992 = vmatmul.mubr.msk.bf16.gmra.mxu1 %vm198_vm2, %v3763_v16 }
 0xdea   :  { %5008 = vmatpush3.bf16.msra.mxu0 %v3911_v61 }
 0xdeb   :  { %5009 = vmatprep.subr.bf16.mxu0 %v3910_v41 }
 0xdee   :  { %5010 = vmatpush3.bf16.msra.mxu0 %v3910_v41 }
 0xe93   :  { %v4985_v4 = vpop.f32.mrf.mxu1 }
 0xe94   :  { %v3838_v35 = vadd.f32 %v4985_v4, %v4492_v49 }
 0xe95   :  { %v3829_v2 = vpop.f32.mrf.mxu1 }
 0xe96   :  { %v3830_v48 = vadd.f32 %v4492_v49, %v3829_v2  ;;  %v3878_v43 = vmax.f32 %v3838_v35, 0.0 }
 0xe97   :  { %v4986_v17 = vpop.f32.mrf.mxu1 }
 0xe98   :  { %v3841_v60 = vadd.f32 %v4986_v17, %v4492_v49  ;;  %v3876_v21 = vmax.f32 %v3830_v48, 0.0 }
 0xe99   :  { %v3832_v39 = vpop.f32.mrf.mxu1 }
 0xe9a   :  { %v3833_v62 = vadd.f32 %v4492_v49, %v3832_v39  ;;  %v3879_v44 = vmax.f32 %v3841_v60, 0.0 }
 0xe9c   :  { %v3877_v25 = vmax.f32 %v3833_v62, 0.0  ;;  %v3889_v1 = vpack.c.bf16 %v3879_v44, %v3878_v43 }
 0xe9e   :  { %v3888_v42 = vpack.c.bf16 %v3877_v25, %v3876_v21 }
 0xea0   :  { %5011 = vmatprep.mubr.bf16.mxu0 %v3888_v42 }
 0xea1   :  { %v4989_v59 = vpop.f32.mrf.mxu1  ;;  %5012 = vmatmul.mubr.bf16.vlgmr.msra.gmra.mxu0 %v3889_v1 }
 0xea2   :  { %v3854_v47 = vadd.f32 %v4989_v59, %v4492_v49 }
 0xea3   :  { %v3845_v7 = vpop.f32.mrf.mxu1 }
 0xea4   :  { %v3846_v10 = vadd.f32 %v4492_v49, %v3845_v7  ;;  %v3882_v63 = vmax.f32 %v3854_v47, 0.0 }
 0xea5   :  { %v4990_v13 = vpop.f32.mrf.mxu1 }
 0xea6   :  { %v3857_v15 = vadd.f32 %v4990_v13, %v4492_v49  ;;  %v3880_v26 = vmax.f32 %v3846_v10, 0.0 }
 0xea7   :  { %v3848_v54 = vpop.f32.mrf.mxu1 }
 0xea8   :  { %v3849_v56 = vadd.f32 %v4492_v49, %v3848_v54  ;;  %v3883_v53 = vmax.f32 %v3857_v15, 0.0 }
 0xea9   :  { %v4993_v5 = vpop.f32.mrf.mxu1 }
 0xeaa   :  { %v3881_v58 = vmax.f32 %v3849_v56, 0.0  ;;  %v3891_v30 = vpack.c.bf16 %v3883_v53, %v3882_v63  ;;  %v3870_v57 = vadd.f32 %v4993_v5, %v4492_v49 }
 0xeab   :  { %v3861_v52 = vpop.f32.mrf.mxu1 }
 0xeac   :  { %v3890_v33 = vpack.c.bf16 %v3881_v58, %v3880_v26  ;;  %v3862_v18 = vadd.f32 %v4492_v49, %v3861_v52  ;;  %v3886_v3 = vmax.f32 %v3870_v57, 0.0 }
 0xead   :  { %v4994_v31 = vpop.f32.mrf.mxu1 }
 0xeae   :  { %v3873_v28 = vadd.f32 %v4994_v31, %v4492_v49  ;;  %5015 = vmatprep.mubr.bf16.mxu0 %v3890_v33  ;;  %v3884_v40 = vmax.f32 %v3862_v18, 0.0 }
 0xeaf   :  { %v3864_v11 = vpop.f32.mrf.mxu1  ;;  %5016 = vmatmul.mubr.bf16.gmra.mxu0 %v3891_v30 }
 0xeb0   :  { %v3865_v6 = vadd.f32 %v4492_v49, %v3864_v11  ;;  %v3887_v14 = vmax.f32 %v3873_v28, 0.0 }
 0xeb2   :  { %v3885_v27 = vmax.f32 %v3865_v6, 0.0  ;;  %v3893_v16 = vpack.c.bf16 %v3887_v14, %v3886_v3 }
 0xeb4   :  { %v3892_v8 = vpack.c.bf16 %v3885_v27, %v3884_v40 }
 0xeb6   :  { %5019 = vmatprep.mubr.bf16.mxu0 %v3892_v8 }
 0xeb7   :  { %5020 = vmatmul.mubr.bf16.gmra.mxu0 %v3893_v16 }
 0xf61   :  { %v5013_v55 = vpop.f32.mrf.mxu0 }
 0xf62   :  { %v3968_v36 = vadd.f32 %v5013_v55, %v4499_v9 }
 0xf63   :  { %v3959_v37 = vpop.f32.mrf.mxu0 }
 0xf64   :  { %v4008_v51 = vadd.f32 %v3968_v36, %v6777_v12  ;;  %v3960_v61 = vadd.f32 %v4499_v9, %v3959_v37 }
 0xf65   :  { %v5014_v38 = vpop.f32.mrf.mxu0 }
 0xf66   :  { %v4006_v24 = vadd.f32 %v3960_v61, %v6770_v50  ;;  %v3971_v41 = vadd.f32 %v5014_v38, %v4499_v9  ;;  %v4026_v4 = vsel %vm198_vm2, %v4008_v51, 0.0 }
 0xf67   :  { %4027 = vadd.xlane.f32.xlu1 %v4026_v4  ;;  %v3962_v2 = vpop.f32.mrf.mxu0 }
 0xf68   :  { %v4009_v49 = vadd.f32 %v3971_v41, %v6779_v46  ;;  %v3963_v17 = vadd.f32 %v4499_v9, %v3962_v2  ;;  %v4020_v35 = vsel %vm198_vm2, %v4006_v24, 0.0 }
 0xf6a   :  { %v6858_v48 = vadd.f32 %v3963_v17, %v6772_v34  ;;  %v4029_v60 = vsel %vm198_vm2, %v4009_v49, 0.0 }
 0xf6b   :  { %4030 = vadd.xlane.f32.xlu0 %v4029_v60  ;;  %4021 = vadd.xlane.f32.xlu1 %v4020_v35 }
 0xf6c   :  { %v4023_v50 = vsel %vm198_vm2, %v6858_v48, 0.0 }
 0xf6f   :  { %v5017_v12 = vpop.f32.mrf.mxu0  ;;  %4024 = vadd.xlane.f32.xlu0 %v4023_v50 }
 0xf70   :  { %v3984_v39 = vadd.f32 %v5017_v12, %v4499_v9 }
 0xf71   :  { %v3975_v62 = vpop.f32.mrf.mxu0 }
 0xf72   :  { %v4012_v44 = vadd.f32 %v3984_v39, %v6802_v29  ;;  %v3976_v46 = vadd.f32 %v4499_v9, %v3975_v62 }
 0xf73   :  { %v5018_v21 = vpop.f32.mrf.mxu0 }
 0xf74   :  { %v6866_v34 = vadd.f32 %v3976_v46, %v6790_v0  ;;  %v3987_v25 = vadd.f32 %v5018_v21, %v4499_v9  ;;  %v4038_v43 = vsel %vm198_vm2, %v4012_v44, 0.0 }
 0xf75   :  { %4039 = vadd.xlane.f32.xlu1 %v4038_v43  ;;  %v3978_v42 = vpop.f32.mrf.mxu0 }
 0xf76   :  { %v4013_v1 = vadd.f32 %v3987_v25, %v6804_v45  ;;  %v3979_v59 = vadd.f32 %v4499_v9, %v3978_v42  ;;  %v4032_v29 = vsel %vm198_vm2, %v6866_v34, 0.0 }
 0xf77   :  { %v5021_v7 = vpop.f32.mrf.mxu0 }
 0xf78   :  { %v6871_v13 = vadd.f32 %v3979_v59, %v6793_v23  ;;  %v4041_v10 = vsel %vm198_vm2, %v4013_v1, 0.0  ;;  %v4000_v15 = vadd.f32 %v5021_v7, %v4499_v9 }
 0xf79   :  { %4042 = vadd.xlane.f32.xlu0 %v4041_v10  ;;  %4033 = vadd.xlane.f32.xlu1 %v4032_v29  ;;  %v3991_v0 = vpop.f32.mrf.mxu0 }
 0xf7a   :  { %v3992_v47 = vadd.f32 %v4499_v9, %v3991_v0  ;;  %v4035_v45 = vsel %vm198_vm2, %v6871_v13, 0.0  ;;  %v6882_v53 = vadd.f32 %v4000_v15, %v6821_v20 }
 0xf7b   :  { %v5022_v54 = vpop.f32.mrf.mxu0 }
 0xf7c   :  { %v6877_v56 = vadd.f32 %v3992_v47, %v6814_v22  ;;  %v4003_v5 = vadd.f32 %v5022_v54, %v4499_v9  ;;  %v4050_v33 = vsel %vm198_vm2, %v6882_v53, 0.0 }
 0xf7d   :  { %4036 = vadd.xlane.f32.xlu0 %v4035_v45  ;;  %v3994_v23 = vpop.f32.mrf.mxu0 }
 0xf7e   :  { %v3995_v26 = vadd.f32 %v4499_v9, %v3994_v23  ;;  %v4044_v58 = vsel %vm198_vm2, %v6877_v56, 0.0  ;;  %v6890_v22 = vadd.f32 %v4003_v5, %v6823_v32 }
 0xf7f   :  { %4045 = vadd.xlane.f32.xlu1 %v4044_v58 }
 0xf80   :  { %v6887_v63 = vadd.f32 %v3995_v26, %v6816_v19  ;;  %v4053_v20 = vsel %vm198_vm2, %v6890_v22, 0.0 }
 0xf82   :  { %v4047_v52 = vsel %vm198_vm2, %v6887_v63, 0.0 }
 0xf83   :  { %4048 = vadd.xlane.f32.xlu0 %v4047_v52  ;;  %4051 = vadd.xlane.f32.xlu1 %v4050_v33 }
 0xf87   :  { %4054 = vadd.xlane.f32.xlu0 %v4053_v20 }
 0xff0   :  { %v4028_v30 = vpop.xlane.xlu1 %4027 }
 0xff1   :  { %v4058_v31 = vmul.f32 0.03125, %v4028_v30 }
 0xff3   :  { %v6898_v18 = vsub.f32 %v4008_v51, %v4058_v31 }
 0xff4   :  { %v4022_v19 = vpop.xlane.xlu1 %4021  ;;  %v4031_v28 = vpop.xlane.xlu0 %4030 }
 0xff5   :  { %v4056_v32 = vmul.f32 0.03125, %v4022_v19  ;;  %v4059_v57 = vmul.f32 0.03125, %v4031_v28  ;;  %v4082_v11 = vmul.f32 %v6898_v18, %v6898_v18 }
 0xff7   :  { %v6902_v6 = vsub.f32 %v4006_v24, %v4056_v32  ;;  %v6904_v14 = vsub.f32 %v4009_v49, %v4059_v57  ;;  %v4098_v40 = vsel %vm198_vm2, %v4082_v11, 0.0 }
 0xff8   :  { %4099 = vadd.xlane.f32.xlu1 %v4098_v40  ;;  %v4025_v27 = vpop.xlane.xlu0 %4024 }
 0xff9   :  { %v4057_v3 = vmul.f32 0.03125, %v4025_v27  ;;  %v4080_v8 = vmul.f32 %v6902_v6, %v6902_v6  ;;  %v4083_v16 = vmul.f32 %v6904_v14, %v6904_v14 }
 0xffb   :  { %v6912_v9 = vsub.f32 %v6858_v48, %v4057_v3  ;;  %v4092_v55 = vsel %vm198_vm2, %v4080_v8, 0.0  ;;  %v4101_v36 = vsel %vm198_vm2, %v4083_v16, 0.0 }
 0xffc   :  { %4093 = vadd.xlane.f32.xlu1 %v4092_v55  ;;  %4102 = vadd.xlane.f32.xlu0 %v4101_v36 }
 0xffd   :  { %v4081_v51 = vmul.f32 %v6912_v9, %v6912_v9 }
 0xffe   :  { %v4040_v37 = vpop.xlane.xlu1 %4039 }
 0xfff   :  { %v4062_v61 = vmul.f32 0.03125, %v4040_v37  ;;  %v4095_v38 = vsel %vm198_vm2, %v4081_v51, 0.0 }
0x1000   :  { %4096 = vadd.xlane.f32.xlu0 %v4095_v38 }
0x1001   :  { %v6919_v24 = vsub.f32 %v4012_v44, %v4062_v61  ;;  %v6968_v61 = vld [vmem:[%s7237_s12] ss:$0 sm:$0xff] }
0x1002   :  { %v4034_v41 = vpop.xlane.xlu1 %4033  ;;  %v4043_v4 = vpop.xlane.xlu0 %4042 }
0x1003   :  { %v4060_v2 = vmul.f32 0.03125, %v4034_v41  ;;  %v4063_v49 = vmul.f32 0.03125, %v4043_v4  ;;  %v4086_v17 = vmul.f32 %v6919_v24, %v6919_v24 }
0x1005   :  { %v6924_v48 = vsub.f32 %v6866_v34, %v4060_v2  ;;  %v6926_v60 = vsub.f32 %v4013_v1, %v4063_v49  ;;  %v4110_v35 = vsel %vm198_vm2, %v4086_v17, 0.0  ;;  %v6974_v2 = vld [vmem:[%s7238_s13] ss:$0 sm:$0xff] }
0x1006   :  { %4111 = vadd.xlane.f32.xlu1 %v4110_v35  ;;  %v4037_v12 = vpop.xlane.xlu0 %4036 }
0x1007   :  { %v4061_v50 = vmul.f32 0.03125, %v4037_v12  ;;  %v4084_v39 = vmul.f32 %v6924_v48, %v6924_v48  ;;  %v4087_v62 = vmul.f32 %v6926_v60, %v6926_v60 }
0x1008   :  { %v4046_v44 = vpop.xlane.xlu1 %4045 }
0x1009   :  { %v6934_v46 = vsub.f32 %v6871_v13, %v4061_v50  ;;  %v4064_v21 = vmul.f32 0.03125, %v4046_v44  ;;  %v4104_v34 = vsel %vm198_vm2, %v4084_v39, 0.0  ;;  %v4113_v25 = vsel %vm198_vm2, %v4087_v62, 0.0 }
0x100a   :  { %4105 = vadd.xlane.f32.xlu1 %v4104_v34  ;;  %4114 = vadd.xlane.f32.xlu0 %v4113_v25 }
0x100b   :  { %v6939_v43 = vsub.f32 %v6877_v56, %v4064_v21  ;;  %v4085_v42 = vmul.f32 %v6934_v46, %v6934_v46 }
0x100c   :  { %v4052_v1 = vpop.xlane.xlu1 %4051  ;;  %v4049_v59 = vpop.xlane.xlu0 %4048 }
0x100d   :  { %v4066_v7 = vmul.f32 0.03125, %v4052_v1  ;;  %v4065_v10 = vmul.f32 0.03125, %v4049_v59  ;;  %v4107_v13 = vsel %vm198_vm2, %v4085_v42, 0.0  ;;  %v4088_v29 = vmul.f32 %v6939_v43, %v6939_v43 }
0x100e   :  { %4108 = vadd.xlane.f32.xlu0 %v4107_v13 }
0x100f   :  { %v6947_v0 = vsub.f32 %v6882_v53, %v4066_v7  ;;  %v6950_v15 = vsub.f32 %v6887_v63, %v4065_v10  ;;  %v4116_v47 = vsel %vm198_vm2, %v4088_v29, 0.0 }
0x1010   :  { %4117 = vadd.xlane.f32.xlu1 %v4116_v47  ;;  %v4055_v54 = vpop.xlane.xlu0 %4054 }
0x1011   :  { %v4067_v56 = vmul.f32 0.03125, %v4055_v54  ;;  %v4090_v45 = vmul.f32 %v6947_v0, %v6947_v0  ;;  %v4089_v23 = vmul.f32 %v6950_v15, %v6950_v15 }
0x1013   :  { %v6958_v5 = vsub.f32 %v6890_v22, %v4067_v56  ;;  %v4122_v53 = vsel %vm198_vm2, %v4090_v45, 0.0  ;;  %v4119_v26 = vsel %vm198_vm2, %v4089_v23, 0.0 }
0x1014   :  { %4123 = vadd.xlane.f32.xlu1 %v4122_v53  ;;  %4120 = vadd.xlane.f32.xlu0 %v4119_v26 }
0x1015   :  { %v4091_v58 = vmul.f32 %v6958_v5, %v6958_v5 }
0x1017   :  { %v4125_v63 = vsel %vm198_vm2, %v4091_v58, 0.0 }
0x1018   :  { %4126 = vadd.xlane.f32.xlu0 %v4125_v63 }
0x1081   :  { %v4100_v52 = vpop.xlane.xlu1 %4099 }
0x1082   :  { %v4130_v33 = vmul.f32 0.03125, %v4100_v52 }
0x1084   :  { %v4142_v20 = vadd.f32 1e-05, %v4130_v33 }
0x1085   :  { %v4094_v30 = vpop.xlane.xlu1 %4093  ;;  %v4103_v31 = vpop.xlane.xlu0 %4102 }
0x1086   :  { %5349 = vrsqrt.f32 %v4142_v20  ;;  %v4128_v22 = vmul.f32 0.03125, %v4094_v30  ;;  %v4131_v19 = vmul.f32 0.03125, %v4103_v31 }
0x1088   :  { %v4140_v28 = vadd.f32 1e-05, %v4128_v22  ;;  %v4143_v32 = vadd.f32 1e-05, %v4131_v19 }
0x1089   :  { %v4097_v57 = vpop.xlane.xlu0 %4096 }
0x108a   :  { %5351 = vrsqrt.f32 %v4140_v28  ;;  %v4129_v11 = vmul.f32 0.03125, %v4097_v57 }
0x108b   :  { %5353 = vrsqrt.f32 %v4143_v32 }
0x108c   :  { %v4141_v40 = vadd.f32 1e-05, %v4129_v11 }
0x108e   :  { %5355 = vrsqrt.f32 %v4141_v40 }
0x108f   :  { %v4112_v27 = vpop.xlane.xlu1 %4111 }
0x1090   :  { %v4134_v3 = vmul.f32 0.03125, %v4112_v27 }
0x1092   :  { %v4146_v8 = vadd.f32 1e-05, %v4134_v3 }
0x1093   :  { %v4106_v16 = vpop.xlane.xlu1 %4105  ;;  %v4115_v55 = vpop.xlane.xlu0 %4114 }
0x1094   :  { %v5350_v36 = vpop.eup %5349  ;;  %5357 = vrsqrt.f32 %v4146_v8  ;;  %v4132_v37 = vmul.f32 0.03125, %v4106_v16  ;;  %v4135_v51 = vmul.f32 0.03125, %v4115_v55 }
0x1095   :  { %v4166_v38 = vmul.f32 %v5350_v36, %v6898_v18 }
0x1096   :  { %v4144_v41 = vadd.f32 1e-05, %v4132_v37  ;;  %v4147_v4 = vadd.f32 1e-05, %v4135_v51 }
0x1097   :  { %v4109_v49 = vpop.xlane.xlu0 %4108  ;;  %v4184_v17 = vmul.f32 %v6968_v61, %v4166_v38  ;;  %v5352_v35 = vpop.eup %5351 }
0x1098   :  { %5359 = vrsqrt.f32 %v4144_v41  ;;  %v4133_v12 = vmul.f32 0.03125, %v4109_v49  ;;  %v5354_v50 = vpop.eup %5353  ;;  %v4164_v18 = vmul.f32 %v5352_v35, %v6902_v6 }
0x1099   :  { %5361 = vrsqrt.f32 %v4147_v4  ;;  %v4118_v39 = vpop.xlane.xlu1 %4117  ;;  %v6978_v62 = vadd.f32 %v6974_v2, %v4184_v17  ;;  %v4167_v34 = vmul.f32 %v5354_v50, %v6904_v14 }
0x109a   :  { %v4145_v44 = vadd.f32 1e-05, %v4133_v12  ;;  %v4136_v21 = vmul.f32 0.03125, %v4118_v39  ;;  %v4182_v42 = vmul.f32 %v6968_v61, %v4164_v18 }
0x109b   :  { %v4220_v25 = vsel %vm198_vm2, %v6978_v62, 0.0  ;;  %v5356_v1 = vpop.eup %5355  ;;  %v4185_v7 = vmul.f32 %v6968_v61, %v4167_v34 }
0x109c   :  { %5363 = vrsqrt.f32 %v4145_v44  ;;  %v4148_v59 = vadd.f32 1e-05, %v4136_v21  ;;  %4221 = vadd.xlane.f32.xlu1 %v4220_v25  ;;  %v6987_v29 = vadd.f32 %v6974_v2, %v4182_v42  ;;  %v4165_v6 = vmul.f32 %v5356_v1, %v6912_v9 }
0x109d   :  { %v4124_v10 = vpop.xlane.xlu1 %4123  ;;  %v4121_v13 = vpop.xlane.xlu0 %4120  ;;  %v6991_v54 = vadd.f32 %v6974_v2, %v4185_v7 }
0x109e   :  { %5365 = vrsqrt.f32 %v4148_v59  ;;  %v4138_v14 = vmul.f32 0.03125, %v4124_v10  ;;  %v4137_v47 = vmul.f32 0.03125, %v4121_v13  ;;  %v4214_v56 = vsel %vm198_vm2, %v6987_v29, 0.0 }
0x109f   :  { %v4183_v45 = vmul.f32 %v6968_v61, %v4165_v6  ;;  %v4223_v26 = vsel %vm198_vm2, %v6991_v54, 0.0 }
0x10a0   :  { %v4150_v23 = vadd.f32 1e-05, %v4138_v14  ;;  %v4149_v53 = vadd.f32 1e-05, %v4137_v47  ;;  %4215 = vadd.xlane.f32.xlu1 %v4214_v56  ;;  %4224 = vadd.xlane.f32.xlu0 %v4223_v26 }
0x10a1   :  { %v5358_v58 = vpop.eup %5357  ;;  %v4127_v9 = vpop.xlane.xlu0 %4126  ;;  %v6999_v63 = vadd.f32 %v6974_v2, %v4183_v45 }
0x10a2   :  { %5367 = vrsqrt.f32 %v4150_v23  ;;  %v4139_v52 = vmul.f32 0.03125, %v4127_v9  ;;  %v4170_v33 = vmul.f32 %v5358_v58, %v6919_v24 }
0x10a3   :  { %5369 = vrsqrt.f32 %v4149_v53  ;;  %v4217_v20 = vsel %vm198_vm2, %v6999_v63, 0.0 }
0x10a4   :  { %v4151_v30 = vadd.f32 1e-05, %v4139_v52  ;;  %v4188_v31 = vmul.f32 %v6968_v61, %v4170_v33  ;;  %4218 = vadd.xlane.f32.xlu0 %v4217_v20 }
0x10a5   :  { %v5360_v22 = vpop.eup %5359 }
0x10a6   :  { %v5362_v19 = vpop.eup %5361  ;;  %5371 = vrsqrt.f32 %v4151_v30  ;;  %v7006_v28 = vadd.f32 %v6974_v2, %v4188_v31  ;;  %v4168_v32 = vmul.f32 %v5360_v22, %v6924_v48 }
0x10a7   :  { %v4171_v57 = vmul.f32 %v5362_v19, %v6926_v60 }
0x10a8   :  { %v4232_v24 = vsel %vm198_vm2, %v7006_v28, 0.0  ;;  %v4186_v11 = vmul.f32 %v6968_v61, %v4168_v32 }
0x10a9   :  { %v5364_v40 = vpop.eup %5363  ;;  %4233 = vadd.xlane.f32.xlu1 %v4232_v24  ;;  %v4189_v27 = vmul.f32 %v6968_v61, %v4171_v57 }
0x10aa   :  { %v7015_v3 = vadd.f32 %v6974_v2, %v4186_v11  ;;  %v4169_v8 = vmul.f32 %v5364_v40, %v6934_v46 }
0x10ab   :  { %v5366_v16 = vpop.eup %5365  ;;  %v7019_v55 = vadd.f32 %v6974_v2, %v4189_v27 }
0x10ac   :  { %v4226_v48 = vsel %vm198_vm2, %v7015_v3, 0.0  ;;  %v4187_v60 = vmul.f32 %v6968_v61, %v4169_v8  ;;  %v4172_v36 = vmul.f32 %v5366_v16, %v6939_v43 }
0x10ad   :  { %4227 = vadd.xlane.f32.xlu1 %v4226_v48  ;;  %v4235_v37 = vsel %vm198_vm2, %v7019_v55, 0.0 }
0x10ae   :  { %4236 = vadd.xlane.f32.xlu0 %v4235_v37  ;;  %v7028_v51 = vadd.f32 %v6974_v2, %v4187_v60  ;;  %v4190_v46 = vmul.f32 %v6968_v61, %v4172_v36 }
0x10af   :  { %v5368_v38 = vpop.eup %5367 }
0x10b0   :  { %v5370_v41 = vpop.eup %5369  ;;  %v4229_v4 = vsel %vm198_vm2, %v7028_v51, 0.0  ;;  %v7034_v49 = vadd.f32 %v6974_v2, %v4190_v46  ;;  %v4174_v43 = vmul.f32 %v5368_v38, %v6947_v0 }
0x10b1   :  { %v4173_v17 = vmul.f32 %v5370_v41, %v6950_v15 }
0x10b2   :  { %4230 = vadd.xlane.f32.xlu0 %v4229_v4  ;;  %v4238_v35 = vsel %vm198_vm2, %v7034_v49, 0.0  ;;  %v4192_v12 = vmul.f32 %v6968_v61, %v4174_v43 }
0x10b3   :  { %v5372_v50 = vpop.eup %5371  ;;  %4239 = vadd.xlane.f32.xlu1 %v4238_v35  ;;  %v4191_v39 = vmul.f32 %v6968_v61, %v4173_v17 }
0x10b4   :  { %v7043_v18 = vadd.f32 %v6974_v2, %v4192_v12  ;;  %v4175_v44 = vmul.f32 %v5372_v50, %v6958_v5 }
0x10b5   :  { %v7047_v21 = vadd.f32 %v6974_v2, %v4191_v39 }
0x10b6   :  { %v4244_v0 = vsel %vm198_vm2, %v7043_v18, 0.0  ;;  %v4193_v15 = vmul.f32 %v6968_v61, %v4175_v44 }
0x10b7   :  { %4245 = vadd.xlane.f32.xlu1 %v4244_v0  ;;  %v4241_v34 = vsel %vm198_vm2, %v7047_v21, 0.0 }
0x10b8   :  { %4242 = vadd.xlane.f32.xlu0 %v4241_v34  ;;  %v7055_v25 = vadd.f32 %v6974_v2, %v4193_v15 }
0x10ba   :  { %v4247_v42 = vsel %vm198_vm2, %v7055_v25, 0.0 }
0x10bc   :  { %4248 = vadd.xlane.f32.xlu0 %v4247_v42 }
0x1125   :  { %v4222_v5 = vpop.xlane.xlu1 %4221 }
0x1126   :  { %v4252_v1 = vmul.f32 0.03125, %v4222_v5 }
0x1128   :  { %v7060_v59 = vsub.f32 %v6978_v62, %v4252_v1 }
0x1129   :  { %v4216_v7 = vpop.xlane.xlu1 %4215  ;;  %v4225_v61 = vpop.xlane.xlu0 %4224 }
0x112a   :  { %v4250_v10 = vmul.f32 0.03125, %v4216_v7  ;;  %v4276_v13 = vmul.f32 %v7060_v59, %v7060_v59  ;;  %v4253_v6 = vmul.f32 0.03125, %v4225_v61 }
0x112c   :  { %v7065_v14 = vsub.f32 %v6987_v29, %v4250_v10  ;;  %v4292_v2 = vsel %vm198_vm2, %v4276_v13, 0.0  ;;  %v7069_v47 = vsub.f32 %v6991_v54, %v4253_v6 }
0x112d   :  { %4293 = vadd.xlane.f32.xlu1 %v4292_v2  ;;  %v4219_v56 = vpop.xlane.xlu0 %4218 }
0x112e   :  { %v4274_v62 = vmul.f32 %v7065_v14, %v7065_v14  ;;  %v4251_v45 = vmul.f32 0.03125, %v4219_v56  ;;  %v4277_v23 = vmul.f32 %v7069_v47, %v7069_v47 }
0x1130   :  { %v4286_v53 = vsel %vm198_vm2, %v4274_v62, 0.0  ;;  %v7077_v26 = vsub.f32 %v6999_v63, %v4251_v45  ;;  %v4295_v29 = vsel %vm198_vm2, %v4277_v23, 0.0 }
0x1131   :  { %4287 = vadd.xlane.f32.xlu1 %v4286_v53  ;;  %4296 = vadd.xlane.f32.xlu0 %v4295_v29  ;;  %v7134_v29 = vld [vmem:[%s7239_s14] ss:$0 sm:$0xff] }
0x1132   :  { %v4234_v58 = vpop.xlane.xlu1 %4233  ;;  %v4275_v9 = vmul.f32 %v7077_v26, %v7077_v26 }
0x1133   :  { %v4256_v54 = vmul.f32 0.03125, %v4234_v58 }
0x1134   :  { %v4289_v33 = vsel %vm198_vm2, %v4275_v9, 0.0 }
0x1135   :  { %v7083_v52 = vsub.f32 %v7006_v28, %v4256_v54  ;;  %4290 = vadd.xlane.f32.xlu0 %v4289_v33 }
0x1136   :  { %v4228_v20 = vpop.xlane.xlu1 %4227 }
0x1137   :  { %v4254_v30 = vmul.f32 0.03125, %v4228_v20  ;;  %v4237_v31 = vpop.xlane.xlu0 %4236  ;;  %v4280_v63 = vmul.f32 %v7083_v52, %v7083_v52  ;;  %v7140_v20 = vld [vmem:[%s7240_s15] ss:$0 sm:$0xff] }
0x1138   :  { %v4257_v22 = vmul.f32 0.03125, %v4237_v31 }
0x1139   :  { %v7089_v19 = vsub.f32 %v7015_v3, %v4254_v30  ;;  %v4304_v32 = vsel %vm198_vm2, %v4280_v63, 0.0 }
0x113a   :  { %v7093_v57 = vsub.f32 %v7019_v55, %v4257_v22  ;;  %4305 = vadd.xlane.f32.xlu1 %v4304_v32 }
0x113b   :  { %v4231_v28 = vpop.xlane.xlu0 %4230  ;;  %v4278_v24 = vmul.f32 %v7089_v19, %v7089_v19 }
0x113c   :  { %v4255_v11 = vmul.f32 0.03125, %v4231_v28  ;;  %v4240_v40 = vpop.xlane.xlu1 %4239  ;;  %v4281_v27 = vmul.f32 %v7093_v57, %v7093_v57 }
0x113d   :  { %v4258_v8 = vmul.f32 0.03125, %v4240_v40  ;;  %v4298_v16 = vsel %vm198_vm2, %v4278_v24, 0.0 }
0x113e   :  { %v7101_v3 = vsub.f32 %v7028_v51, %v4255_v11  ;;  %4299 = vadd.xlane.f32.xlu1 %v4298_v16  ;;  %v4307_v55 = vsel %vm198_vm2, %v4281_v27, 0.0 }
0x113f   :  { %v7105_v48 = vsub.f32 %v7034_v49, %v4258_v8  ;;  %4308 = vadd.xlane.f32.xlu0 %v4307_v55 }
0x1140   :  { %v4246_v60 = vpop.xlane.xlu1 %4245  ;;  %v4279_v36 = vmul.f32 %v7101_v3, %v7101_v3 }
0x1141   :  { %v4260_v37 = vmul.f32 0.03125, %v4246_v60  ;;  %v4243_v46 = vpop.xlane.xlu0 %4242  ;;  %v4282_v38 = vmul.f32 %v7105_v48, %v7105_v48 }
0x1142   :  { %v4259_v41 = vmul.f32 0.03125, %v4243_v46  ;;  %v4301_v51 = vsel %vm198_vm2, %v4279_v36, 0.0 }
0x1143   :  { %v7113_v4 = vsub.f32 %v7043_v18, %v4260_v37  ;;  %4302 = vadd.xlane.f32.xlu0 %v4301_v51  ;;  %v4310_v49 = vsel %vm198_vm2, %v4282_v38, 0.0 }
0x1144   :  { %v7117_v43 = vsub.f32 %v7047_v21, %v4259_v41  ;;  %4311 = vadd.xlane.f32.xlu1 %v4310_v49 }
0x1145   :  { %v4249_v17 = vpop.xlane.xlu0 %4248  ;;  %v4284_v35 = vmul.f32 %v7113_v4, %v7113_v4 }
0x1146   :  { %v4261_v12 = vmul.f32 0.03125, %v4249_v17  ;;  %v4283_v50 = vmul.f32 %v7117_v43, %v7117_v43 }
0x1147   :  { %v4316_v39 = vsel %vm198_vm2, %v4284_v35, 0.0 }
0x1148   :  { %v7125_v18 = vsub.f32 %v7055_v25, %v4261_v12  ;;  %4317 = vadd.xlane.f32.xlu1 %v4316_v39  ;;  %v4313_v44 = vsel %vm198_vm2, %v4283_v50, 0.0 }
0x1149   :  { %4314 = vadd.xlane.f32.xlu0 %v4313_v44 }
0x114a   :  { %v4285_v21 = vmul.f32 %v7125_v18, %v7125_v18 }
0x114c   :  { %v4319_v0 = vsel %vm198_vm2, %v4285_v21, 0.0 }
0x114d   :  { %4320 = vadd.xlane.f32.xlu0 %v4319_v0 }
0x11b6   :  { %v4294_v15 = vpop.xlane.xlu1 %4293 }
0x11b7   :  { %v4324_v34 = vmul.f32 0.03125, %v4294_v15 }
0x11b9   :  { %v4336_v42 = vadd.f32 1e-05, %v4324_v34 }
0x11ba   :  { %v4288_v5 = vpop.xlane.xlu1 %4287  ;;  %v4297_v7 = vpop.xlane.xlu0 %4296 }
0x11bb   :  { %5373 = vrsqrt.f32 %v4336_v42  ;;  %v4322_v1 = vmul.f32 0.03125, %v4288_v5  ;;  %v4325_v10 = vmul.f32 0.03125, %v4297_v7 }
0x11bd   :  { %v4334_v25 = vadd.f32 1e-05, %v4322_v1  ;;  %v4337_v61 = vadd.f32 1e-05, %v4325_v10 }
0x11be   :  { %v4291_v13 = vpop.xlane.xlu0 %4290 }
0x11bf   :  { %5375 = vrsqrt.f32 %v4334_v25  ;;  %v4323_v6 = vmul.f32 0.03125, %v4291_v13 }
0x11c0   :  { %5377 = vrsqrt.f32 %v4337_v61 }
0x11c1   :  { %v4335_v2 = vadd.f32 1e-05, %v4323_v6 }
0x11c3   :  { %v4306_v56 = vpop.xlane.xlu1 %4305  ;;  %5379 = vrsqrt.f32 %v4335_v2 }
0x11c4   :  { %v4328_v62 = vmul.f32 0.03125, %v4306_v56 }
0x11c6   :  { %v4340_v45 = vadd.f32 1e-05, %v4328_v62 }
0x11c7   :  { %v4300_v23 = vpop.xlane.xlu1 %4299 }
0x11c8   :  { %v5374_v53 = vpop.eup %5373  ;;  %5381 = vrsqrt.f32 %v4340_v45  ;;  %v4326_v58 = vmul.f32 0.03125, %v4300_v23  ;;  %v4309_v54 = vpop.xlane.xlu0 %4308 }
0x11c9   :  { %v4360_v9 = vmul.f32 %v5374_v53, %v7060_v59  ;;  %v4329_v33 = vmul.f32 0.03125, %v4309_v54 }
0x11ca   :  { %v4338_v30 = vadd.f32 1e-05, %v4326_v58 }
0x11cb   :  { %v4378_v31 = vmul.f32 %v7134_v29, %v4360_v9  ;;  %v4341_v63 = vadd.f32 1e-05, %v4329_v33 }
0x11cc   :  { %v5376_v22 = vpop.eup %5375  ;;  %5383 = vrsqrt.f32 %v4338_v30  ;;  %v4303_v32 = vpop.xlane.xlu0 %4302 }
0x11cd   :  { %v5378_v28 = vpop.eup %5377  ;;  %v4396_v24 = vadd.f32 %v7140_v20, %v4378_v31  ;;  %v4358_v11 = vmul.f32 %v5376_v22, %v7065_v14  ;;  %5385 = vrsqrt.f32 %v4341_v63  ;;  %v4327_v59 = vmul.f32 0.03125, %v4303_v32  ;;  %v4312_v40 = vpop.xlane.xlu1 %4311 }
0x11ce   :  { %v4361_v27 = vmul.f32 %v5378_v28, %v7069_v47  ;;  %v4330_v8 = vmul.f32 0.03125, %v4312_v40 }
0x11cf   :  { %4408 = vst.msk [vmem:[%s7241_s16 + $0x10] sm:$0xff] %vm198_vm2, %v4396_v24  ;;  %v4376_v16 = vmul.f32 %v7134_v29, %v4358_v11  ;;  %v4339_v55 = vadd.f32 1e-05, %v4327_v59 }
0x11d0   :  { %v4379_v60 = vmul.f32 %v7134_v29, %v4361_v27  ;;  %v4342_v36 = vadd.f32 1e-05, %v4330_v8  ;;  %v5380_v37 = vpop.eup %5379 }
0x11d1   :  { %v4394_v14 = vadd.f32 %v7140_v20, %v4376_v16  ;;  %5387 = vrsqrt.f32 %v4339_v55  ;;  %v4318_v46 = vpop.xlane.xlu1 %4317  ;;  %v4359_v47 = vmul.f32 %v5380_v37, %v7077_v26 }
0x11d2   :  { %v4397_v38 = vadd.f32 %v7140_v20, %v4379_v60  ;;  %5389 = vrsqrt.f32 %v4342_v36  ;;  %v4332_v41 = vmul.f32 0.03125, %v4318_v46  ;;  %v4315_v51 = vpop.xlane.xlu0 %4314 }
0x11d3   :  { %4406 = vst.msk [vmem:[%s7241_s16] sm:$0xff] %vm198_vm2, %v4394_v14  ;;  %v4331_v49 = vmul.f32 0.03125, %v4315_v51  ;;  %v4377_v17 = vmul.f32 %v7134_v29, %v4359_v47 }
0x11d4   :  { %4409 = vst.msk [vmem:[%s7241_s16 + $0x18] sm:$0xff] %vm198_vm2, %v4397_v38  ;;  %v4344_v35 = vadd.f32 1e-05, %v4332_v41 }
0x11d5   :  { %v5382_v12 = vpop.eup %5381  ;;  %v4343_v50 = vadd.f32 1e-05, %v4331_v49  ;;  %v4395_v26 = vadd.f32 %v7140_v20, %v4377_v17 }
0x11d6   :  { %v4364_v39 = vmul.f32 %v5382_v12, %v7083_v52  ;;  %5391 = vrsqrt.f32 %v4344_v35  ;;  %v4321_v44 = vpop.xlane.xlu0 %4320 }
0x11d7   :  { %5393 = vrsqrt.f32 %v4343_v50  ;;  %v4333_v21 = vmul.f32 0.03125, %v4321_v44  ;;  %4407 = vst.msk [vmem:[%s7241_s16 + $0x8] sm:$0xff] %vm198_vm2, %v4395_v26 }
0x11d8   :  { %v4382_v0 = vmul.f32 %v7134_v29, %v4364_v39 }
0x11d9   :  { %v5384_v15 = vpop.eup %5383  ;;  %v4345_v34 = vadd.f32 1e-05, %v4333_v21 }
0x11da   :  { %v5386_v42 = vpop.eup %5385  ;;  %v4400_v5 = vadd.f32 %v7140_v20, %v4382_v0  ;;  %v4362_v1 = vmul.f32 %v5384_v15, %v7089_v19 }
0x11db   :  { %v4365_v52 = vmul.f32 %v5386_v42, %v7093_v57  ;;  %5395 = vrsqrt.f32 %v4345_v34 }
0x11dc   :  { %4412 = vst.msk [vmem:[%s7241_s16 + $0x30] sm:$0xff] %vm198_vm2, %v4400_v5  ;;  %v4380_v7 = vmul.f32 %v7134_v29, %v4362_v1 }
0x11dd   :  { %v4383_v10 = vmul.f32 %v7134_v29, %v4365_v52 }
0x11de   :  { %v5388_v25 = vpop.eup %5387  ;;  %v4398_v61 = vadd.f32 %v7140_v20, %v4380_v7 }
0x11df   :  { %v5390_v13 = vpop.eup %5389  ;;  %v4401_v6 = vadd.f32 %v7140_v20, %v4383_v10  ;;  %v4363_v19 = vmul.f32 %v5388_v25, %v7101_v3 }
0x11e0   :  { %4410 = vst.msk [vmem:[%s7241_s16 + $0x20] sm:$0xff] %vm198_vm2, %v4398_v61  ;;  %v4366_v57 = vmul.f32 %v5390_v13, %v7105_v48 }
0x11e1   :  { %4413 = vst.msk [vmem:[%s7241_s16 + $0x38] sm:$0xff] %vm198_vm2, %v4401_v6  ;;  %v4381_v2 = vmul.f32 %v7134_v29, %v4363_v19 }
0x11e2   :  { %v4384_v56 = vmul.f32 %v7134_v29, %v4366_v57 }
0x11e3   :  { %v5392_v62 = vpop.eup %5391  ;;  %v4399_v45 = vadd.f32 %v7140_v20, %v4381_v2 }
0x11e4   :  { %v5394_v3 = vpop.eup %5393  ;;  %v4402_v23 = vadd.f32 %v7140_v20, %v4384_v56  ;;  %v4368_v53 = vmul.f32 %v5392_v62, %v7113_v4 }
0x11e5   :  { %4411 = vst.msk [vmem:[%s7241_s16 + $0x28] sm:$0xff] %vm198_vm2, %v4399_v45  ;;  %v4367_v48 = vmul.f32 %v5394_v3, %v7117_v43 }
0x11e6   :  { %4414 = vst.msk [vmem:[%s7241_s16 + $0x40] sm:$0xff] %vm198_vm2, %v4402_v23  ;;  %v4386_v58 = vmul.f32 %v7134_v29, %v4368_v53 }
0x11e7   :  { %v4385_v54 = vmul.f32 %v7134_v29, %v4367_v48 }
0x11e8   :  { %v5396_v9 = vpop.eup %5395  ;;  %v4404_v33 = vadd.f32 %v7140_v20, %v4386_v58 }
0x11e9   :  { %v4403_v4 = vadd.f32 %v7140_v20, %v4385_v54  ;;  %v4369_v30 = vmul.f32 %v5396_v9, %v7125_v18 }
0x11ea   :  { %4416 = vst.msk [vmem:[%s7241_s16 + $0x50] sm:$0xff] %vm198_vm2, %v4404_v33 }
0x11eb   :  { %4415 = vst.msk [vmem:[%s7241_s16 + $0x48] sm:$0xff] %vm198_vm2, %v4403_v4  ;;  %v4387_v43 = vmul.f32 %v7134_v29, %v4369_v30 }
0x11ed   :  { %v4405_v31 = vadd.f32 %v7140_v20, %v4387_v43 }
0x11ef   :  { %4417 = vst.msk [vmem:[%s7241_s16 + $0x58] sm:$0xff] %vm198_vm2, %v4405_v31 }

</bundles_post_ra>
